<compile_context>
chip_gen: v7x
topology: tpu7x:2x2x1
jax: 0.10.0
libtpu: 0.0.40
codegen_flags: <defaults>
</compile_context>

<pallas_src>
import math

import jax
import jax.numpy as jnp
from jax.experimental import pallas as pl
from jax.experimental.pallas import tpu as pltpu


# -----------------------------------------------------------------------------
# Fused bidirectional 2-layer LSTM encoder.
#   grid = (direction, time); direction is "parallel" (megacore), time "arbitrary".
#   Inputs: precomputed layer-0 gate inputs g0 = x @ W_ih0 + b0, shape (2, T, B, 4H)
#   (direction 0 = forward, 1 = reverse). Reverse time order is handled purely by
#   the index maps; the reverse output is written back already time-aligned.
# -----------------------------------------------------------------------------
def bilstm_encoder(g0, whh0, w1cat, b1):
    D, T, B, G = g0.shape          # D = 2 directions, G = 4H
    H = G // 4

    def kernel(g0_ref, whh0_ref, w1cat_ref, b1_ref, out_ref,
               h01_scr, c0_scr, c1_scr):
        t = pl.program_id(1)

        @pl.when(t == 0)
        def _():
            h01_scr[...] = jnp.zeros_like(h01_scr)
            c0_scr[...] = jnp.zeros_like(c0_scr)
            c1_scr[...] = jnp.zeros_like(c1_scr)

        def lstm_cell(gates, c_prev):
            i = jax.nn.sigmoid(gates[:, 0 * H:1 * H])
            f = jax.nn.sigmoid(gates[:, 1 * H:2 * H])
            g = jnp.tanh(gates[:, 2 * H:3 * H])
            o = jax.nn.sigmoid(gates[:, 3 * H:4 * H])
            c = f * c_prev + i * g
            h = o * jnp.tanh(c)
            return h, c

        # layer 0 -- input projection was hoisted out of the recurrence.
        h0_prev = h01_scr[:, :H]
        gates0 = g0_ref[0, 0] + jnp.dot(h0_prev, whh0_ref[0],
                                        preferred_element_type=jnp.float32)
        h0, c0 = lstm_cell(gates0, c0_scr[...])
        c0_scr[...] = c0
        h01_scr[:, :H] = h0                    # scratch now holds [h0_curr | h1_prev]

        # layer 1 -- single fused matmul: [h0_curr | h1_prev] @ [W_ih1; W_hh1]
        gates1 = (jnp.dot(h01_scr[...], w1cat_ref[0],
                          preferred_element_type=jnp.float32)
                  + b1_ref[0])
        h1, c1 = lstm_cell(gates1, c1_scr[...])
        c1_scr[...] = c1
        h01_scr[:, H:] = h1                    # scratch now holds [h0_curr | h1_curr]
        out_ref[0, 0] = h1

    # fwd direction reads/writes time slot t; rev direction reads/writes T-1-t.
    def time_idx(d, t):
        return t + d * (T - 1 - 2 * t)

    return pl.pallas_call(
        kernel,
        grid=(D, T),
        in_specs=[
            pl.BlockSpec((1, 1, B, G), lambda d, t: (d, time_idx(d, t), 0, 0)),
            pl.BlockSpec((1, H, G), lambda d, t: (d, 0, 0)),
            pl.BlockSpec((1, 2 * H, G), lambda d, t: (d, 0, 0)),
            pl.BlockSpec((1, 1, G), lambda d, t: (d, 0, 0)),
        ],
        out_specs=pl.BlockSpec((1, 1, B, H),
                               lambda d, t: (d, time_idx(d, t), 0, 0)),
        out_shape=jax.ShapeDtypeStruct((D, T, B, H), jnp.float32),
        scratch_shapes=[
            pltpu.VMEM((B, 2 * H), jnp.float32),   # [h layer-0 | h layer-1]
            pltpu.VMEM((B, H), jnp.float32),       # c, layer 0
            pltpu.VMEM((B, H), jnp.float32),       # c, layer 1
        ],
        compiler_params=pltpu.CompilerParams(
            dimension_semantics=("parallel", "arbitrary"),
            vmem_limit_bytes=64 * 1024 * 1024),
    )(g0, whh0, w1cat, b1)


# -----------------------------------------------------------------------------
# Decoder: flash-style masked attention over time (tiled, online softmax),
# then dense/ReLU + label & mem heads on the final tile.
# Consumes the stacked (2, T, B, H) layer-2 states directly (no HBM concat /
# permute); [fwd | rev] is concatenated lane-wise inside the kernel.
# -----------------------------------------------------------------------------
def decoder_kernel(h_ref, sl_ref, watt_ref, batt_ref, vrow_ref, bv_ref,
                   wd_ref, bd_ref, wl_ref, bl_ref, wm_ref, bm_ref,
                   lab_ref, mem_ref, alpha_ref,
                   m_scr, l_scr, cf_scr, cr_scr, s_scr):
    tt = pl.program_id(0)
    _, t_tile, B, H = h_ref.shape
    T = s_scr.shape[0]

    @pl.when(tt == 0)
    def _():
        m_scr[...] = jnp.full_like(m_scr, -1e30)
        l_scr[...] = jnp.zeros_like(l_scr)
        cf_scr[...] = jnp.zeros_like(cf_scr)
        cr_scr[...] = jnp.zeros_like(cr_scr)

    hf = h_ref[0]                              # (t_tile, B, H)  fwd states
    hr = h_ref[1]                              # (t_tile, B, H)  rev states
    hf2 = hf.reshape(t_tile * B, H)
    hr2 = hr.reshape(t_tile * B, H)
    hcat = jnp.concatenate([hf2, hr2], axis=-1)          # (t_tile*B, 2H)

    # attention energies: tanh([hf | hr] @ W_att + b) -- single K=2H MXU matmul
    e = jnp.tanh(jnp.dot(hcat, watt_ref[...], preferred_element_type=jnp.float32)
                 + batt_ref[...])              # (t_tile*B, A)
    # score = e @ v as a VPU lane-reduction (avoid N=1 MXU matvec)
    e3 = e.reshape(t_tile, B, e.shape[-1])
    s_tb = jnp.sum(e3 * vrow_ref[...], axis=-1) + bv_ref[...]     # (t_tile, B)

    # seq_len mask for this time tile
    t0 = pl.multiple_of(tt * t_tile, t_tile)
    pos = t0 + jax.lax.broadcasted_iota(jnp.int32, (t_tile, B), 0)
    valid = pos < sl_ref[...]                  # (t_tile, B)
    s_tb = jnp.where(valid, s_tb, -1e30)
    s_scr[pl.ds(t0, t_tile), :] = s_tb         # stash scores for alpha output

    # online softmax update
    m_old = m_scr[...]                                            # (1, B)
    m_new = jnp.maximum(m_old, jnp.max(s_tb, axis=0, keepdims=True))
    a = jnp.exp(m_old - m_new)                                    # (1, B)
    p = jnp.where(valid, jnp.exp(s_tb - m_new), 0.0)              # (t_tile, B)
    l_scr[...] = a * l_scr[...] + jnp.sum(p, axis=0, keepdims=True)
    a_col = jnp.transpose(a)                                      # (B, 1)
    # per-tile weighted sum over time (leading-axis reduce, bounded temporary)
    cf_scr[...] = cf_scr[...] * a_col + jnp.sum(p[:, :, None] * hf, axis=0)
    cr_scr[...] = cr_scr[...] * a_col + jnp.sum(p[:, :, None] * hr, axis=0)
    m_scr[...] = m_new

    @pl.when(tt == pl.num_programs(0) - 1)
    def _():
        inv_l = 1.0 / l_scr[...]                                  # (1, B)
        inv_col = jnp.transpose(inv_l)                            # (B, 1)
        ctx = jnp.concatenate([cf_scr[...], cr_scr[...]], axis=-1) * inv_col
        hid = jnp.maximum(
            jnp.dot(ctx, wd_ref[...], preferred_element_type=jnp.float32)
            + bd_ref[...], 0.0)                                   # (B, NH2)
        lab_ref[...] = (jnp.dot(hid, wl_ref[...],
                                preferred_element_type=jnp.float32)
                        + bl_ref[...])
        # mem head is an N=1 matvec -> VPU reduction
        mem_ref[...] = (jnp.sum(hid * wm_ref[...], axis=-1, keepdims=True)
                        + bm_ref[...])
        # normalized attention weights, masked, output as (B, T)
        pos_all = jax.lax.broadcasted_iota(jnp.int32, (T, B), 0)
        valid_all = pos_all < sl_ref[...]
        alpha_tb = jnp.where(valid_all,
                             jnp.exp(s_scr[...] - m_scr[...]), 0.0) * inv_l
        alpha_ref[...] = jnp.transpose(alpha_tb)


def decoder_forward(dec, h1_all, sl_row, t_tile):
    _, T, B, H = h1_all.shape
    NC = dec["w_label"].shape[1]
    t_tile = math.gcd(T, t_tile)
    nt = T // t_tile

    def full_spec(arr):
        return pl.BlockSpec(arr.shape, lambda tt: (0, 0))

    out_lab, out_mem, alpha = pl.pallas_call(
        decoder_kernel,
        grid=(nt,),
        in_specs=[
            pl.BlockSpec((2, t_tile, B, H), lambda tt: (0, tt, 0, 0)),
            full_spec(sl_row),
            full_spec(dec["w_att"]), full_spec(dec["b_att"]),
            full_spec(dec["v_att"]), full_spec(dec["b_v"]),
            full_spec(dec["w_dense"]), full_spec(dec["b_dense"]),
            full_spec(dec["w_label"]), full_spec(dec["b_label"]),
            full_spec(dec["w_mem"]), full_spec(dec["b_mem"]),
        ],
        out_specs=(
            pl.BlockSpec((B, NC), lambda tt: (0, 0)),
            pl.BlockSpec((B, 1), lambda tt: (0, 0)),
            pl.BlockSpec((B, T), lambda tt: (0, 0)),
        ),
        out_shape=(
            jax.ShapeDtypeStruct((B, NC), jnp.float32),
            jax.ShapeDtypeStruct((B, 1), jnp.float32),
            jax.ShapeDtypeStruct((B, T), jnp.float32),
        ),
        scratch_shapes=[
            pltpu.VMEM((1, B), jnp.float32),   # running max
            pltpu.VMEM((1, B), jnp.float32),   # running sum
            pltpu.VMEM((B, H), jnp.float32),   # fwd context accumulator
            pltpu.VMEM((B, H), jnp.float32),   # rev context accumulator
            pltpu.VMEM((T, B), jnp.float32),   # masked scores (for alpha)
        ],
        compiler_params=pltpu.CompilerParams(
            dimension_semantics=("arbitrary",),
            vmem_limit_bytes=64 * 1024 * 1024),
    )(h1_all, sl_row,
      dec["w_att"], dec["b_att"], dec["v_att"], dec["b_v"],
      dec["w_dense"], dec["b_dense"],
      dec["w_label"], dec["b_label"], dec["w_mem"], dec["b_mem"])
    return (out_lab, out_mem), alpha


# -----------------------------------------------------------------------------
# Full model forward (mirrors Model.forward of bi_awd_second_attention).
# -----------------------------------------------------------------------------
def model_forward(params, inp_tokens, seq_len, t_tile=8):
    B, T = inp_tokens.shape
    B_pad = ((B + 7) // 8) * 8                 # pad batch to a full sublane group

    emb = params["embedding"][inp_tokens]      # (B, T, E) -- glue (gather)
    seq_len = seq_len.astype(jnp.int32)
    if B_pad != B:
        emb = jnp.pad(emb, ((0, B_pad - B), (0, 0), (0, 0)))
        seq_len = jnp.concatenate(
            [seq_len, jnp.ones((B_pad - B,), jnp.int32)])
    x_tbe = jnp.transpose(emb, (1, 0, 2))      # (T, B_pad, E)

    # Hoisted layer-0 input projection for BOTH directions: one big matmul
    # over all T*B rows (near-roofline in XLA).
    g0 = (jnp.einsum("tbe,deg->dtbg", x_tbe, params["wih0"])
          + params["b0"][:, None])             # (2, T, B_pad, 4H)

    # Fused bidirectional 2-layer LSTM (layer-2 states of both directions,
    # reverse direction already re-aligned in time).
    h1_all = bilstm_encoder(g0, params["whh0"], params["w1cat"],
                            params["b1"])      # (2, T, B_pad, H)

    sl_row = seq_len.reshape(1, B_pad)
    (lab, mem), alpha = decoder_forward(params["decoder"], h1_all, sl_row, t_tile)
    return (lab[:B], mem[:B]), alpha[:B]


# -----------------------------------------------------------------------------
# Deterministic parameter init (encoder weights pre-stacked by direction;
# layer-1 input/recurrent weights pre-concatenated along K; decoder attention /
# dense weights take the concatenated [fwd | rev] 2H features, as in PyTorch).
# -----------------------------------------------------------------------------
def init_params(key, vocab, emb_dim, hid, att_size, n_hid2, n_classes):
    ks = jax.random.split(key, 16)
    s = 1.0 / math.sqrt(hid)

    def u(k, shape):
        return jax.random.uniform(k, shape, jnp.float32, -s, s)

    dec = {
        "w_att": jax.random.normal(ks[8], (2 * hid, att_size)) * 0.05,
        "b_att": jnp.zeros((1, att_size), jnp.float32),
        "v_att": jax.random.normal(ks[10], (1, att_size)) * 0.05,
        "b_v": jnp.zeros((1, 1), jnp.float32),
        "w_dense": jax.random.normal(ks[11], (2 * hid, n_hid2)) * 0.05,
        "b_dense": jnp.zeros((1, n_hid2), jnp.float32),
        "w_label": jax.random.normal(ks[13], (n_hid2, n_classes)) * 0.05,
        "b_label": jnp.zeros((1, n_classes), jnp.float32),
        "w_mem": jax.random.normal(ks[14], (1, n_hid2)) * 0.05,
        "b_mem": jnp.zeros((1, 1), jnp.float32),
    }
    return {
        "embedding": jax.random.normal(ks[0], (vocab, emb_dim)) * 0.1,
        # leading axis = direction (0 fwd, 1 rev); single bias = b_ih + b_hh
        "wih0": u(ks[1], (2, emb_dim, 4 * hid)),
        "whh0": u(ks[2], (2, hid, 4 * hid)),
        "b0": u(ks[3], (2, 1, 4 * hid)),
        # layer-1 weights pre-stacked along K: rows 0:H = W_ih1, rows H:2H = W_hh1
        "w1cat": u(ks[4], (2, 2 * hid, 4 * hid)),
        "b1": u(ks[6], (2, 1, 4 * hid)),
        "decoder": dec,
    }


if __name__ == "__main__":
    B, T = 4, 16
    VOCAB, EMB, HID = 21, 64, 128          # original HID=1280 (scaled down)
    ATT, NHID2, NCLS = 128, 128, 10

    key = jax.random.PRNGKey(0)
    k_tok, k_len, k_par = jax.random.split(key, 3)
    inp = jax.random.randint(k_tok, (B, T), 0, VOCAB, dtype=jnp.int32)
    seq_len = jax.random.randint(k_len, (B,), 1, T + 1, dtype=jnp.int32)
    params = init_params(k_par, VOCAB, EMB, HID, ATT, NHID2, NCLS)

    (out_label, out_mem), alpha = jax.jit(model_forward)(params, inp, seq_len)
    jax.block_until_ready((out_label, out_mem, alpha))

    assert out_label.shape == (B, NCLS)
    assert out_mem.shape == (B, 1)
    assert alpha.shape == (B, T)
    # masked softmax weights of each (valid) row must sum to 1
    assert bool(jnp.allclose(jnp.sum(alpha, axis=1), 1.0, atol=1e-3))
    print("KERNEL_OK")
</pallas_src>

<mosaic_0001>
module attributes {stable_mosaic.version = 11 : i64} {
  func.func @kernel(%arg0: i32, %arg1: i32, %arg2: memref<1x1x8x512xf32, #tpu.memory_space<vmem>>, %arg3: memref<1x128x512xf32, #tpu.memory_space<vmem>>, %arg4: memref<1x256x512xf32, #tpu.memory_space<vmem>>, %arg5: memref<1x1x512xf32, #tpu.memory_space<vmem>>, %arg6: memref<1x1x8x128xf32, #tpu.memory_space<vmem>>, %arg7: memref<8x256xf32, #tpu.memory_space<vmem>>, %arg8: memref<8x128xf32, #tpu.memory_space<vmem>>, %arg9: memref<8x128xf32, #tpu.memory_space<vmem>>) attributes {dimension_semantics = [#tpu.dimension_semantics<parallel>, #tpu.dimension_semantics<arbitrary>], iteration_bounds = array<i64: 2, 16>, scalar_prefetch = 0 : i64, scratch_operands = 3 : i64, tpu.core_type = #tpu.core_type<tc>, window_params = [{transform_indices = @transform_0, window_bounds = array<i64: 1, 1, 8, 512>}, {transform_indices = @transform_1, window_bounds = array<i64: 1, 128, 512>}, {transform_indices = @transform_2, window_bounds = array<i64: 1, 256, 512>}, {transform_indices = @transform_3, window_bounds = array<i64: 1, 1, 512>}, {transform_indices = @transform_4, window_bounds = array<i64: 1, 1, 8, 128>}]} {
    %c0_i32 = arith.constant 0 : i32
    %0 = arith.cmpi eq, %arg1, %c0_i32 : i32
    %1 = arith.extui %0 : i1 to i32
    %c0_i32_0 = arith.constant 0 : i32
    %2 = arith.cmpi ne, %1, %c0_i32_0 : i32
    scf.if %2 {
      %cst_39 = arith.constant 0.000000e+00 : f32
      %77 = vector.broadcast %cst_39 : f32 to vector<8x256xf32>
      %c0_40 = arith.constant 0 : index
      %c0_41 = arith.constant 0 : index
      %78 = vector.load %arg7[%c0_40, %c0_41] : memref<8x256xf32, #tpu.memory_space<vmem>>, vector<8x256xf32>
      tpu.vector_store %arg7[%c0_40, %c0_41], %77 {strides = array<i32>} : memref<8x256xf32, #tpu.memory_space<vmem>>, vector<8x256xf32>,
      %cst_42 = arith.constant 0.000000e+00 : f32
      %79 = vector.broadcast %cst_42 : f32 to vector<8x128xf32>
      %c0_43 = arith.constant 0 : index
      %c0_44 = arith.constant 0 : index
      %80 = vector.load %arg8[%c0_43, %c0_44] : memref<8x128xf32, #tpu.memory_space<vmem>>, vector<8x128xf32>
      tpu.vector_store %arg8[%c0_43, %c0_44], %79 {strides = array<i32>} : memref<8x128xf32, #tpu.memory_space<vmem>>, vector<8x128xf32>,
      %cst_45 = arith.constant 0.000000e+00 : f32
      %81 = vector.broadcast %cst_45 : f32 to vector<8x128xf32>
      %c0_46 = arith.constant 0 : index
      %c0_47 = arith.constant 0 : index
      %82 = vector.load %arg9[%c0_46, %c0_47] : memref<8x128xf32, #tpu.memory_space<vmem>>, vector<8x128xf32>
      tpu.vector_store %arg9[%c0_46, %c0_47], %81 {strides = array<i32>} : memref<8x128xf32, #tpu.memory_space<vmem>>, vector<8x128xf32>,
    } else {
    }
    %c0 = arith.constant 0 : index
    %c0_1 = arith.constant 0 : index
    %3 = vector.load %arg7[%c0, %c0_1] : memref<8x256xf32, #tpu.memory_space<vmem>>, vector<8x128xf32>
    %c0_2 = arith.constant 0 : index
    %c0_3 = arith.constant 0 : index
    %c0_4 = arith.constant 0 : index
    %c0_5 = arith.constant 0 : index
    %4 = vector.load %arg2[%c0_2, %c0_3, %c0_4, %c0_5] : memref<1x1x8x512xf32, #tpu.memory_space<vmem>>, vector<1x1x8x512xf32>
    %5 = vector.shape_cast %4 : vector<1x1x8x512xf32> to vector<8x512xf32>
    %c0_6 = arith.constant 0 : index
    %c0_7 = arith.constant 0 : index
    %c0_8 = arith.constant 0 : index
    %6 = vector.load %arg3[%c0_6, %c0_7, %c0_8] : memref<1x128x512xf32, #tpu.memory_space<vmem>>, vector<1x128x512xf32>
    %7 = vector.shape_cast %6 : vector<1x128x512xf32> to vector<128x512xf32>
    %cst = arith.constant dense<0.000000e+00> : vector<8x512xf32>
    %8 = tpu.matmul %3, %7, %cst {dimension_numbers = #tpu.dot_dimension_numbers<[1], [0], [0], [1], [0, 0, 1, 1], [], []>} : vector<8x128xf32>, vector<128x512xf32>, vector<8x512xf32> -> vector<8x512xf32>
    %9 = arith.addf %5, %8 : vector<8x512xf32>
    %c0_9 = arith.constant 0 : index
    %c0_10 = arith.constant 0 : index
    %10 = vector.load %arg8[%c0_9, %c0_10] : memref<8x128xf32, #tpu.memory_space<vmem>>, vector<8x128xf32>
    %11 = vector.extract_strided_slice %9 {offsets = [0, 0], sizes = [8, 128], strides = [1, 1]} : vector<8x512xf32> to vector<8x128xf32>
    %12 = arith.negf %11 : vector<8x128xf32>
    %13 = math.exp %12 : vector<8x128xf32>
    %cst_11 = arith.constant 1.000000e+00 : f32
    %14 = vector.broadcast %cst_11 : f32 to vector<8x128xf32>
    %15 = arith.addf %14, %13 : vector<8x128xf32>
    %16 = arith.divf %14, %15 : vector<8x128xf32>
    %17 = vector.extract_strided_slice %9 {offsets = [0, 128], sizes = [8, 128], strides = [1, 1]} : vector<8x512xf32> to vector<8x128xf32>
    %18 = arith.negf %17 : vector<8x128xf32>
    %19 = math.exp %18 : vector<8x128xf32>
    %cst_12 = arith.constant 1.000000e+00 : f32
    %20 = vector.broadcast %cst_12 : f32 to vector<8x128xf32>
    %21 = arith.addf %20, %19 : vector<8x128xf32>
    %22 = arith.divf %20, %21 : vector<8x128xf32>
    %23 = vector.extract_strided_slice %9 {offsets = [0, 256], sizes = [8, 128], strides = [1, 1]} : vector<8x512xf32> to vector<8x128xf32>
    %24 = math.tanh %23 : vector<8x128xf32>
    %25 = vector.extract_strided_slice %9 {offsets = [0, 384], sizes = [8, 128], strides = [1, 1]} : vector<8x512xf32> to vector<8x128xf32>
    %26 = arith.negf %25 : vector<8x128xf32>
    %27 = math.exp %26 : vector<8x128xf32>
    %cst_13 = arith.constant 1.000000e+00 : f32
    %28 = vector.broadcast %cst_13 : f32 to vector<8x128xf32>
    %29 = arith.addf %28, %27 : vector<8x128xf32>
    %30 = arith.divf %28, %29 : vector<8x128xf32>
    %31 = arith.mulf %22, %10 : vector<8x128xf32>
    %32 = arith.mulf %16, %24 : vector<8x128xf32>
    %33 = arith.addf %31, %32 : vector<8x128xf32>
    %34 = math.tanh %33 : vector<8x128xf32>
    %35 = arith.mulf %30, %34 : vector<8x128xf32>
    %c0_14 = arith.constant 0 : index
    %c0_15 = arith.constant 0 : index
    %36 = vector.load %arg8[%c0_14, %c0_15] : memref<8x128xf32, #tpu.memory_space<vmem>>, vector<8x128xf32>
    tpu.vector_store %arg8[%c0_14, %c0_15], %33 {strides = array<i32>} : memref<8x128xf32, #tpu.memory_space<vmem>>, vector<8x128xf32>,
    %c0_16 = arith.constant 0 : index
    %c0_17 = arith.constant 0 : index
    %37 = vector.load %arg7[%c0_16, %c0_17] : memref<8x256xf32, #tpu.memory_space<vmem>>, vector<8x128xf32>
    tpu.vector_store %arg7[%c0_16, %c0_17], %35 {strides = array<i32>} : memref<8x256xf32, #tpu.memory_space<vmem>>, vector<8x128xf32>,
    %c0_18 = arith.constant 0 : index
    %c0_19 = arith.constant 0 : index
    %38 = vector.load %arg7[%c0_18, %c0_19] : memref<8x256xf32, #tpu.memory_space<vmem>>, vector<8x256xf32>
    %c0_20 = arith.constant 0 : index
    %c0_21 = arith.constant 0 : index
    %c0_22 = arith.constant 0 : index
    %39 = vector.load %arg4[%c0_20, %c0_21, %c0_22] : memref<1x256x512xf32, #tpu.memory_space<vmem>>, vector<1x256x512xf32>
    %40 = vector.shape_cast %39 : vector<1x256x512xf32> to vector<256x512xf32>
    %cst_23 = arith.constant dense<0.000000e+00> : vector<8x512xf32>
    %41 = tpu.matmul %38, %40, %cst_23 {dimension_numbers = #tpu.dot_dimension_numbers<[1], [0], [0], [1], [0, 0, 1, 1], [], []>} : vector<8x256xf32>, vector<256x512xf32>, vector<8x512xf32> -> vector<8x512xf32>
    %c0_24 = arith.constant 0 : index
    %c0_25 = arith.constant 0 : index
    %c0_26 = arith.constant 0 : index
    %42 = vector.load %arg5[%c0_24, %c0_25, %c0_26] : memref<1x1x512xf32, #tpu.memory_space<vmem>>, vector<1x1x512xf32>
    %43 = vector.shape_cast %42 : vector<1x1x512xf32> to vector<1x512xf32>
    %44 = vector.broadcast %43 : vector<1x512xf32> to vector<8x512xf32>
    %45 = arith.addf %41, %44 : vector<8x512xf32>
    %c0_27 = arith.constant 0 : index
    %c0_28 = arith.constant 0 : index
    %46 = vector.load %arg9[%c0_27, %c0_28] : memref<8x128xf32, #tpu.memory_space<vmem>>, vector<8x128xf32>
    %47 = vector.extract_strided_slice %45 {offsets = [0, 0], sizes = [8, 128], strides = [1, 1]} : vector<8x512xf32> to vector<8x128xf32>
    %48 = arith.negf %47 : vector<8x128xf32>
    %49 = math.exp %48 : vector<8x128xf32>
    %cst_29 = arith.constant 1.000000e+00 : f32
    %50 = vector.broadcast %cst_29 : f32 to vector<8x128xf32>
    %51 = arith.addf %50, %49 : vector<8x128xf32>
    %52 = arith.divf %50, %51 : vector<8x128xf32>
    %53 = vector.extract_strided_slice %45 {offsets = [0, 128], sizes = [8, 128], strides = [1, 1]} : vector<8x512xf32> to vector<8x128xf32>
    %54 = arith.negf %53 : vector<8x128xf32>
    %55 = math.exp %54 : vector<8x128xf32>
    %cst_30 = arith.constant 1.000000e+00 : f32
    %56 = vector.broadcast %cst_30 : f32 to vector<8x128xf32>
    %57 = arith.addf %56, %55 : vector<8x128xf32>
    %58 = arith.divf %56, %57 : vector<8x128xf32>
    %59 = vector.extract_strided_slice %45 {offsets = [0, 256], sizes = [8, 128], strides = [1, 1]} : vector<8x512xf32> to vector<8x128xf32>
    %60 = math.tanh %59 : vector<8x128xf32>
    %61 = vector.extract_strided_slice %45 {offsets = [0, 384], sizes = [8, 128], strides = [1, 1]} : vector<8x512xf32> to vector<8x128xf32>
    %62 = arith.negf %61 : vector<8x128xf32>
    %63 = math.exp %62 : vector<8x128xf32>
    %cst_31 = arith.constant 1.000000e+00 : f32
    %64 = vector.broadcast %cst_31 : f32 to vector<8x128xf32>
    %65 = arith.addf %64, %63 : vector<8x128xf32>
    %66 = arith.divf %64, %65 : vector<8x128xf32>
    %67 = arith.mulf %58, %46 : vector<8x128xf32>
    %68 = arith.mulf %52, %60 : vector<8x128xf32>
    %69 = arith.addf %67, %68 : vector<8x128xf32>
    %70 = math.tanh %69 : vector<8x128xf32>
    %71 = arith.mulf %66, %70 : vector<8x128xf32>
    %c0_32 = arith.constant 0 : index
    %c0_33 = arith.constant 0 : index
    %72 = vector.load %arg9[%c0_32, %c0_33] : memref<8x128xf32, #tpu.memory_space<vmem>>, vector<8x128xf32>
    tpu.vector_store %arg9[%c0_32, %c0_33], %69 {strides = array<i32>} : memref<8x128xf32, #tpu.memory_space<vmem>>, vector<8x128xf32>,
    %c0_34 = arith.constant 0 : index
    %c128 = arith.constant 128 : index
    %73 = vector.load %arg7[%c0_34, %c128] : memref<8x256xf32, #tpu.memory_space<vmem>>, vector<8x128xf32>
    tpu.vector_store %arg7[%c0_34, %c128], %71 {strides = array<i32>} : memref<8x256xf32, #tpu.memory_space<vmem>>, vector<8x128xf32>,
    %c0_35 = arith.constant 0 : index
    %c0_36 = arith.constant 0 : index
    %c0_37 = arith.constant 0 : index
    %c0_38 = arith.constant 0 : index
    %74 = vector.load %arg6[%c0_35, %c0_36, %c0_37, %c0_38] : memref<1x1x8x128xf32, #tpu.memory_space<vmem>>, vector<1x1x8x128xf32>
    %75 = vector.shape_cast %74 : vector<1x1x8x128xf32> to vector<8x128xf32>
    %76 = vector.shape_cast %71 : vector<8x128xf32> to vector<1x1x8x128xf32>
    tpu.vector_store %arg6[%c0_35, %c0_36, %c0_37, %c0_38], %76 {strides = array<i32>} : memref<1x1x8x128xf32, #tpu.memory_space<vmem>>, vector<1x1x8x128xf32>,
    return
  }
  func.func @transform_0(%arg0: i32, %arg1: i32) -> (i32, i32, i32, i32) {
    %c2_i32 = arith.constant 2 : i32
    %0 = arith.muli %c2_i32, %arg1 : i32
    %c15_i32 = arith.constant 15 : i32
    %1 = arith.subi %c15_i32, %0 : i32
    %2 = arith.muli %arg0, %1 : i32
    %3 = arith.addi %arg1, %2 : i32
    %c0_i32 = arith.constant 0 : i32
    %c0_i32_0 = arith.constant 0 : i32
    %c0_i32_1 = arith.constant 0 : i32
    return %arg0, %3, %c0_i32, %c0_i32_0 : i32, i32, i32, i32
  }
  func.func @transform_1(%arg0: i32, %arg1: i32) -> (i32, i32, i32) {
    %c0_i32 = arith.constant 0 : i32
    %c0_i32_0 = arith.constant 0 : i32
    %c0_i32_1 = arith.constant 0 : i32
    return %arg0, %c0_i32, %c0_i32_0 : i32, i32, i32
  }
  func.func @transform_2(%arg0: i32, %arg1: i32) -> (i32, i32, i32) {
    %c0_i32 = arith.constant 0 : i32
    %c0_i32_0 = arith.constant 0 : i32
    %c0_i32_1 = arith.constant 0 : i32
    return %arg0, %c0_i32, %c0_i32_0 : i32, i32, i32
  }
  func.func @transform_3(%arg0: i32, %arg1: i32) -> (i32, i32, i32) {
    %c0_i32 = arith.constant 0 : i32
    %c0_i32_0 = arith.constant 0 : i32
    %c0_i32_1 = arith.constant 0 : i32
    return %arg0, %c0_i32, %c0_i32_0 : i32, i32, i32
  }
  func.func @transform_4(%arg0: i32, %arg1: i32) -> (i32, i32, i32, i32) {
    %c2_i32 = arith.constant 2 : i32
    %0 = arith.muli %c2_i32, %arg1 : i32
    %c15_i32 = arith.constant 15 : i32
    %1 = arith.subi %c15_i32, %0 : i32
    %2 = arith.muli %arg0, %1 : i32
    %3 = arith.addi %arg1, %2 : i32
    %c0_i32 = arith.constant 0 : i32
    %c0_i32_0 = arith.constant 0 : i32
    %c0_i32_1 = arith.constant 0 : i32
    return %arg0, %3, %c0_i32, %c0_i32_0 : i32, i32, i32, i32
  }
}

module attributes {stable_mosaic.version = 11 : i64} {
  func.func @decoder_kernel(%arg0: i32, %arg1: memref<2x8x8x128xf32, #tpu.memory_space<vmem>>, %arg2: memref<1x8xi32, #tpu.memory_space<vmem>>, %arg3: memref<256x128xf32, #tpu.memory_space<vmem>>, %arg4: memref<1x128xf32, #tpu.memory_space<vmem>>, %arg5: memref<1x128xf32, #tpu.memory_space<vmem>>, %arg6: memref<1x1xf32, #tpu.memory_space<vmem>>, %arg7: memref<256x128xf32, #tpu.memory_space<vmem>>, %arg8: memref<1x128xf32, #tpu.memory_space<vmem>>, %arg9: memref<128x10xf32, #tpu.memory_space<vmem>>, %arg10: memref<1x10xf32, #tpu.memory_space<vmem>>, %arg11: memref<1x128xf32, #tpu.memory_space<vmem>>, %arg12: memref<1x1xf32, #tpu.memory_space<vmem>>, %arg13: memref<8x10xf32, #tpu.memory_space<vmem>>, %arg14: memref<8x1xf32, #tpu.memory_space<vmem>>, %arg15: memref<8x16xf32, #tpu.memory_space<vmem>>, %arg16: memref<1x8xf32, #tpu.memory_space<vmem>>, %arg17: memref<1x8xf32, #tpu.memory_space<vmem>>, %arg18: memref<8x128xf32, #tpu.memory_space<vmem>>, %arg19: memref<8x128xf32, #tpu.memory_space<vmem>>, %arg20: memref<16x8xf32, #tpu.memory_space<vmem>>) attributes {dimension_semantics = [#tpu.dimension_semantics<arbitrary>], iteration_bounds = array<i64: 2>, scalar_prefetch = 0 : i64, scratch_operands = 5 : i64, tpu.core_type = #tpu.core_type<tc>, window_params = [{transform_indices = @transform_0, window_bounds = array<i64: 2, 8, 8, 128>}, {pipeline_mode = #tpu.pipeline_mode<synchronous>, transform_indices = @transform_1, window_bounds = array<i64: 1, 8>}, {pipeline_mode = #tpu.pipeline_mode<synchronous>, transform_indices = @transform_2, window_bounds = array<i64: 256, 128>}, {pipeline_mode = #tpu.pipeline_mode<synchronous>, transform_indices = @transform_3, window_bounds = array<i64: 1, 128>}, {pipeline_mode = #tpu.pipeline_mode<synchronous>, transform_indices = @transform_4, window_bounds = array<i64: 1, 128>}, {pipeline_mode = #tpu.pipeline_mode<synchronous>, transform_indices = @transform_5, window_bounds = array<i64: 1, 1>}, {pipeline_mode = #tpu.pipeline_mode<synchronous>, transform_indices = @transform_6, window_bounds = array<i64: 256, 128>}, {pipeline_mode = #tpu.pipeline_mode<synchronous>, transform_indices = @transform_7, window_bounds = array<i64: 1, 128>}, {pipeline_mode = #tpu.pipeline_mode<synchronous>, transform_indices = @transform_8, window_bounds = array<i64: 128, 10>}, {pipeline_mode = #tpu.pipeline_mode<synchronous>, transform_indices = @transform_9, window_bounds = array<i64: 1, 10>}, {pipeline_mode = #tpu.pipeline_mode<synchronous>, transform_indices = @transform_10, window_bounds = array<i64: 1, 128>}, {pipeline_mode = #tpu.pipeline_mode<synchronous>, transform_indices = @transform_11, window_bounds = array<i64: 1, 1>}, {pipeline_mode = #tpu.pipeline_mode<synchronous>, transform_indices = @transform_12, window_bounds = array<i64: 8, 10>}, {pipeline_mode = #tpu.pipeline_mode<synchronous>, transform_indices = @transform_13, window_bounds = array<i64: 8, 1>}, {pipeline_mode = #tpu.pipeline_mode<synchronous>, transform_indices = @transform_14, window_bounds = array<i64: 8, 16>}]} {
    %c0_i32 = arith.constant 0 : i32
    %0 = arith.cmpi eq, %arg0, %c0_i32 : i32
    %1 = arith.extui %0 : i1 to i32
    %c0_i32_0 = arith.constant 0 : i32
    %2 = arith.cmpi ne, %1, %c0_i32_0 : i32
    scf.if %2 {
      %cst_42 = arith.constant -1.000000e+30 : f32
      %77 = vector.broadcast %cst_42 : f32 to vector<1x8xf32>
      %c0_43 = arith.constant 0 : index
      %c0_44 = arith.constant 0 : index
      %78 = vector.load %arg16[%c0_43, %c0_44] : memref<1x8xf32, #tpu.memory_space<vmem>>, vector<1x8xf32>
      tpu.vector_store %arg16[%c0_43, %c0_44], %77 {strides = array<i32>} : memref<1x8xf32, #tpu.memory_space<vmem>>, vector<1x8xf32>,
      %cst_45 = arith.constant 0.000000e+00 : f32
      %79 = vector.broadcast %cst_45 : f32 to vector<1x8xf32>
      %c0_46 = arith.constant 0 : index
      %c0_47 = arith.constant 0 : index
      %80 = vector.load %arg17[%c0_46, %c0_47] : memref<1x8xf32, #tpu.memory_space<vmem>>, vector<1x8xf32>
      tpu.vector_store %arg17[%c0_46, %c0_47], %79 {strides = array<i32>} : memref<1x8xf32, #tpu.memory_space<vmem>>, vector<1x8xf32>,
      %cst_48 = arith.constant 0.000000e+00 : f32
      %81 = vector.broadcast %cst_48 : f32 to vector<8x128xf32>
      %c0_49 = arith.constant 0 : index
      %c0_50 = arith.constant 0 : index
      %82 = vector.load %arg18[%c0_49, %c0_50] : memref<8x128xf32, #tpu.memory_space<vmem>>, vector<8x128xf32>
      tpu.vector_store %arg18[%c0_49, %c0_50], %81 {strides = array<i32>} : memref<8x128xf32, #tpu.memory_space<vmem>>, vector<8x128xf32>,
      %cst_51 = arith.constant 0.000000e+00 : f32
      %83 = vector.broadcast %cst_51 : f32 to vector<8x128xf32>
      %c0_52 = arith.constant 0 : index
      %c0_53 = arith.constant 0 : index
      %84 = vector.load %arg19[%c0_52, %c0_53] : memref<8x128xf32, #tpu.memory_space<vmem>>, vector<8x128xf32>
      tpu.vector_store %arg19[%c0_52, %c0_53], %83 {strides = array<i32>} : memref<8x128xf32, #tpu.memory_space<vmem>>, vector<8x128xf32>,
    } else {
    }
    %c0 = arith.constant 0 : index
    %c0_1 = arith.constant 0 : index
    %c0_2 = arith.constant 0 : index
    %c0_3 = arith.constant 0 : index
    %3 = vector.load %arg1[%c0, %c0_1, %c0_2, %c0_3] : memref<2x8x8x128xf32, #tpu.memory_space<vmem>>, vector<1x8x8x128xf32>
    %4 = vector.shape_cast %3 : vector<1x8x8x128xf32> to vector<8x8x128xf32>
    %c1 = arith.constant 1 : index
    %c0_4 = arith.constant 0 : index
    %c0_5 = arith.constant 0 : index
    %c0_6 = arith.constant 0 : index
    %5 = vector.load %arg1[%c1, %c0_4, %c0_5, %c0_6] : memref<2x8x8x128xf32, #tpu.memory_space<vmem>>, vector<1x8x8x128xf32>
    %6 = vector.shape_cast %5 : vector<1x8x8x128xf32> to vector<8x8x128xf32>
    %7 = vector.shape_cast %4 : vector<8x8x128xf32> to vector<64x128xf32>
    %8 = vector.shape_cast %6 : vector<8x8x128xf32> to vector<64x128xf32>
    %9 = tpu.concatenate %7, %8 in 1 : vector<64x128xf32>, vector<64x128xf32> -> vector<64x256xf32>
    %c0_7 = arith.constant 0 : index
    %c0_8 = arith.constant 0 : index
    %10 = vector.load %arg3[%c0_7, %c0_8] : memref<256x128xf32, #tpu.memory_space<vmem>>, vector<256x128xf32>
    %cst = arith.constant dense<0.000000e+00> : vector<64x128xf32>
    %11 = tpu.matmul %9, %10, %cst {dimension_numbers = #tpu.dot_dimension_numbers<[1], [0], [0], [1], [0, 0, 1, 1], [], []>} : vector<64x256xf32>, vector<256x128xf32>, vector<64x128xf32> -> vector<64x128xf32>
    %c0_9 = arith.constant 0 : index
    %c0_10 = arith.constant 0 : index
    %12 = vector.load %arg4[%c0_9, %c0_10] : memref<1x128xf32, #tpu.memory_space<vmem>>, vector<1x128xf32>
    %13 = vector.broadcast %12 : vector<1x128xf32> to vector<64x128xf32>
    %14 = arith.addf %11, %13 : vector<64x128xf32>
    %15 = math.tanh %14 : vector<64x128xf32>
    %16 = vector.shape_cast %15 : vector<64x128xf32> to vector<8x8x128xf32>
    %c0_11 = arith.constant 0 : index
    %c0_12 = arith.constant 0 : index
    %17 = vector.load %arg5[%c0_11, %c0_12] : memref<1x128xf32, #tpu.memory_space<vmem>>, vector<1x128xf32>
    %18 = vector.shape_cast %17 : vector<1x128xf32> to vector<1x1x128xf32>
    %19 = vector.broadcast %18 : vector<1x1x128xf32> to vector<8x8x128xf32>
    %20 = arith.mulf %16, %19 : vector<8x8x128xf32>
    %cst_13 = arith.constant dense<0.000000e+00> : vector<8x8xf32>
    %21 = vector.multi_reduction <add>, %20, %cst_13 [2] : vector<8x8x128xf32> to vector<8x8xf32>
    %c0_14 = arith.constant 0 : index
    %c0_15 = arith.constant 0 : index
    %22 = vector.load %arg6[%c0_14, %c0_15] : memref<1x1xf32, #tpu.memory_space<vmem>>, vector<1x1xf32>
    %23 = vector.broadcast %22 : vector<1x1xf32> to vector<8x8xf32>
    %24 = arith.addf %21, %23 : vector<8x8xf32>
    %c8_i32 = arith.constant 8 : i32
    %25 = arith.muli %arg0, %c8_i32 : i32
    %26 = tpu.assume_multiple %25, 8 : i32
    %27 = tpu.iota {dimensions = array<i32: 0>} : vector<8x8xi32>
    %28 = vector.broadcast %26 : i32 to vector<8x8xi32>
    %29 = arith.addi %28, %27 : vector<8x8xi32>
    %c0_16 = arith.constant 0 : index
    %c0_17 = arith.constant 0 : index
    %30 = vector.load %arg2[%c0_16, %c0_17] : memref<1x8xi32, #tpu.memory_space<vmem>>, vector<1x8xi32>
    %31 = vector.broadcast %30 : vector<1x8xi32> to vector<8x8xi32>
    %32 = arith.cmpi slt, %29, %31 : vector<8x8xi32>
    %cst_18 = arith.constant -1.000000e+30 : f32
    %33 = vector.broadcast %cst_18 : f32 to vector<8x8xf32>
    %34 = arith.select %32, %24, %33 : vector<8x8xi1>, vector<8x8xf32>
    %35 = arith.index_cast %26 : i32 to index
    %c0_19 = arith.constant 0 : index
    %36 = vector.load %arg20[%35, %c0_19] : memref<16x8xf32, #tpu.memory_space<vmem>>, vector<8x8xf32>
    tpu.vector_store %arg20[%35, %c0_19], %34 {strides = array<i32>} : memref<16x8xf32, #tpu.memory_space<vmem>>, vector<8x8xf32>,
    %c0_20 = arith.constant 0 : index
    %c0_21 = arith.constant 0 : index
    %37 = vector.load %arg16[%c0_20, %c0_21] : memref<1x8xf32, #tpu.memory_space<vmem>>, vector<1x8xf32>
    %cst_22 = arith.constant dense<0xFF800000> : vector<8xf32>
    %38 = vector.multi_reduction <maximumf>, %34, %cst_22 [0] : vector<8x8xf32> to vector<8xf32>
    %39 = vector.shape_cast %38 : vector<8xf32> to vector<1x8xf32>
    %40 = arith.maximumf %37, %39 : vector<1x8xf32>
    %41 = arith.subf %37, %40 : vector<1x8xf32>
    %42 = math.exp %41 : vector<1x8xf32>
    %43 = vector.broadcast %40 : vector<1x8xf32> to vector<8x8xf32>
    %44 = arith.subf %34, %43 : vector<8x8xf32>
    %45 = math.exp %44 : vector<8x8xf32>
    %cst_23 = arith.constant 0.000000e+00 : f32
    %46 = vector.broadcast %cst_23 : f32 to vector<8x8xf32>
    %47 = arith.select %32, %45, %46 : vector<8x8xi1>, vector<8x8xf32>
    %c0_24 = arith.constant 0 : index
    %c0_25 = arith.constant 0 : index
    %48 = vector.load %arg17[%c0_24, %c0_25] : memref<1x8xf32, #tpu.memory_space<vmem>>, vector<1x8xf32>
    %49 = arith.mulf %42, %48 : vector<1x8xf32>
    %cst_26 = arith.constant dense<0.000000e+00> : vector<8xf32>
    %50 = vector.multi_reduction <add>, %47, %cst_26 [0] : vector<8x8xf32> to vector<8xf32>
    %51 = vector.shape_cast %50 : vector<8xf32> to vector<1x8xf32>
    %52 = arith.addf %49, %51 : vector<1x8xf32>
    %c0_27 = arith.constant 0 : index
    %c0_28 = arith.constant 0 : index
    %53 = vector.load %arg17[%c0_27, %c0_28] : memref<1x8xf32, #tpu.memory_space<vmem>>, vector<1x8xf32>
    tpu.vector_store %arg17[%c0_27, %c0_28], %52 {strides = array<i32>} : memref<1x8xf32, #tpu.memory_space<vmem>>, vector<1x8xf32>,
    %54 = tpu.transpose %42, [1, 0] : vector<1x8xf32> -> vector<8x1xf32>
    %c0_29 = arith.constant 0 : index
    %c0_30 = arith.constant 0 : index
    %55 = vector.load %arg18[%c0_29, %c0_30] : memref<8x128xf32, #tpu.memory_space<vmem>>, vector<8x128xf32>
    %56 = vector.broadcast %54 : vector<8x1xf32> to vector<8x128xf32>
    %57 = arith.mulf %55, %56 : vector<8x128xf32>
    %58 = vector.shape_cast %47 : vector<8x8xf32> to vector<8x8x1xf32>
    %59 = vector.broadcast %58 : vector<8x8x1xf32> to vector<8x8x128xf32>
    %60 = arith.mulf %59, %4 : vector<8x8x128xf32>
    %cst_31 = arith.constant dense<0.000000e+00> : vector<8x128xf32>
    %61 = vector.multi_reduction <add>, %60, %cst_31 [0] : vector<8x8x128xf32> to vector<8x128xf32>
    %62 = arith.addf %57, %61 : vector<8x128xf32>
    %c0_32 = arith.constant 0 : index
    %c0_33 = arith.constant 0 : index
    %63 = vector.load %arg18[%c0_32, %c0_33] : memref<8x128xf32, #tpu.memory_space<vmem>>, vector<8x128xf32>
    tpu.vector_store %arg18[%c0_32, %c0_33], %62 {strides = array<i32>} : memref<8x128xf32, #tpu.memory_space<vmem>>, vector<8x128xf32>,
    %c0_34 = arith.constant 0 : index
    %c0_35 = arith.constant 0 : index
    %64 = vector.load %arg19[%c0_34, %c0_35] : memref<8x128xf32, #tpu.memory_space<vmem>>, vector<8x128xf32>
    %65 = vector.broadcast %54 : vector<8x1xf32> to vector<8x128xf32>
    %66 = arith.mulf %64, %65 : vector<8x128xf32>
    %67 = vector.shape_cast %47 : vector<8x8xf32> to vector<8x8x1xf32>
    %68 = vector.broadcast %67 : vector<8x8x1xf32> to vector<8x8x128xf32>
    %69 = arith.mulf %68, %6 : vector<8x8x128xf32>
    %cst_36 = arith.constant dense<0.000000e+00> : vector<8x128xf32>
    %70 = vector.multi_reduction <add>, %69, %cst_36 [0] : vector<8x8x128xf32> to vector<8x128xf32>
    %71 = arith.addf %66, %70 : vector<8x128xf32>
    %c0_37 = arith.constant 0 : index
    %c0_38 = arith.constant 0 : index
    %72 = vector.load %arg19[%c0_37, %c0_38] : memref<8x128xf32, #tpu.memory_space<vmem>>, vector<8x128xf32>
    tpu.vector_store %arg19[%c0_37, %c0_38], %71 {strides = array<i32>} : memref<8x128xf32, #tpu.memory_space<vmem>>, vector<8x128xf32>,
    %c0_39 = arith.constant 0 : index
    %c0_40 = arith.constant 0 : index
    %73 = vector.load %arg16[%c0_39, %c0_40] : memref<1x8xf32, #tpu.memory_space<vmem>>, vector<1x8xf32>
    tpu.vector_store %arg16[%c0_39, %c0_40], %40 {strides = array<i32>} : memref<1x8xf32, #tpu.memory_space<vmem>>, vector<1x8xf32>,
    %c1_i32 = arith.constant 1 : i32
    %74 = arith.cmpi eq, %arg0, %c1_i32 : i32
    %75 = arith.extui %74 : i1 to i32
    %c0_i32_41 = arith.constant 0 : i32
    %76 = arith.cmpi ne, %75, %c0_i32_41 : i32
    scf.if %76 {
      %c0_42 = arith.constant 0 : index
      %c0_43 = arith.constant 0 : index
      %77 = vector.load %arg17[%c0_42, %c0_43] : memref<1x8xf32, #tpu.memory_space<vmem>>, vector<1x8xf32>
      %cst_44 = arith.constant 1.000000e+00 : f32
      %78 = vector.broadcast %cst_44 : f32 to vector<1x8xf32>
      %79 = arith.divf %78, %77 : vector<1x8xf32>
      %80 = tpu.transpose %79, [1, 0] : vector<1x8xf32> -> vector<8x1xf32>
      %c0_45 = arith.constant 0 : index
      %c0_46 = arith.constant 0 : index
      %81 = vector.load %arg18[%c0_45, %c0_46] : memref<8x128xf32, #tpu.memory_space<vmem>>, vector<8x128xf32>
      %c0_47 = arith.constant 0 : index
      %c0_48 = arith.constant 0 : index
      %82 = vector.load %arg19[%c0_47, %c0_48] : memref<8x128xf32, #tpu.memory_space<vmem>>, vector<8x128xf32>
      %83 = tpu.concatenate %81, %82 in 1 : vector<8x128xf32>, vector<8x128xf32> -> vector<8x256xf32>
      %84 = vector.broadcast %80 : vector<8x1xf32> to vector<8x256xf32>
      %85 = arith.mulf %83, %84 : vector<8x256xf32>
      %c0_49 = arith.constant 0 : index
      %c0_50 = arith.constant 0 : index
      %86 = vector.load %arg7[%c0_49, %c0_50] : memref<256x128xf32, #tpu.memory_space<vmem>>, vector<256x128xf32>
      %cst_51 = arith.constant dense<0.000000e+00> : vector<8x128xf32>
      %87 = tpu.matmul %85, %86, %cst_51 {dimension_numbers = #tpu.dot_dimension_numbers<[1], [0], [0], [1], [0, 0, 1, 1], [], []>} : vector<8x256xf32>, vector<256x128xf32>, vector<8x128xf32> -> vector<8x128xf32>
      %c0_52 = arith.constant 0 : index
      %c0_53 = arith.constant 0 : index
      %88 = vector.load %arg8[%c0_52, %c0_53] : memref<1x128xf32, #tpu.memory_space<vmem>>, vector<1x128xf32>
      %89 = vector.broadcast %88 : vector<1x128xf32> to vector<8x128xf32>
      %90 = arith.addf %87, %89 : vector<8x128xf32>
      %cst_54 = arith.constant 0.000000e+00 : f32
      %91 = vector.broadcast %cst_54 : f32 to vector<8x128xf32>
      %92 = arith.maximumf %90, %91 : vector<8x128xf32>
      %c0_55 = arith.constant 0 : index
      %c0_56 = arith.constant 0 : index
      %93 = vector.load %arg9[%c0_55, %c0_56] : memref<128x10xf32, #tpu.memory_space<vmem>>, vector<128x10xf32>
      %cst_57 = arith.constant dense<0.000000e+00> : vector<8x10xf32>
      %94 = tpu.matmul %92, %93, %cst_57 {dimension_numbers = #tpu.dot_dimension_numbers<[1], [0], [0], [1], [0, 0, 1, 1], [], []>} : vector<8x128xf32>, vector<128x10xf32>, vector<8x10xf32> -> vector<8x10xf32>
      %c0_58 = arith.constant 0 : index
      %c0_59 = arith.constant 0 : index
      %95 = vector.load %arg10[%c0_58, %c0_59] : memref<1x10xf32, #tpu.memory_space<vmem>>, vector<1x10xf32>
      %96 = vector.broadcast %95 : vector<1x10xf32> to vector<8x10xf32>
      %97 = arith.addf %94, %96 : vector<8x10xf32>
      %c0_60 = arith.constant 0 : index
      %c0_61 = arith.constant 0 : index
      %98 = vector.load %arg13[%c0_60, %c0_61] : memref<8x10xf32, #tpu.memory_space<vmem>>, vector<8x10xf32>
      tpu.vector_store %arg13[%c0_60, %c0_61], %97 {strides = array<i32>} : memref<8x10xf32, #tpu.memory_space<vmem>>, vector<8x10xf32>,
      %c0_62 = arith.constant 0 : index
      %c0_63 = arith.constant 0 : index
      %99 = vector.load %arg11[%c0_62, %c0_63] : memref<1x128xf32, #tpu.memory_space<vmem>>, vector<1x128xf32>
      %100 = vector.broadcast %99 : vector<1x128xf32> to vector<8x128xf32>
      %101 = arith.mulf %92, %100 : vector<8x128xf32>
      %cst_64 = arith.constant dense<0.000000e+00> : vector<8xf32>
      %102 = vector.multi_reduction <add>, %101, %cst_64 [1] : vector<8x128xf32> to vector<8xf32>
      %103 = vector.shape_cast %102 : vector<8xf32> to vector<8x1xf32>
      %c0_65 = arith.constant 0 : index
      %c0_66 = arith.constant 0 : index
      %104 = vector.load %arg12[%c0_65, %c0_66] : memref<1x1xf32, #tpu.memory_space<vmem>>, vector<1x1xf32>
      %105 = vector.broadcast %104 : vector<1x1xf32> to vector<8x1xf32>
      %106 = arith.addf %103, %105 : vector<8x1xf32>
      %c0_67 = arith.constant 0 : index
      %c0_68 = arith.constant 0 : index
      %107 = vector.load %arg14[%c0_67, %c0_68] : memref<8x1xf32, #tpu.memory_space<vmem>>, vector<8x1xf32>
      tpu.vector_store %arg14[%c0_67, %c0_68], %106 {strides = array<i32>} : memref<8x1xf32, #tpu.memory_space<vmem>>, vector<8x1xf32>,
      %108 = tpu.iota {dimensions = array<i32: 0>} : vector<16x8xi32>
      %c0_69 = arith.constant 0 : index
      %c0_70 = arith.constant 0 : index
      %109 = vector.load %arg2[%c0_69, %c0_70] : memref<1x8xi32, #tpu.memory_space<vmem>>, vector<1x8xi32>
      %110 = vector.broadcast %109 : vector<1x8xi32> to vector<16x8xi32>
      %111 = arith.cmpi slt, %108, %110 : vector<16x8xi32>
      %c0_71 = arith.constant 0 : index
      %c0_72 = arith.constant 0 : index
      %112 = vector.load %arg20[%c0_71, %c0_72] : memref<16x8xf32, #tpu.memory_space<vmem>>, vector<16x8xf32>
      %c0_73 = arith.constant 0 : index
      %c0_74 = arith.constant 0 : index
      %113 = vector.load %arg16[%c0_73, %c0_74] : memref<1x8xf32, #tpu.memory_space<vmem>>, vector<1x8xf32>
      %114 = vector.broadcast %113 : vector<1x8xf32> to vector<16x8xf32>
      %115 = arith.subf %112, %114 : vector<16x8xf32>
      %116 = math.exp %115 : vector<16x8xf32>
      %cst_75 = arith.constant 0.000000e+00 : f32
      %117 = vector.broadcast %cst_75 : f32 to vector<16x8xf32>
      %118 = arith.select %111, %116, %117 : vector<16x8xi1>, vector<16x8xf32>
      %119 = vector.broadcast %79 : vector<1x8xf32> to vector<16x8xf32>
      %120 = arith.mulf %118, %119 : vector<16x8xf32>
      %121 = tpu.transpose %120, [1, 0] : vector<16x8xf32> -> vector<8x16xf32>
      %c0_76 = arith.constant 0 : index
      %c0_77 = arith.constant 0 : index
      %122 = vector.load %arg15[%c0_76, %c0_77] : memref<8x16xf32, #tpu.memory_space<vmem>>, vector<8x16xf32>
      tpu.vector_store %arg15[%c0_76, %c0_77], %121 {strides = array<i32>} : memref<8x16xf32, #tpu.memory_space<vmem>>, vector<8x16xf32>,
    } else {
    }
    return
  }
  func.func @transform_0(%arg0: i32) -> (i32, i32, i32, i32) {
    %c0_i32 = arith.constant 0 : i32
    %c0_i32_0 = arith.constant 0 : i32
    %c0_i32_1 = arith.constant 0 : i32
    %c0_i32_2 = arith.constant 0 : i32
    return %c0_i32, %arg0, %c0_i32_0, %c0_i32_1 : i32, i32, i32, i32
  }
  func.func @transform_1(%arg0: i32) -> (i32, i32) {
    %c0_i32 = arith.constant 0 : i32
    %c0_i32_0 = arith.constant 0 : i32
    %c0_i32_1 = arith.constant 0 : i32
    return %c0_i32, %c0_i32_0 : i32, i32
  }
  func.func @transform_2(%arg0: i32) -> (i32, i32) {
    %c0_i32 = arith.constant 0 : i32
    %c0_i32_0 = arith.constant 0 : i32
    %c0_i32_1 = arith.constant 0 : i32
    return %c0_i32, %c0_i32_0 : i32, i32
  }
  func.func @transform_3(%arg0: i32) -> (i32, i32) {
    %c0_i32 = arith.constant 0 : i32
    %c0_i32_0 = arith.constant 0 : i32
    %c0_i32_1 = arith.constant 0 : i32
    return %c0_i32, %c0_i32_0 : i32, i32
  }
  func.func @transform_4(%arg0: i32) -> (i32, i32) {
    %c0_i32 = arith.constant 0 : i32
    %c0_i32_0 = arith.constant 0 : i32
    %c0_i32_1 = arith.constant 0 : i32
    return %c0_i32, %c0_i32_0 : i32, i32
  }
  func.func @transform_5(%arg0: i32) -> (i32, i32) {
    %c0_i32 = arith.constant 0 : i32
    %c0_i32_0 = arith.constant 0 : i32
    %c0_i32_1 = arith.constant 0 : i32
    return %c0_i32, %c0_i32_0 : i32, i32
  }
  func.func @transform_6(%arg0: i32) -> (i32, i32) {
    %c0_i32 = arith.constant 0 : i32
    %c0_i32_0 = arith.constant 0 : i32
    %c0_i32_1 = arith.constant 0 : i32
    return %c0_i32, %c0_i32_0 : i32, i32
  }
  func.func @transform_7(%arg0: i32) -> (i32, i32) {
    %c0_i32 = arith.constant 0 : i32
    %c0_i32_0 = arith.constant 0 : i32
    %c0_i32_1 = arith.constant 0 : i32
    return %c0_i32, %c0_i32_0 : i32, i32
  }
  func.func @transform_8(%arg0: i32) -> (i32, i32) {
    %c0_i32 = arith.constant 0 : i32
    %c0_i32_0 = arith.constant 0 : i32
    %c0_i32_1 = arith.constant 0 : i32
    return %c0_i32, %c0_i32_0 : i32, i32
  }
  func.func @transform_9(%arg0: i32) -> (i32, i32) {
    %c0_i32 = arith.constant 0 : i32
    %c0_i32_0 = arith.constant 0 : i32
    %c0_i32_1 = arith.constant 0 : i32
    return %c0_i32, %c0_i32_0 : i32, i32
  }
  func.func @transform_10(%arg0: i32) -> (i32, i32) {
    %c0_i32 = arith.constant 0 : i32
    %c0_i32_0 = arith.constant 0 : i32
    %c0_i32_1 = arith.constant 0 : i32
    return %c0_i32, %c0_i32_0 : i32, i32
  }
  func.func @transform_11(%arg0: i32) -> (i32, i32) {
    %c0_i32 = arith.constant 0 : i32
    %c0_i32_0 = arith.constant 0 : i32
    %c0_i32_1 = arith.constant 0 : i32
    return %c0_i32, %c0_i32_0 : i32, i32
  }
  func.func @transform_12(%arg0: i32) -> (i32, i32) {
    %c0_i32 = arith.constant 0 : i32
    %c0_i32_0 = arith.constant 0 : i32
    %c0_i32_1 = arith.constant 0 : i32
    return %c0_i32, %c0_i32_0 : i32, i32
  }
  func.func @transform_13(%arg0: i32) -> (i32, i32) {
    %c0_i32 = arith.constant 0 : i32
    %c0_i32_0 = arith.constant 0 : i32
    %c0_i32_1 = arith.constant 0 : i32
    return %c0_i32, %c0_i32_0 : i32, i32
  }
  func.func @transform_14(%arg0: i32) -> (i32, i32) {
    %c0_i32 = arith.constant 0 : i32
    %c0_i32_0 = arith.constant 0 : i32
    %c0_i32_1 = arith.constant 0 : i32
    return %c0_i32, %c0_i32_0 : i32, i32
  }
}

</mosaic_0001>

<bundles_post_ra>
// kernel: model_forward.3
= control target key start
LH: loop header
LB: loop body
LE: loop exit
PB: predicated region body
PF: predicated region fallthrough
CT: control target
= control target key end

     0   :  { %s3108_s0 = inlined_call_operand.hbm [shape: f32[2,16,8,128], index: 0, kind: input, shape index: {}]   ;;  %s3109_s1 = inlined_call_operand.hbm [shape: s32[1,8], index: 1, kind: input, shape index: {}]   ;;  %s3110_s2 = inlined_call_operand.hbm [shape: f32[256,128], index: 2, kind: input, shape index: {}]   ;;  %s3111_s3 = inlined_call_operand.hbm [shape: f32[1,128], index: 3, kind: input, shape index: {}]   ;;  %s3112_s4 = inlined_call_operand.hbm [shape: f32[1,128], index: 4, kind: input, shape index: {}]   ;;  %s3113_s5 = inlined_call_operand.<no memory space> [shape: f32[1,1], index: 5, kind: input, shape index: {}]   ;;  %s3114_s6 = inlined_call_operand.hbm [shape: f32[256,128], index: 6, kind: input, shape index: {}]   ;;  %s3115_s7 = inlined_call_operand.hbm [shape: f32[1,128], index: 7, kind: input, shape index: {}]   ;;  %s3116_s8 = inlined_call_operand.hbm [shape: f32[128,10], index: 8, kind: input, shape index: {}]   ;;  %s3117_s9 = inlined_call_operand.hbm [shape: f32[1,10], index: 9, kind: input, shape index: {}]   ;;  %s3118_s10 = inlined_call_operand.hbm [shape: f32[1,128], index: 10, kind: input, shape index: {}]   ;;  %s3119_s12 = inlined_call_operand.hbm [shape: f32[8,10], index: 12, kind: output, shape index: {0}]   ;;  %s3120_s13 = inlined_call_operand.hbm [shape: f32[8,1], index: 13, kind: output, shape index: {1}]   ;;  %s3121_s14 = inlined_call_operand.hbm [shape: f32[8,16], index: 14, kind: output, shape index: {2}]   ;;  %s3122_s11 = inlined_call_operand.<no memory space> [shape: f32[1,1], index: 11, kind: input, shape index: {}]  }
   0x1   :  { %3138 = sst [smem:[#allocation45_spill]] %s3109_s1  ;;  %v20_v0 = vstv %s3113_s5  ;;  %v22_v1 = vstv %s3122_s11 }
   0x2   :  { %3139 = sst [smem:[#allocation46_spill]] %s3111_s3  ;;  %21 = vst [vmem:[#allocation7] sm:$0x1] %v20_v0  ;;  %23 = vst [vmem:[#allocation8] sm:$0x1] %v22_v1 }
   0x3   :  { %3140 = sst [smem:[#allocation47_spill]] %s3119_s12 }
   0x4   :  { %3141 = sst [smem:[#allocation48_spill]] %s3120_s13 }
   0x5   :  { %3142 = sst [smem:[#allocation49_spill]] %s3121_s14 }
   0x6   :  { %24 = vsyncpa [#allocation10], 0 }
   0x7   :  { %26 = vsyncpa [#allocation10 + $0x1], 0 }
   0x8   :  { %27 = vsyncpa [#allocation13], 0 }
   0x9   :  { %28 = vsyncpa [#allocation16], 0 }
   0xa   :  { %29 = vsyncpa [#allocation19], 0 }
   0xb   :  { %30 = vsyncpa [#allocation22], 0 }
   0xc   :  { %31 = vsyncpa [#allocation25], 0 }
   0xd   :  { %32 = vsyncpa [#allocation11], 0 }
   0xe   :  { %33 = vsyncpa [#allocation28], 0  ;;  %s2614_s17 = smov 0   ;;  %s2616_s18 = smov 0  }
   0xf   :  { %s2618_s5 = smov 0   ;;  %s2620_s19 = smov 0  }
  0x10 LB: > { %s2633_s11 = sadd.s32 4294967295, %s2505_s19   ;;  %s2636_s20 = sadd.s32 1, %s2505_s19   ;;  %s2505_s19 = sphi %s2620_s19, %s3175_s19   ;;  %s2501_s5 = sphi %s2618_s5, %s3179_s5   ;;  %s2497_s18 = sphi %s2616_s18, %s3178_s18   ;;  %s2493_s17 = sphi %s2614_s17, %s3177_s17  }
  0x11   : > { %3143 = sst [smem:[#allocation41_spill]] %s2633_s11  ;;  %s43_s21 = ssub.s32 %s2505_s19, %s2636_s20 }
  0x12   : > { %3144 = sst [smem:[#allocation42_spill]] %s2636_s20  ;;  %s46_s22 = sadd.s32 1, %s2501_s5 }
  0x13   : > { %p44_p0 = scmp.eq.s32.totalorder %s43_s21, 0  ;;  %p53_p1 = scmp.ne.s32.totalorder %s2501_s5, %s2497_s18 }
  0x14   : > { %p54_p2 = scmp.eq.s32.totalorder %s2505_s19, 0  ;;  %p59_p3 = scmp.ne.s32.totalorder %s2497_s18, %s2493_s17 }
  0x15   : > { %s2646_s23 = scalar_select %p44_p0, %s2501_s5, %s46_s22  }
  0x16   : > { %p2648_p4 = por %p54_p2, %p53_p1  ;;  %p3126_p5 = scmp.eq.s32.totalorder %s2633_s11, 0 }
  0x17   : > { %3145 = sst [smem:[#allocation43_spill]] %s2646_s23  ;;  %p1613_p6 = scmp.ge.s32.totalorder %s2505_s19, 1 }
  0x18   : > { %s3146_s24 = scalar_select %p2648_p4, 1, 0 }
  0x19   : > { %p364_p7 = scmp.lt.s32.totalorder %s2505_s19, 3  ;;  %p2657_p8 = por %p3126_p5, %p59_p3 }
  0x1a   : > { %s2507_s27 = smov [#allocation12]   ;;  %s2508_s29 = smov [#allocation15]  }
  0x1b   : > { %s3147_s25 = scalar_select %p2657_p8, 1, 0 }
  0x1c   : > { %p2662_p10 = pnand %p1613_p6, %p364_p7  ;;  %s377_s28 = sshll.u32 %s2507_s27, 4  ;;  %s378_s28 = int_to_ptr.vmem [resolvable:$true] %s377_s28 }
  0x1d   : > { %3148 = sst [smem:[#allocation44_spill]] %s3147_s25  ;;  %s401_s30 = sshll.u32 %s2508_s29, 4  ;;  %s2674_s30 = int_to_ptr.vmem [resolvable:$true] %s401_s30 }
  0x1e   : > { %s3149_s26 = scalar_select %p2662_p10, 1, 0 }
  0x1f   : > { %p1974_p11 = pneg %p2662_p10  ;;  %s2509_s16 = smov [#allocation18]  }
  0x20   : > { %s2676_s17 = sshll.u32 %s2509_s16, 4  ;;  %s3151_s1 = sld [smem:[#allocation45_spill]]  ;;  %s426_s17 = int_to_ptr.vmem [resolvable:$true] %s2676_s17 }
  0x21   : > { %p2670_p12 = pnand %p1974_p11, %p3126_p5 }
  0x23   : > { %p2686_p0 = pneg %p2670_p12 }
  0x26   : > { %s2113_s27 = scalar_lea.hbm %s3151_s1, 16 }
  0x27   : > { %p2114_p13 = scmp.ne.s32.totalorder %s3151_s1, %s2113_s27  ;;  %p2120_p3 = scmp.lt.u32.totalorder %s2113_s27, %s3151_s1 }
  0x29   : > { %p2116_p1 = pnand %p2686_p0, %p2114_p13 }
  0x2b   : > { %p2117_p2 = pneg %p2116_p1 }
  0x2d   : > { %p2122_p6 = pnand %p2120_p3, %p2117_p2 }
  0x2f   : > { %2125 = shalt.err (!%p2122_p6)
}
  0x30   : > { %s2126_s21 = scalar_lea.vmem %s378_s28, 16  ;;  %s2133_s20 = scalar_lea.vmem %s378_s28, 32 }
  0x31   : > { %p2127_p7 = scmp.ne.s32.totalorder %s378_s28, %s2126_s21  ;;  %p2134_p5 = scmp.lt.s32.totalorder %s378_s28, %s378_s28 }
  0x32   : > { %p2135_p8 = scmp.lt.s32.totalorder %s2133_s20, %s2126_s21 }
  0x33   : > { %p2129_p11 = pnand %p2127_p7, %p2686_p0 }
  0x34   : > { %p2136_p10 = por %p2135_p8, %p2134_p5 }
  0x35   : > { %p2130_p9 = pneg %p2129_p11 }
  0x37   : > { %p2137_p4 = pnand %p2136_p10, %p2130_p9 }
  0x39   : > { %2140 = shalt.err (!%p2137_p4)
}
  0x3a   : > { %1977 = dma.hbm_to_vmem [thread:$0]  (!%p2670_p12), %s3151_s1, 16, %s378_s28, [#allocation13]  }
  0x3b   : > { %s3153_s3 = sld [smem:[#allocation46_spill]] }
  0x41   : > { %s2141_s16 = scalar_lea.hbm %s3153_s3, 16 }
  0x42   : > { %p2142_p13 = scmp.ne.s32.totalorder %s3153_s3, %s2141_s16  ;;  %p2148_p4 = scmp.lt.u32.totalorder %s2141_s16, %s3153_s3 }
  0x44   : > { %p2144_p1 = pnand %p2142_p13, %p2686_p0 }
  0x46   : > { %p2145_p5 = pneg %p2144_p1 }
  0x48   : > { %p2150_p8 = pnand %p2148_p4, %p2145_p5 }
  0x4a   : > { %2153 = shalt.err (!%p2150_p8)
}
  0x4b   : > { %s2154_s28 = scalar_lea.vmem %s2674_s30, 16  ;;  %s2161_s12 = scalar_lea.vmem %s2674_s30, 32 }
  0x4c   : > { %p2155_p9 = scmp.ne.s32.totalorder %s2674_s30, %s2154_s28  ;;  %p2162_p3 = scmp.lt.s32.totalorder %s2674_s30, %s2674_s30 }
  0x4d   : > { %p2163_p6 = scmp.lt.s32.totalorder %s2161_s12, %s2154_s28 }
  0x4e   : > { %p2157_p10 = pnand %p2155_p9, %p2686_p0 }
  0x4f   : > { %p2164_p7 = por %p2163_p6, %p2162_p3 }
  0x50   : > { %p2158_p2 = pneg %p2157_p10 }
  0x52   : > { %p2165_p11 = pnand %p2164_p7, %p2158_p2 }
  0x54   : > { %2168 = shalt.err (!%p2165_p11)
}
  0x55   : > { %1983 = dma.hbm_to_vmem [thread:$0]  (!%p2670_p12), %s3153_s3, 16, %s2674_s30, [#allocation16]  }
  0x56   : > { %s2169_s27 = scalar_lea.hbm %s3114_s6, 4096 }
  0x57   : > { %p2170_p13 = scmp.ne.s32.totalorder %s3114_s6, %s2169_s27  ;;  %p2176_p4 = scmp.lt.u32.totalorder %s2169_s27, %s3114_s6 }
  0x59   : > { %p2172_p1 = pnand %p2170_p13, %p2686_p0 }
  0x5b   : > { %p2173_p5 = pneg %p2172_p1 }
  0x5d   : > { %p2178_p8 = pnand %p2176_p4, %p2173_p5 }
  0x5f   : > { %2181 = shalt.err (!%p2178_p8)
}
  0x60   : > { %s2182_s12 = scalar_lea.vmem %s426_s17, 4096  ;;  %p2190_p3 = scmp.lt.s32.totalorder %s426_s17, %s426_s17 }
  0x61   : > { %p2183_p9 = scmp.ne.s32.totalorder %s426_s17, %s2182_s12  ;;  %p2191_p6 = scmp.lt.s32.totalorder %s2182_s12, %s2182_s12 }
  0x63   : > { %p2185_p10 = pnand %p2183_p9, %p2686_p0  ;;  %p2192_p7 = por %p2191_p6, %p2190_p3 }
  0x65   : > { %p2186_p2 = pneg %p2185_p10 }
  0x67   : > { %p2193_p11 = pnand %p2192_p7, %p2186_p2 }
  0x69   : > { %2196 = shalt.err (!%p2193_p11)
}
  0x6a   : > { %s2510_s30 = smov 128   ;;  %s2511_s13 = smov 8  }
  0x6b   : > { %1989 = dma.hbm_to_vmem [thread:$0]  (!%p2670_p12), %s3114_s6, 4096, %s426_s17, [#allocation19], %s2510_s30, %s2510_s30, %s2511_s13  }
  0x6c   : > { %s2512_s14 = smov [#allocation21]   ;;  %s2513_s16 = smov [#allocation14]  }
  0x6d   : > { %s449_s27 = sshll.u32 %s2512_s14, 4  ;;  %s387_s21 = sshll.u32 %s2513_s16, 4  ;;  %s450_s27 = int_to_ptr.vmem [resolvable:$true] %s449_s27  ;;  %s388_s21 = int_to_ptr.vmem [resolvable:$true] %s387_s21 }
  0x6e   : > { %s2197_s12 = scalar_lea.hbm %s3116_s8, 2048 }
  0x6f   : > { %p2198_p13 = scmp.ne.s32.totalorder %s3116_s8, %s2197_s12  ;;  %p2204_p4 = scmp.lt.u32.totalorder %s2197_s12, %s3116_s8 }
  0x71   : > { %p2200_p1 = pnand %p2198_p13, %p2686_p0 }
  0x73   : > { %p2201_p5 = pneg %p2200_p1 }
  0x75   : > { %p2206_p8 = pnand %p2204_p4, %p2201_p5 }
  0x77   : > { %2209 = shalt.err (!%p2206_p8)
}
  0x78   : > { %s2210_s17 = scalar_lea.vmem %s450_s27, 2048  ;;  %p2218_p3 = scmp.lt.s32.totalorder %s450_s27, %s450_s27 }
  0x79   : > { %p2211_p9 = scmp.ne.s32.totalorder %s450_s27, %s2210_s17  ;;  %p2219_p6 = scmp.lt.s32.totalorder %s2210_s17, %s2210_s17 }
  0x7b   : > { %p2213_p10 = pnand %p2211_p9, %p2686_p0  ;;  %p2220_p7 = por %p2219_p6, %p2218_p3 }
  0x7d   : > { %p2214_p2 = pneg %p2213_p10 }
  0x7f   : > { %p2221_p11 = pnand %p2220_p7, %p2214_p2 }
  0x81   : > { %2224 = shalt.err (!%p2221_p11)
}
  0x82   : > { %1995 = dma.hbm_to_vmem [thread:$0]  (!%p2670_p12), %s3116_s8, 2048, %s450_s27, [#allocation22], %s2510_s30, %s2510_s30, %s2511_s13  }
  0x83   : > { %s2225_s23 = scalar_lea.hbm %s3110_s2, 4096 }
  0x84   : > { %p2226_p13 = scmp.ne.s32.totalorder %s3110_s2, %s2225_s23  ;;  %p2232_p4 = scmp.lt.u32.totalorder %s2225_s23, %s3110_s2 }
  0x86   : > { %p2228_p1 = pnand %p2226_p13, %p2686_p0 }
  0x88   : > { %p2229_p5 = pneg %p2228_p1 }
  0x8a   : > { %p2234_p8 = pnand %p2232_p4, %p2229_p5 }
  0x8c   : > { %2237 = shalt.err (!%p2234_p8)
}
  0x8d   : > { %s2238_s28 = scalar_lea.vmem %s388_s21, 4096  ;;  %p2246_p3 = scmp.lt.s32.totalorder %s388_s21, %s388_s21 }
  0x8e   : > { %p2239_p9 = scmp.ne.s32.totalorder %s388_s21, %s2238_s28  ;;  %p2247_p6 = scmp.lt.s32.totalorder %s2238_s28, %s2238_s28 }
  0x90   : > { %p2241_p10 = pnand %p2239_p9, %p2686_p0  ;;  %p2248_p7 = por %p2247_p6, %p2246_p3 }
  0x92   : > { %p2242_p2 = pneg %p2241_p10 }
  0x94   : > { %p2249_p11 = pnand %p2248_p7, %p2242_p2 }
  0x96   : > { %2252 = shalt.err (!%p2249_p11)
}
  0x97   : > { %1980 = dma.hbm_to_vmem [thread:$0]  (!%p2670_p12), %s3110_s2, 4096, %s388_s21, [#allocation13], %s2510_s30, %s2510_s30, %s2511_s13  }
  0x98   : > { %s2514_s17 = smov [#allocation17]   ;;  %s2515_s3 = smov [#allocation20]  }
  0x99   : > { %s412_s1 = sshll.u32 %s2514_s17, 4  ;;  %s439_s11 = sshll.u32 %s2515_s3, 4  ;;  %s413_s1 = int_to_ptr.vmem [resolvable:$true] %s412_s1  ;;  %s440_s11 = int_to_ptr.vmem [resolvable:$true] %s439_s11 }
  0x9a   : > { %s2253_s22 = scalar_lea.hbm %s3112_s4, 16 }
  0x9b   : > { %p2254_p13 = scmp.ne.s32.totalorder %s3112_s4, %s2253_s22  ;;  %p2260_p4 = scmp.lt.u32.totalorder %s2253_s22, %s3112_s4 }
  0x9d   : > { %p2256_p1 = pnand %p2254_p13, %p2686_p0 }
  0x9f   : > { %p2257_p5 = pneg %p2256_p1 }
  0xa1   : > { %p2262_p8 = pnand %p2260_p4, %p2257_p5 }
  0xa3   : > { %2265 = shalt.err (!%p2262_p8)
}
  0xa4   : > { %s2266_s30 = scalar_lea.vmem %s413_s1, 16  ;;  %s2273_s13 = scalar_lea.vmem %s413_s1, 32 }
  0xa5   : > { %p2267_p9 = scmp.ne.s32.totalorder %s413_s1, %s2266_s30  ;;  %p2274_p3 = scmp.lt.s32.totalorder %s413_s1, %s413_s1 }
  0xa6   : > { %p2275_p6 = scmp.lt.s32.totalorder %s2273_s13, %s2266_s30 }
  0xa7   : > { %p2269_p10 = pnand %p2267_p9, %p2686_p0 }
  0xa8   : > { %p2276_p7 = por %p2275_p6, %p2274_p3 }
  0xa9   : > { %p2270_p2 = pneg %p2269_p10 }
  0xab   : > { %p2277_p11 = pnand %p2276_p7, %p2270_p2 }
  0xad   : > { %2280 = shalt.err (!%p2277_p11)
}
  0xae   : > { %1986 = dma.hbm_to_vmem [thread:$0]  (!%p2670_p12), %s3112_s4, 16, %s413_s1, [#allocation16]  }
  0xaf   : > { %s2281_s3 = scalar_lea.hbm %s3115_s7, 16 }
  0xb0   : > { %p2282_p13 = scmp.ne.s32.totalorder %s3115_s7, %s2281_s3  ;;  %p2288_p4 = scmp.lt.u32.totalorder %s2281_s3, %s3115_s7 }
  0xb2   : > { %p2284_p1 = pnand %p2282_p13, %p2686_p0 }
  0xb4   : > { %p2285_p5 = pneg %p2284_p1 }
  0xb6   : > { %p2290_p8 = pnand %p2288_p4, %p2285_p5 }
  0xb8   : > { %2293 = shalt.err (!%p2290_p8)
}
  0xb9   : > { %s2294_s16 = scalar_lea.vmem %s440_s11, 16  ;;  %s2301_s1 = scalar_lea.vmem %s440_s11, 32 }
  0xba   : > { %p2295_p9 = scmp.ne.s32.totalorder %s440_s11, %s2294_s16  ;;  %p2302_p3 = scmp.lt.s32.totalorder %s440_s11, %s440_s11 }
  0xbb   : > { %p2303_p6 = scmp.lt.s32.totalorder %s2301_s1, %s2294_s16 }
  0xbc   : > { %p2297_p10 = pnand %p2295_p9, %p2686_p0 }
  0xbd   : > { %p2304_p7 = por %p2303_p6, %p2302_p3 }
  0xbe   : > { %p2298_p2 = pneg %p2297_p10 }
  0xc0   : > { %p2305_p11 = pnand %p2304_p7, %p2298_p2 }
  0xc2   : > { %2308 = shalt.err (!%p2305_p11)
}
  0xc3   : > { %1992 = dma.hbm_to_vmem [thread:$0]  (!%p2670_p12), %s3115_s7, 16, %s440_s11, [#allocation19]  }
  0xc4   : > { %s2516_s30 = smov [#allocation23]   ;;  %s2517_s21 = smov [#allocation24]  }
  0xc5   : > { %s463_s13 = sshll.u32 %s2516_s30, 4  ;;  %s474_s27 = sshll.u32 %s2517_s21, 4  ;;  %s464_s13 = int_to_ptr.vmem [resolvable:$true] %s463_s13  ;;  %s475_s27 = int_to_ptr.vmem [resolvable:$true] %s474_s27 }
  0xc6   : > { %s2309_s3 = scalar_lea.hbm %s3117_s9, 16 }
  0xc7   : > { %p2310_p13 = scmp.ne.s32.totalorder %s3117_s9, %s2309_s3  ;;  %p2316_p4 = scmp.lt.u32.totalorder %s2309_s3, %s3117_s9 }
  0xc9   : > { %p2312_p1 = pnand %p2310_p13, %p2686_p0 }
  0xcb   : > { %p2313_p5 = pneg %p2312_p1 }
  0xcd   : > { %p2318_p8 = pnand %p2316_p4, %p2313_p5 }
  0xcf   : > { %2321 = shalt.err (!%p2318_p8)
}
  0xd0   : > { %s2322_s11 = scalar_lea.vmem %s464_s13, 16  ;;  %s2329_s16 = scalar_lea.vmem %s464_s13, 32 }
  0xd1   : > { %p2323_p9 = scmp.ne.s32.totalorder %s464_s13, %s2322_s11  ;;  %p2330_p3 = scmp.lt.s32.totalorder %s464_s13, %s464_s13 }
  0xd2   : > { %p2331_p6 = scmp.lt.s32.totalorder %s2329_s16, %s2322_s11 }
  0xd3   : > { %p2325_p10 = pnand %p2323_p9, %p2686_p0 }
  0xd4   : > { %p2332_p7 = por %p2331_p6, %p2330_p3 }
  0xd5   : > { %p2326_p2 = pneg %p2325_p10 }
  0xd7   : > { %p2333_p11 = pnand %p2332_p7, %p2326_p2 }
  0xd9   : > { %2336 = shalt.err (!%p2333_p11)
}
  0xda   : > { %1998 = dma.hbm_to_vmem [thread:$0]  (!%p2670_p12), %s3117_s9, 16, %s464_s13, [#allocation22]  }
  0xdb   : > { %s2337_s21 = scalar_lea.hbm %s3118_s10, 16 }
  0xdc   : > { %p2338_p13 = scmp.ne.s32.totalorder %s3118_s10, %s2337_s21  ;;  %p2344_p4 = scmp.lt.u32.totalorder %s2337_s21, %s3118_s10 }
  0xde   : > { %p2340_p1 = pnand %p2338_p13, %p2686_p0 }
  0xe0   : > { %p2341_p5 = pneg %p2340_p1 }
  0xe2   : > { %p2346_p8 = pnand %p2344_p4, %p2341_p5 }
  0xe4   : > { %2349 = shalt.err (!%p2346_p8)
}
  0xe5   : > { %s2350_s23 = scalar_lea.vmem %s475_s27, 16  ;;  %s2357_s13 = scalar_lea.vmem %s475_s27, 32 }
  0xe6   : > { %p2351_p9 = scmp.ne.s32.totalorder %s475_s27, %s2350_s23  ;;  %p2358_p3 = scmp.lt.s32.totalorder %s475_s27, %s475_s27 }
  0xe7   : > { %p2359_p6 = scmp.lt.s32.totalorder %s2357_s13, %s2350_s23 }
  0xe8   : > { %p2353_p10 = pnand %p2351_p9, %p2686_p0 }
  0xe9   : > { %p2360_p7 = por %p2359_p6, %p2358_p3 }
  0xea   : > { %p2354_p2 = pneg %p2353_p10 }
  0xec   : > { %p2361_p11 = pnand %p2360_p7, %p2354_p2 }
  0xee   : > { %2364 = shalt.err (!%p2361_p11)
}
  0xef   : > { %2001 = dma.hbm_to_vmem [thread:$0]  (!%p2670_p12), %s3118_s10, 16, %s475_s27, [#allocation25]  }
  0xf0   : > { %p1623_p13 = scmp.ge.s32.totalorder %s2505_s19, 2 }
  0xf2   : > { %484 = sbr.rel (%p1623_p13) target bundleno = 263 (0x107), region = 60 }
  0xf9   : > { %s488_s29 = sand.u32 1, %s2501_s5   ;;  %s1669_s16 = sshll.u32 %s2505_s19, 10 }
  0xfa   : > { %s1624_s11 = sshll.u32 %s488_s29, 7  ;;  %p3154_p0 = scmp.ne.s32.totalorder %s3146_s24, 0 }
  0xfb   : > { %s498_s27 = scalar_lea.hbm %s3108_s0, %s1669_s16  ;;  %s492_s30 = scalar_lea.vmem [#allocation9], %s1624_s11 }
  0xfc   : > { %s1935_s15 = scalar_select %p3154_p0, [#allocation0], [#allocation32] }
  0xfd   : > { %s511_s21 = sshll.u32 %s492_s30, 4  ;;  %s2518_s12 = smov 2048   ;;  %s512_s21 = int_to_ptr.vmem [resolvable:$true] %s511_s21 }
  0xfe   : > { %s503_s28 = sld [smem:[%s1935_s15]]   ;;  %s2519_s17 = smov 1024  }
  0xff   : > { %1936 = sst [smem:[#allocation31]] (%p3154_p0), %s2518_s12  ;;  %s2520_s3 = smov 8  }
 0x100   : > { %1937 = sst [smem:[#allocation31 + $0x1]] (%p3154_p0), %s2519_s17  ;;  %s2521_s19 = smov 128  }
 0x101   : > { %1938 = sst [smem:[#allocation31 + $0x2]] (%p3154_p0), %s2520_s3  ;;  %s489_s13 = scalar_lea.sflag [#allocation10], %s488_s29 }
 0x102   : > { %1939 = sst [smem:[#allocation31 + $0x3]] (%p3154_p0), %s2521_s19  ;;  %s2522_s22 = smov [#allocation30]  }
 0x103   : > { %1940 = sst [smem:[#allocation31 + $0x4]] (%p3154_p0), %s2521_s19 }
 0x104   : > { %s1627_s25 = sshll.u32 %s503_s28, 26  ;;  %1941 = sst [smem:[#allocation31 + $0x5]] (%p3154_p0), %s2520_s3 }
 0x105   : > { %s1628_s23 = sadd.s32 134217728, %s1627_s25 }
 0x106   : > { %1942 = dma.general (%p3154_p0), %s498_s27, 2048, %s512_s21, %s489_s13, %s2522_s22, [#allocation31], %s1628_s23, 0  }
 0x107 PF: > { %p3155_p12 = scmp.ne.s32.totalorder %s3149_s26, 0 }
 0x108   : > { %s3156_s14 = sld [smem:[#allocation44_spill]] (!%p3155_p12)  ;;  %s538_s11 = sand.u32 (!%p3155_p12), 1, %s2497_s18  }
 0x109   : > { %536 = sbr.rel (%p3155_p12) target bundleno = 1722 (0x6ba), region = 68  ;;  %s1630_s16 = sshll.u32 (!%p3155_p12), %s538_s11, 7 }
 0x10a   : > { %s539_s15 = scalar_lea.sflag (!%p3155_p12), [#allocation10], %s538_s11  ;;  %s2887_s1 = scalar_lea.vmem (!%p3155_p12), [#allocation9], %s1630_s16 }
 0x10e   : > { %p3157_p1 = scmp.ne.s32.totalorder (!%p3155_p12), %s3156_s14, 0 }
 0x110   : > { %2460 = dma.done.wait (%p3157_p1), %s539_s15, 2048  }
 0x111   : > { %2462 = vsyncadd (%p3157_p1), %s539_s15, 4294965248  ;;  %s3158_s29 = sld [smem:[#allocation41_spill]] }
 0x117   : > { %p3159_p5 = scmp.eq.s32.totalorder %s3158_s29, 0 }
 0x119   : > { %2464 = dma.done.wait (%p3159_p5), [#allocation13], 4112   ;;  %p3160_p4 = pmov %p3159_p5 }
 0x11b   : > { %2466 = vsyncadd (%p3160_p4), [#allocation13], 4294963184  ;;  %p3161_p8 = pmov %p3160_p4 }
 0x11c   : > { %p3162_p9 = pmov %p3160_p4 }
 0x11d   : > { %2468 = dma.done.wait (%p3161_p8), [#allocation16], 32  }
 0x11e   : > { %2470 = vsyncadd (%p3162_p9), [#allocation16], 4294967264  ;;  %p3163_p10 = pmov %p3160_p4 }
 0x11f   : > { %p3164_p2 = pmov %p3160_p4 }
 0x120   : > { %2472 = dma.done.wait (%p3163_p10), [#allocation19], 4112  }
 0x121   : > { %2474 = vsyncadd (%p3164_p2), [#allocation19], 4294963184  ;;  %p3165_p3 = pmov %p3164_p2 }
 0x122   : > { %p3166_p6 = pmov %p3164_p2 }
 0x123   : > { %2476 = dma.done.wait (%p3165_p3), [#allocation22], 2064  }
 0x124   : > { %2478 = vsyncadd (%p3166_p6), [#allocation22], 4294965232  ;;  %p3167_p7 = pmov %p3164_p2 }
 0x125   : > { %p3168_p11 = pmov %p3164_p2 }
 0x126   : > { %2480 = dma.done.wait (%p3167_p7), [#allocation25], 16  }
 0x127   : > { %2482 = vsyncadd (%p3168_p11), [#allocation25], 4294967280  ;;  %p3169_p13 = scmp.ne.s32.totalorder %s3158_s29, 0 }
 0x128   : > { %vm623_vm0 = vcmask (!%p3169_p13), 57344   ;;  %v2523_v2 = vmov (!%p3169_p13), -1e+30   ;;  %v2524_v3 = vmov (!%p3169_p13), 0.0  }
 0x129   : > { %622 = sbr.rel (%p3169_p13) target bundleno = 304 (0x130), region = 112  ;;  %624 = vst.msk [vmem:[#allocation2] sm:$0x1] (!%p3169_p13), %vm623_vm0, %v2523_v2  ;;  %625 = vst.msk [vmem:[#allocation3] sm:$0x1] (!%p3169_p13), %vm623_vm0, %v2524_v3 }
 0x12a   : > { %626 = vst [vmem:[#allocation4] sm:$0xff] (!%p3169_p13), %v2524_v3  ;;  %627 = vst [vmem:[#allocation5] sm:$0xff] (!%p3169_p13), %v2524_v3 }
 0x130 PF: > { %v661_v4 = vld [vmem:[#allocation14 + $0x80] sm:$0xff]  ;;  %v662_v5 = vld [vmem:[#allocation14 + $0x88] sm:$0xff]  ;;  %v663_v9 = vld [vmem:[#allocation14 + $0x90] sm:$0xff]  ;;  %s3170_s24 = sld [smem:[#allocation41_spill]]  ;;  %vm899_vm1 = vcmask 1041409   ;;  %vm901_vm2 = vcmask 1042434  }
 0x131   : > { %v645_v6 = vld [vmem:[#allocation14] sm:$0xff]  ;;  %v1813_v7 = vpack.c.bf16 %v662_v5, %v661_v4  ;;  %v646_v8 = vld [vmem:[#allocation14 + $0x8] sm:$0xff]  ;;  %v664_v10 = vld [vmem:[#allocation14 + $0x98] sm:$0xff]  ;;  %v2525_v4 = vmov 0   ;;  %vm903_vm3 = vcmask 1043459   ;;  %vm905_vm4 = vcmask 1044484  }
 0x132   : > { %v1815_v11 = vpack.c.bf16 %v646_v8, %v645_v6  ;;  %v1817_v12 = vpack.c.bf16 %v664_v10, %v663_v9  ;;  %v647_v13 = vld [vmem:[#allocation14 + $0x10] sm:$0xff]  ;;  %v648_v14 = vld [vmem:[#allocation14 + $0x18] sm:$0xff]  ;;  %v665_v15 = vld [vmem:[#allocation14 + $0xa0] sm:$0xff]  ;;  %2085 = vset.pattern.permute.xlu0 %v2525_v4  ;;  %vm907_vm5 = vcmask 1045509   ;;  %vm909_vm6 = vcmask 1046534  }
 0x133   : > { %1814 = vmatprep.subr.bf16.mxu0 %v1813_v7  ;;  %1901 = vmatprep.subr.bf16.mxu1 %v1813_v7  ;;  %v666_v16 = vld [vmem:[#allocation14 + $0xa8] sm:$0xff]  ;;  %v1819_v17 = vpack.c.bf16 %v648_v14, %v647_v13  ;;  %v649_v19 = vld [vmem:[#allocation14 + $0x20] sm:$0xff]  ;;  %v667_v21 = vld [vmem:[#allocation14 + $0xb0] sm:$0xff]  ;;  %vm911_vm7 = vcmask 1047559   ;;  %vm916_vm9 = vcmask 64512   ;;  %vm950_vm10 = vcmask 57344  }
 0x134   : > { %1816 = vmatpush3.bf16.msra.mxu0 %v1815_v11  ;;  %1909 = vmatpush3.bf16.msra.mxu1 %v1815_v11  ;;  %v1821_v18 = vpack.c.bf16 %v666_v16, %v665_v15  ;;  %v650_v20 = vld [vmem:[#allocation14 + $0x28] sm:$0xff]  ;;  %v668_v22 = vld [vmem:[#allocation14 + $0xb8] sm:$0xff]  ;;  %v651_v25 = vld [vmem:[#allocation14 + $0x30] sm:$0xff] }
 0x135   : > { %1818 = vmatprep.subr.bf16.mxu0 %v1817_v12  ;;  %1902 = vmatprep.subr.bf16.mxu1 %v1817_v12  ;;  %v1823_v23 = vpack.c.bf16 %v650_v20, %v649_v19  ;;  %v1825_v24 = vpack.c.bf16 %v668_v22, %v667_v21  ;;  %v652_v26 = vld [vmem:[#allocation14 + $0x38] sm:$0xff]  ;;  %v669_v27 = vld [vmem:[#allocation14 + $0xc0] sm:$0xff]  ;;  %v670_v28 = vld [vmem:[#allocation14 + $0xc8] sm:$0xff] }
 0x136   : > { %v2916_v29 = vld [vmem:[%s2887_s1 + $0x40] sm:$0xff]  ;;  %v1827_v31 = vpack.c.bf16 %v652_v26, %v651_v25  ;;  %v1829_v32 = vpack.c.bf16 %v670_v28, %v669_v27  ;;  %v654_v34 = vld [vmem:[#allocation14 + $0x48] sm:$0xff]  ;;  %v671_v35 = vld [vmem:[#allocation14 + $0xd0] sm:$0xff]  ;;  %s1652_s26 = sshll.u32 %s3170_s24, 3  ;;  %p1654_p0 = scmp.ne.s32.totalorder %s3170_s24, 1 }
 0x137   : > { %748 = vmatprep.mubr.f32.mxu0 %v2916_v29  ;;  %v2920_v30 = vld [vmem:[%s2887_s1 + $0x60] sm:$0xff]  ;;  %v655_v39 = vld [vmem:[#allocation14 + $0x50] sm:$0xff]  ;;  %v674_v42 = vld [vmem:[#allocation14 + $0xe8] sm:$0xff]  ;;  %s915_s20 = scalar_lea.vmem [#allocation6], %s1652_s26  ;;  %vm2528_vm11 = vmmov (!%p1654_p0), 0   ;;  %vm1355_vm14 = vcmask (!%p1654_p0), 7168  }
 0x138   : > { %1820 = vmatpush3.bf16.msra.mxu0 %v1819_v17  ;;  %1910 = vmatpush3.bf16.msra.mxu1 %v1819_v17  ;;  %v653_v33 = vld [vmem:[#allocation14 + $0x40] sm:$0xff]  ;;  %v672_v36 = vld [vmem:[#allocation14 + $0xd8] sm:$0xff]  ;;  %v658_v46 = vld [vmem:[#allocation14 + $0x68] sm:$0xff]  ;;  %vm1422_vm15 = vcmask (!%p1654_p0), 130048   ;;  %vm1335_vm0 = vcmask (!%p1654_p0), 80896  }
 0x139   : > { %1822 = vmatprep.subr.bf16.mxu0 %v1821_v18  ;;  %1903 = vmatprep.subr.bf16.mxu1 %v1821_v18  ;;  %v1831_v37 = vpack.c.bf16 %v654_v34, %v653_v33  ;;  %v1833_v38 = vpack.c.bf16 %v672_v36, %v671_v35  ;;  %v656_v40 = vld [vmem:[#allocation14 + $0x58] sm:$0xff]  ;;  %v673_v41 = vld [vmem:[#allocation14 + $0xe0] sm:$0xff]  ;;  %v675_v47 = vld [vmem:[#allocation14 + $0xf0] sm:$0xff] }
 0x13a   : > { %768 = vmatprep.mubr.f32.mxu1 %v2920_v30  ;;  %v1835_v43 = vpack.c.bf16 %v656_v40, %v655_v39  ;;  %v1837_v44 = vpack.c.bf16 %v674_v42, %v673_v41  ;;  %v657_v45 = vld [vmem:[#allocation14 + $0x60] sm:$0xff]  ;;  %v676_v48 = vld [vmem:[#allocation14 + $0xf8] sm:$0xff]  ;;  %v659_v51 = vld [vmem:[#allocation14 + $0x70] sm:$0xff] }
 0x13b   : > { %v1839_v49 = vpack.c.bf16 %v658_v46, %v657_v45  ;;  %v1841_v50 = vpack.c.bf16 %v676_v48, %v675_v47  ;;  %v660_v52 = vld [vmem:[#allocation14 + $0x78] sm:$0xff]  ;;  %v2930_v56 = vld [vmem:[%s2887_s1 + $0x48] sm:$0xff]  ;;  %v2946_v60 = vld [vmem:[%s2887_s1 + $0x70] sm:$0xff] }
 0x13c   : > { %1824 = vmatpush3.bf16.msra.mxu0 %v1823_v23  ;;  %1911 = vmatpush3.bf16.msra.mxu1 %v1823_v23  ;;  %v1843_v53 = vpack.c.bf16 %v660_v52, %v659_v51  ;;  %v2924_v54 = vld [vmem:[%s2887_s1] sm:$0xff]  ;;  %v2933_v57 = vld [vmem:[%s2887_s1 + $0x68] sm:$0xff]  ;;  %v2949_v61 = vld [vmem:[%s2887_s1 + $0x50] sm:$0xff] }
 0x13d   : > { %1826 = vmatprep.subr.bf16.mxu0 %v1825_v24  ;;  %1904 = vmatprep.subr.bf16.mxu1 %v1825_v24  ;;  %v2927_v55 = vld [vmem:[%s2887_s1 + $0x20] sm:$0xff]  ;;  %v2940_v58 = vld [vmem:[%s2887_s1 + $0x8] sm:$0xff]  ;;  %v2956_v62 = vld [vmem:[%s2887_s1 + $0x30] sm:$0xff] }
 0x13e   : > { %v2943_v59 = vld [vmem:[%s2887_s1 + $0x28] sm:$0xff]  ;;  %v2959_v63 = vld [vmem:[%s2887_s1 + $0x10] sm:$0xff]  ;;  %v2962_v0 = vld [vmem:[%s2887_s1 + $0x58] sm:$0xff] }
 0x13f   : > { %v2965_v1 = vld [vmem:[%s2887_s1 + $0x78] sm:$0xff]  ;;  %v1649_v7 = vld [vmem:[#allocation15] ss:$0 sm:$0xff] }
 0x140   : > { %1828 = vmatpush3.bf16.msra.mxu0 %v1827_v31  ;;  %1912 = vmatpush3.bf16.msra.mxu1 %v1827_v31  ;;  %v2971_v2 = vld [vmem:[%s2887_s1 + $0x18] sm:$0xff] }
 0x141   : > { %1830 = vmatprep.subr.bf16.mxu0 %v1829_v32  ;;  %1905 = vmatprep.subr.bf16.mxu1 %v1829_v32  ;;  %v2975_v3 = vld [vmem:[%s2887_s1 + $0x38] sm:$0xff] }
 0x144   : > { %1832 = vmatpush3.bf16.msra.mxu0 %v1831_v37  ;;  %1913 = vmatpush3.bf16.msra.mxu1 %v1831_v37  ;;  %v1650_v37 = vld [vmem:[#allocation17] ss:$0 sm:$0xff] }
 0x145   : > { %1834 = vmatprep.subr.bf16.mxu0 %v1833_v38  ;;  %1906 = vmatprep.subr.bf16.mxu1 %v1833_v38 }
 0x148   : > { %1836 = vmatpush3.bf16.msra.mxu0 %v1835_v43  ;;  %1914 = vmatpush3.bf16.msra.mxu1 %v1835_v43 }
 0x149   : > { %1838 = vmatprep.subr.bf16.mxu0 %v1837_v44  ;;  %1907 = vmatprep.subr.bf16.mxu1 %v1837_v44 }
 0x14c   : > { %1840 = vmatpush3.bf16.msra.mxu0 %v1839_v49  ;;  %1915 = vmatpush3.bf16.msra.mxu1 %v1839_v49 }
 0x14d   : > { %1842 = vmatprep.subr.bf16.mxu0 %v1841_v50  ;;  %1908 = vmatprep.subr.bf16.mxu1 %v1841_v50 }
 0x150   : > { %1844 = vmatpush3.bf16.msra.mxu0 %v1843_v53  ;;  %1916 = vmatpush3.bf16.msra.mxu1 %v1843_v53 }
 0x153   : > { %749 = vmatmul.mubr.f32.vlgmr.msra.gmra.mrb[0].mxu0 %v2924_v54  ;;  %769 = vmatmul.mubr.f32.vlgmr.msra.gmra.mrb[0].mxu1 %v2927_v55 }
 0x154   : > { %753 = vmatprep.mubr.f32.mxu0 %v2930_v56  ;;  %773 = vmatprep.mubr.f32.mxu1 %v2933_v57 }
 0x157   : > { %754 = vmatmul.mubr.f32.gmra.mrb[2].mxu0 %v2940_v58  ;;  %774 = vmatmul.mubr.f32.gmra.mrb[2].mxu1 %v2943_v59 }
 0x158   : > { %778 = vmatprep.mubr.f32.mxu1 %v2946_v60  ;;  %758 = vmatprep.mubr.f32.mxu0 %v2949_v61 }
 0x15b   : > { %779 = vmatmul.mubr.f32.gmra.mrb[4].mxu1 %v2956_v62  ;;  %759 = vmatmul.mubr.f32.gmra.mrb[4].mxu0 %v2959_v63 }
 0x15c   : > { %763 = vmatprep.mubr.f32.mxu0 %v2962_v0  ;;  %783 = vmatprep.mubr.f32.mxu1 %v2965_v1 }
 0x15f   : > { %764 = vmatmul.mubr.f32.gmra.mrb[6].mxu0 %v2971_v2  ;;  %784 = vmatmul.mubr.f32.gmra.mrb[6].mxu1 %v2975_v3 }
 0x226   : > { %v1702_v5 = vpop.f32.mrb[0].mxu0  ;;  %v1714_v6 = vpop.f32.mrb[0].mxu1 }
 0x227   : > { %v1703_v8 = vpop.f32.mrb[1].mxu0  ;;  %v1715_v9 = vpop.f32.mrb[1].mxu1 }
 0x228   : > { %v1704_v10 = vadd.f32 %v1703_v8, %v1702_v5  ;;  %v1716_v11 = vadd.f32 %v1715_v9, %v1714_v6 }
 0x22a   : > { %v751_v12 = vadd.f32 %v1704_v10, %v1649_v7  ;;  %v771_v13 = vadd.f32 %v1716_v11, %v1649_v7  ;;  %v1705_v14 = vpop.f32.mrb[2].mxu0  ;;  %v1717_v15 = vpop.f32.mrb[2].mxu1 }
 0x22b   : > { %v1706_v16 = vpop.f32.mrb[3].mxu0  ;;  %v1718_v17 = vpop.f32.mrb[3].mxu1 }
 0x22c   : > { %2086 = vtanh.f32 %v751_v12  ;;  %v1707_v18 = vadd.f32 %v1706_v16, %v1705_v14  ;;  %v1719_v19 = vadd.f32 %v1718_v17, %v1717_v15 }
 0x22d   : > { %2088 = vtanh.f32 %v771_v13  ;;  %v847_v13 = vlaneseq }
 0x22e   : > { %v756_v20 = vadd.f32 %v1707_v18, %v1649_v7  ;;  %v776_v21 = vadd.f32 %v1719_v19, %v1649_v7  ;;  %v1720_v22 = vpop.f32.mrb[4].mxu1  ;;  %v1708_v23 = vpop.f32.mrb[4].mxu0 }
 0x22f   : > { %v1721_v24 = vpop.f32.mrb[5].mxu1  ;;  %v1709_v25 = vpop.f32.mrb[5].mxu0  ;;  %v2979_v14 = vshrl.u32 %v847_v13, 7  ;;  %v866_v15 = vand.u32 127, %v847_v13 }
 0x230   : > { %2090 = vtanh.f32 %v756_v20  ;;  %v1722_v26 = vadd.f32 %v1721_v24, %v1720_v22  ;;  %v1710_v27 = vadd.f32 %v1709_v25, %v1708_v23 }
 0x231   : > { %2092 = vtanh.f32 %v776_v21  ;;  %v869_v18 = vsub.s32 %v866_v15, %v2979_v14 }
 0x232   : > { %v781_v28 = vadd.f32 %v1722_v26, %v1649_v7  ;;  %v761_v31 = vadd.f32 %v1710_v27, %v1649_v7  ;;  %v1711_v32 = vpop.f32.mrb[6].mxu0  ;;  %v1723_v33 = vpop.f32.mrb[6].mxu1  ;;  %v849_v26 = vstv %s1652_s26 }
 0x233   : > { %v1712_v34 = vpop.f32.mrb[7].mxu0  ;;  %v1724_v35 = vpop.f32.mrb[7].mxu1 }
 0x234   : > { %2094 = vtanh.f32 %v781_v28  ;;  %v1713_v36 = vadd.f32 %v1712_v34, %v1711_v32  ;;  %v1725_v38 = vadd.f32 %v1724_v35, %v1723_v33 }
 0x235   : > { %2096 = vtanh.f32 %v761_v31 }
 0x236   : > { %v2087_v39 = vpop.eup %2086  ;;  %v766_v40 = vadd.f32 %v1713_v36, %v1649_v7  ;;  %v786_v41 = vadd.f32 %v1725_v38, %v1649_v7  ;;  %v1651_v7 = vld [vmem:[#allocation7] ss:$0 sm:$0xff] }
 0x237   : > { %v2089_v42 = vpop.eup %2088  ;;  %v804_v43 = vmul.f32 %v2087_v39, %v1650_v37 }
 0x238   : > { %2098 = vtanh.f32 %v766_v40  ;;  %v808_v44 = vmul.f32 %v2089_v42, %v1650_v37  ;;  %v1653_v40 = vld [vmem:[#allocation12] ss:$0 sm:$0xff] }
 0x239   : > { %812 = vadd.xlane.f32.xlu0 %v804_v43  ;;  %2100 = vtanh.f32 %v786_v41 }
 0x23a   : > { %v2091_v45 = vpop.eup %2090 }
 0x23b   : > { %v2093_v46 = vpop.eup %2092  ;;  %v805_v48 = vmul.f32 %v2091_v45, %v1650_v37 }
 0x23c   : > { %v809_v47 = vmul.f32 %v2093_v46, %v1650_v37 }
 0x23d   : > { %820 = vadd.xlane.f32.xlu0 %v808_v44 }
 0x23e   : > { %v2095_v49 = vpop.eup %2094  ;;  %822 = vadd.xlane.f32.xlu1 %v809_v47 }
 0x23f   : > { %v2097_v50 = vpop.eup %2096  ;;  %v810_v52 = vmul.f32 %v2095_v49, %v1650_v37 }
 0x240   : > { %v806_v51 = vmul.f32 %v2097_v50, %v1650_v37 }
 0x241   : > { %814 = vadd.xlane.f32.xlu0 %v805_v48 }
 0x242   : > { %v2099_v53 = vpop.eup %2098  ;;  %816 = vadd.xlane.f32.xlu1 %v806_v51 }
 0x243   : > { %v2101_v4 = vpop.eup %2100  ;;  %v807_v5 = vmul.f32 %v2099_v53, %v1650_v37 }
 0x244   : > { %v811_v6 = vmul.f32 %v2101_v4, %v1650_v37  ;;  %v850_v37 = vadd.s32 %v849_v26, %v2979_v14 }
 0x245   : > { %824 = vadd.xlane.f32.xlu0 %v810_v52 }
 0x246   : > { %818 = vadd.xlane.f32.xlu1 %v807_v5  ;;  %vm856_vm8 = vcmp.lt.s32.totalorder %v850_v37, %v1653_v40 }
 0x24a   : > { %826 = vadd.xlane.f32.xlu1 %v811_v6  ;;  %v918_v6 = vld [vmem:[#allocation2] sm:$0x1] }
 0x25b   : > { %835 = vperm.xlu0 %2085, %v1651_v7  }
 0x2c6   : > { %v813_v8 = vpop.xlane.xlu0 %812 }
 0x2ca   : > { %v821_v9 = vpop.xlane.xlu0 %820 }
 0x2cb   : > { %v823_v10 = vpop.xlane.xlu1 %822 }
 0x2ce   : > { %v815_v11 = vpop.xlane.xlu0 %814 }
 0x2cf   : > { %v817_v12 = vpop.xlane.xlu1 %816 }
 0x2d2   : > { %v825_v16 = vpop.xlane.xlu0 %824 }
 0x2d3   : > { %v819_v17 = vpop.xlane.xlu1 %818 }
 0x2d7   : > { %v827_v24 = vpop.xlane.xlu1 %826 }
 0x2da   : > { %v836_v19 = vpop.permute.xlu0 %835 }
 0x2db   : > { %v838_v20 = vadd.f32 %v836_v19, %v813_v8  ;;  %v839_v21 = vadd.f32 %v836_v19, %v815_v11  ;;  %v840_v22 = vadd.f32 %v836_v19, %v817_v12  ;;  %v841_v23 = vadd.f32 %v836_v19, %v819_v17 }
 0x2dc   : > { %v842_v25 = vadd.f32 %v836_v19, %v821_v9  ;;  %v843_v27 = vadd.f32 %v836_v19, %v823_v10  ;;  %v844_v33 = vadd.f32 %v836_v19, %v825_v16  ;;  %v845_v34 = vadd.f32 %v836_v19, %v827_v24 }
 0x2dd   : > { %v870_v28 = vrot.slane %v838_v20, %v869_v18  ;;  %v874_v31 = vrot.slane %v839_v21, %v869_v18  ;;  %v878_v32 = vrot.slane %v840_v22, %v869_v18  ;;  %v882_v35 = vrot.slane %v841_v23, %v869_v18 }
 0x2de   : > { %v886_v38 = vrot.slane %v842_v25, %v869_v18  ;;  %v890_v41 = vrot.slane %v843_v27, %v869_v18  ;;  %v894_v43 = vrot.slane %v844_v33, %v869_v18  ;;  %v898_v45 = vrot.slane %v845_v34, %v869_v18 }
 0x2df   : > { %v900_v36 = vsel %vm899_vm1, %v874_v31, %v870_v28  ;;  %v2993_v8 = vsub.s32 0, %v2979_v14  ;;  %v1042_v18 = vsub.s32 7, %v2979_v14  ;;  %v1000_v22 = vsub.s32 1, %v2979_v14 }
 0x2e0   : > { %v902_v39 = vsel %vm901_vm2, %v878_v32, %v900_v36  ;;  %v1014_v27 = vsub.s32 3, %v2979_v14  ;;  %v940_v32 = vld [vmem:[#allocation3] sm:$0x1]  ;;  %v1021_v34 = vsub.s32 4, %v2979_v14 }
 0x2e1   : > { %v904_v42 = vsel %vm903_vm3, %v882_v35, %v902_v39  ;;  %v1028_v39 = vsub.s32 5, %v2979_v14 }
 0x2e2   : > { %v906_v44 = vsel %vm905_vm4, %v886_v38, %v904_v42  ;;  %v1035_v42 = vsub.s32 6, %v2979_v14 }
 0x2e3   : > { %v908_v46 = vsel %vm907_vm5, %v890_v41, %v906_v44  ;;  %v1007_v44 = vsub.s32 2, %v2979_v14 }
 0x2e4   : > { %v910_v47 = vsel %vm909_vm6, %v894_v43, %v908_v46 }
 0x2e5   : > { %v912_v48 = vsel %vm911_vm7, %v898_v45, %v910_v47 }
 0x2e6   : > { %v914_v49 = vsel %vm856_vm8, %v912_v48, -1e+30 }
 0x2e7   : > { %v919_v50 = vsel %vm916_vm9, %v914_v49, -inf  ;;  %917 = vst.msk [vmem:[%s915_s20] sm:$0xff] %vm916_vm9, %v914_v49 }
 0x2e8   : > { %v920_v51 = vrot.slane %v919_v50, 4 }
 0x2ea   : > { %v921_v52 = vmax.f32 %v919_v50, %v920_v51 }
 0x2ec   : > { %v922_v53 = vrot.slane %v921_v52, 2 }
 0x2ee   : > { %v923_v4 = vmax.f32 %v921_v52, %v922_v53 }
 0x2f0   : > { %v924_v5 = vrot.slane %v923_v4, 1 }
 0x2f2   : > { %v925_v7 = vmax.f32 %v923_v4, %v924_v5 }
 0x2f4   : > { %v926_v9 = vmax.f32 %v918_v6, %v925_v7 }
 0x2f6   : > { %v927_v10 = vsub.f32 %v918_v6, %v926_v9  ;;  %1083 = vst.msk [vmem:[#allocation2] sm:$0x1] %vm950_vm10, %v926_v9  ;;  %v934_v11 = vrot.slane %v926_v9, %v2993_v8 }
 0x2f8   : > { %v928_v12 = vmul.f32 1.442695, %v927_v10  ;;  %v936_v13 = vsub.f32 %v914_v49, %v934_v11 }
 0x2fa   : > { %2102 = vpow2.f32 %v928_v12  ;;  %v937_v15 = vmul.f32 1.442695, %v936_v13 }
 0x2fc   : > { %2104 = vpow2.f32 %v937_v15 }
 0x304   : > { %v2103_v16 = vpop.eup %2102 }
 0x305   : > { %952 = vxpose.xlu1.b32.start.end [1/1] (short) (narrow) %v2103_v16, 8  ;;  %v941_v36 = vmul.f32 %v2103_v16, %v940_v32 }
 0x306   : > { %v2105_v17 = vpop.eup %2104 }
 0x307   : > { %v939_v19 = vsel %vm856_vm8, %v2105_v17, 0.0 }
 0x308   : > { %v994_v20 = vrot.slane %v939_v19, %v2993_v8  ;;  %v942_v21 = vsel %vm916_vm9, %v939_v19, 0.0  ;;  %v1043_v24 = vrot.slane %v939_v19, %v1042_v18  ;;  %v1001_v26 = vrot.slane %v939_v19, %v1000_v22 }
 0x309   : > { %v943_v23 = vrot.slane %v942_v21, 4  ;;  %v1015_v33 = vrot.slane %v939_v19, %v1014_v27  ;;  %v1022_v38 = vrot.slane %v939_v19, %v1021_v34  ;;  %v1029_v41 = vrot.slane %v939_v19, %v1028_v39  ;;  %v1132_v34 = vld [vmem:[#allocation18] sm:$0xff] (!%p1654_p0) }
 0x30a   : > { %996 = vbcast.lane.b32.xlu0 %v994_v20, 256  ;;  %v1036_v43 = vrot.slane %v939_v19, %v1035_v42  ;;  %v1008_v45 = vrot.slane %v939_v19, %v1007_v44  ;;  %v1135_v42 = vld [vmem:[#allocation18 + $0x18] sm:$0xff] (!%p1654_p0)  ;;  %v1153_v44 = vld [vmem:[#allocation18 + $0xa8] sm:$0xff] (!%p1654_p0) }
 0x30b   : > { %v944_v25 = vadd.f32 %v943_v23, %v942_v21  ;;  %v984_v23 = vld [vmem:[#allocation4] sm:$0xff] }
 0x30d   : > { %v945_v28 = vrot.slane %v944_v25, 2 }
 0x30e   : > { %1003 = vbcast.lane.b32.xlu0 %v1001_v26, 256 }
 0x30f   : > { %v946_v31 = vadd.f32 %v945_v28, %v944_v25 }
 0x311   : > { %v947_v35 = vrot.slane %v946_v31, 1 }
 0x312   : > { %1017 = vbcast.lane.b32.xlu0 %v1015_v33, 256 }
 0x313   : > { %v948_v37 = vadd.f32 %v947_v35, %v946_v31 }
 0x315   : > { %v949_v40 = vadd.f32 %v948_v37, %v941_v36  ;;  %v1133_v36 = vld [vmem:[#allocation18 + $0x8] sm:$0xff] (!%p1654_p0)  ;;  %v1150_v37 = vld [vmem:[#allocation18 + $0x90] sm:$0xff] (!%p1654_p0) }
 0x316   : > { %1024 = vbcast.lane.b32.xlu0 %v1022_v38, 256  ;;  %v1151_v38 = vld [vmem:[#allocation18 + $0x98] sm:$0xff] (!%p1654_p0)  ;;  %v1847_v39 = vpack.c.bf16 (!%p1654_p0), %v1133_v36, %v1132_v34  ;;  %v1250_v34 = vld [vmem:[#allocation21 + $0x40] sm:$0xff] (!%p1654_p0) }
 0x317   : > { %951 = vst.msk [vmem:[#allocation3] sm:$0x1] %vm950_vm10, %v949_v40  ;;  %v1849_v40 = vpack.c.bf16 (!%p1654_p0), %v1151_v38, %v1150_v37  ;;  %v1252_v37 = vld [vmem:[#allocation21 + $0x50] sm:$0xff] (!%p1654_p0)  ;;  %v1253_v38 = vld [vmem:[#allocation21 + $0x58] sm:$0xff] (!%p1654_p0) }
 0x31a   : > { %1031 = vbcast.lane.b32.xlu0 %v1029_v41, 256  ;;  %v1134_v41 = vld [vmem:[#allocation18 + $0x10] sm:$0xff] (!%p1654_p0) }
 0x31e   : > { %1038 = vbcast.lane.b32.xlu0 %v1036_v43, 256  ;;  %v1152_v43 = vld [vmem:[#allocation18 + $0xa0] sm:$0xff] (!%p1654_p0) }
 0x323   : > { %1010 = vbcast.lane.b32.xlu1 %v1008_v45, 256  ;;  %v1851_v45 = vpack.c.bf16 (!%p1654_p0), %v1135_v42, %v1134_v41 }
 0x37c   : > { %v997_v47 = vpop.permute.xlu0 %996 }
 0x37d   : > { %v1047_v4 = vmul.f32 %v997_v47, %v2924_v54  ;;  %v1066_v5 = vmul.f32 %v2916_v29, %v997_v47  ;;  %v1136_v47 = vld [vmem:[#allocation18 + $0x20] sm:$0xff] (!%p1654_p0) }
 0x380   : > { %v1004_v48 = vpop.permute.xlu0 %1003 }
 0x381   : > { %v1048_v51 = vmul.f32 %v1004_v48, %v2940_v58  ;;  %v1067_v52 = vmul.f32 %v2930_v56, %v1004_v48  ;;  %v1137_v48 = vld [vmem:[#allocation18 + $0x28] sm:$0xff] (!%p1654_p0) }
 0x383   : > { %v1055_v9 = vadd.f32 %v1048_v51, %v1047_v4  ;;  %v1074_v10 = vadd.f32 %v1067_v52, %v1066_v5  ;;  %v1855_v51 = vpack.c.bf16 (!%p1654_p0), %v1137_v48, %v1136_v47  ;;  %v1139_v4 = vld [vmem:[#allocation18 + $0x38] sm:$0xff] (!%p1654_p0)  ;;  %v1156_v5 = vld [vmem:[#allocation18 + $0xc0] sm:$0xff] (!%p1654_p0) }
 0x384   : > { %v1018_v49 = vpop.permute.xlu0 %1017  ;;  %v1256_v48 = vld [vmem:[#allocation21 + $0x70] sm:$0xff] (!%p1654_p0) }
 0x385   : > { %v968_v46 = vpop.trf.xlu1  ;;  %v1050_v15 = vmul.f32 %v1018_v49, %v2971_v2  ;;  %v1069_v58 = vmul.f32 %v2962_v0, %v1018_v49  ;;  %v1154_v49 = vld [vmem:[#allocation18 + $0xb0] sm:$0xff] (!%p1654_p0) }
 0x386   : > { %987 = vperm.xlu0 %2085, %v968_v46   ;;  %v1853_v46 = vpack.c.bf16 (!%p1654_p0), %v1153_v44, %v1152_v43 }
 0x388   : > { %v1025_v53 = vpop.permute.xlu0 %1024 }
 0x389   : > { %v1051_v17 = vmul.f32 %v1025_v53, %v2927_v55  ;;  %v1070_v54 = vmul.f32 %v2920_v30, %v1025_v53  ;;  %v1138_v53 = vld [vmem:[#allocation18 + $0x30] sm:$0xff] (!%p1654_p0) }
 0x38a   : > { %1045 = vbcast.lane.b32.xlu0 %v1043_v24, 256  ;;  %v1064_v24 = vld [vmem:[#allocation5] sm:$0xff] }
 0x38c   : > { %v1032_v13 = vpop.permute.xlu0 %1031 }
 0x38d   : > { %v1071_v19 = vmul.f32 %v2933_v57, %v1032_v13 }
 0x390   : > { %v1039_v29 = vpop.permute.xlu0 %1038 }
 0x391   : > { %v1053_v2 = vmul.f32 %v1039_v29, %v2956_v62  ;;  %v1072_v0 = vmul.f32 %v2946_v60, %v1039_v29  ;;  %v1088_v60 = vld [vmem:[#allocation3] sm:$0x1] (!%p1654_p0) }
 0x392   : > { %2107 = vrcp.f32 (!%p1654_p0), %v1088_v60  ;;  %v1248_v60 = vld [vmem:[#allocation21 + $0x30] sm:$0xff] (!%p1654_p0) }
 0x395   : > { %v1011_v50 = vpop.permute.xlu1 %1010 }
 0x396   : > { %v1049_v6 = vmul.f32 %v1011_v50, %v2959_v63  ;;  %v1068_v7 = vmul.f32 %v2949_v61, %v1011_v50  ;;  %v1052_v61 = vmul.f32 %v1032_v13, %v2943_v59  ;;  %v1155_v50 = vld [vmem:[#allocation18 + $0xb8] sm:$0xff] (!%p1654_p0) }
 0x397   : > { %v1857_v52 = vpack.c.bf16 (!%p1654_p0), %v1155_v50, %v1154_v49  ;;  %v1159_v13 = vld [vmem:[#allocation18 + $0xd8] sm:$0xff] (!%p1654_p0) }
 0x398   : > { %v1056_v11 = vadd.f32 %v1055_v9, %v1049_v6  ;;  %v1075_v12 = vadd.f32 %v1074_v10, %v1068_v7  ;;  %v1157_v6 = vld [vmem:[#allocation18 + $0xc8] sm:$0xff] (!%p1654_p0)  ;;  %v1859_v7 = vpack.c.bf16 (!%p1654_p0), %v1139_v4, %v1138_v53  ;;  %v1140_v10 = vld [vmem:[#allocation18 + $0x40] sm:$0xff] (!%p1654_p0) }
 0x399   : > { %v1861_v9 = vpack.c.bf16 (!%p1654_p0), %v1157_v6, %v1156_v5  ;;  %v1257_v49 = vld [vmem:[#allocation21 + $0x78] sm:$0xff] (!%p1654_p0) }
 0x39a   : > { %v1057_v16 = vadd.f32 %v1056_v11, %v1050_v15  ;;  %v1076_v56 = vadd.f32 %v1075_v12, %v1069_v58  ;;  %v1141_v11 = vld [vmem:[#allocation18 + $0x48] sm:$0xff] (!%p1654_p0)  ;;  %v1158_v12 = vld [vmem:[#allocation18 + $0xd0] sm:$0xff] (!%p1654_p0)  ;;  %v1899_v50 = vpack.c.bf16 (!%p1654_p0), %v1257_v49, %v1256_v48  ;;  %v1655_v53 = vld [vmem:[#allocation20] ss:$0 sm:$0xff] (!%p1654_p0) }
 0x39b   : > { %v1863_v15 = vpack.c.bf16 (!%p1654_p0), %v1141_v11, %v1140_v10  ;;  %v1865_v58 = vpack.c.bf16 (!%p1654_p0), %v1159_v13, %v1158_v12  ;;  %v1365_v11 = vld [vmem:[#allocation6] sm:$0xff] (!%p1654_p0)  ;;  %v1660_v12 = vld [vmem:[#allocation2] ss:$0 sm:$0xff] (!%p1654_p0) }
 0x39c   : > { %v1058_v18 = vadd.f32 %v1057_v16, %v1051_v17  ;;  %v1077_v63 = vadd.f32 %v1076_v56, %v1070_v54  ;;  %v3025_v62 = vpop.eup (!%p1654_p0), %2107  ;;  %v1142_v16 = vld [vmem:[#allocation18 + $0x50] sm:$0xff] (!%p1654_p0)  ;;  %v1143_v56 = vld [vmem:[#allocation18 + $0x58] sm:$0xff] (!%p1654_p0)  ;;  %v1160_v17 = vld [vmem:[#allocation18 + $0xe0] sm:$0xff] (!%p1654_p0)  ;;  %v1374_v13 = vsub.f32 (!%p1654_p0), %v1365_v11, %v1660_v12 }
 0x39d   : > { %v1161_v54 = vld [vmem:[#allocation18 + $0xe8] sm:$0xff] (!%p1654_p0)  ;;  %v1867_v29 = vpack.c.bf16 (!%p1654_p0), %v1143_v56, %v1142_v16 }
 0x39e   : > { %v1059_v21 = vadd.f32 %v1058_v18, %v1052_v61  ;;  %v1078_v22 = vadd.f32 %v1077_v63, %v1071_v19  ;;  %v1869_v18 = vpack.c.bf16 (!%p1654_p0), %v1161_v54, %v1160_v17  ;;  %v1144_v63 = vld [vmem:[#allocation18 + $0x60] sm:$0xff] (!%p1654_p0)  ;;  %v1145_v61 = vld [vmem:[#allocation18 + $0x68] sm:$0xff] (!%p1654_p0)  ;;  %v1162_v19 = vld [vmem:[#allocation18 + $0xf0] sm:$0xff] (!%p1654_p0)  ;;  %v1376_v16 = vmul.f32 (!%p1654_p0), 1.442695, %v1374_v13 }
 0x39f   : > { %v1659_v17 = vld [vmem:[#allocation12] ss:$0 sm:$0xff] (!%p1654_p0) }
 0x3a0   : > { %v1060_v30 = vadd.f32 %v1059_v21, %v1053_v2  ;;  %v1079_v27 = vadd.f32 %v1078_v22, %v1072_v0  ;;  %v1871_v21 = vpack.c.bf16 (!%p1654_p0), %v1145_v61, %v1144_v63  ;;  %v2526_v2 = vmov (!%p1654_p0), 0   ;;  %v1146_v0 = vld [vmem:[#allocation18 + $0x70] sm:$0xff] (!%p1654_p0) }
 0x3a1   : > { %2109 = vpow2.f32 (!%p1654_p0), %v1376_v16  ;;  %vm1363_vm12 = vcmp.lt.s32.totalorder (!%p1654_p0), %v2979_v14, %v1659_v17 }
 0x3a8   : > { %1091 = vxpose.xlu0.b32.start.end [1/1] (short) (narrow) (!%p1654_p0), %v3025_v62, 8 }
 0x3ab   : > { %v2110_v54 = vpop.eup (!%p1654_p0), %2109 }
 0x3ac   : > { %v1380_v63 = vsel (!%p1654_p0), %vm1363_vm12, %v2110_v54, 0.0 }
 0x3d1   : > { %2106 = vset.pattern.permute.xlu0 (!%p1654_p0), %v2526_v2 }
 0x405   : > { %v988_v20 = vpop.permute.xlu0 %987 }
 0x406   : > { %v990_v28 = vmul.f32 %v988_v20, %v984_v23  ;;  %v1065_v59 = vmul.f32 %v1064_v24, %v988_v20  ;;  %v1163_v20 = vld [vmem:[#allocation18 + $0xf8] sm:$0xff] (!%p1654_p0) }
 0x407   : > { %v1873_v22 = vpack.c.bf16 (!%p1654_p0), %v1163_v20, %v1162_v19  ;;  %v1147_v23 = vld [vmem:[#allocation18 + $0x78] sm:$0xff] (!%p1654_p0) }
 0x408   : > { %v1875_v24 = vpack.c.bf16 (!%p1654_p0), %v1147_v23, %v1146_v0 }
 0x409   : > { %v1046_v25 = vpop.permute.xlu0 %1045 }
 0x40a   : > { %v1054_v55 = vmul.f32 %v1046_v25, %v2975_v3  ;;  %v1073_v26 = vmul.f32 %v2965_v1, %v1046_v25  ;;  %1087 = sbr.rel (%p1654_p0) target bundleno = 1630 (0x65e), region = 116  ;;  %v1148_v3 = vld [vmem:[#allocation18 + $0x80] sm:$0xff] (!%p1654_p0)  ;;  %v1149_v1 = vld [vmem:[#allocation18 + $0x88] sm:$0xff] (!%p1654_p0) }
 0x40b   : > { %v1845_v35 = vpack.c.bf16 (!%p1654_p0), %v1149_v1, %v1148_v3  ;;  %v1249_v3 = vld [vmem:[#allocation21 + $0x38] sm:$0xff] (!%p1654_p0) }
 0x40c   : > { %v1061_v31 = vadd.f32 %v1060_v30, %v1054_v55  ;;  %v1080_v57 = vadd.f32 %v1079_v27, %v1073_v26  ;;  %v1242_v55 = vld [vmem:[#allocation21] sm:$0xff] (!%p1654_p0)  ;;  %v1243_v30 = vld [vmem:[#allocation21 + $0x8] sm:$0xff] (!%p1654_p0)  ;;  %v1244_v26 = vld [vmem:[#allocation21 + $0x10] sm:$0xff] (!%p1654_p0)  ;;  %v2527_v27 = vmov (!%p1654_p0), 0.0|0.0   ;;  %v1887_v1 = vpack.c.bf16 (!%p1654_p0), %v1249_v3, %v1248_v60 }
 0x40d   : > { %1846 = vmatprep.subr.bf16.mxu0 (!%p1654_p0), %v1845_v35  ;;  %1877 = vmatprep.subr.bf16.mxu1 (!%p1654_p0), %v2527_v27  ;;  %v1251_v35 = vld [vmem:[#allocation21 + $0x48] sm:$0xff] (!%p1654_p0) }
 0x40e   : > { %v1062_v32 = vadd.f32 %v1061_v31, %v990_v28  ;;  %v1081_v33 = vadd.f32 %v1080_v57, %v1065_v59  ;;  %1848 = vmatpush3.bf16.msra.mxu0 (!%p1654_p0), %v1847_v39  ;;  %v1878_v28 = vpack.c.bf16 (!%p1654_p0), %v1243_v30, %v1242_v55  ;;  %v1245_v59 = vld [vmem:[#allocation21 + $0x18] sm:$0xff] (!%p1654_p0)  ;;  %v1246_v57 = vld [vmem:[#allocation21 + $0x20] sm:$0xff] (!%p1654_p0)  ;;  %v1890_v36 = vpack.c.bf16 (!%p1654_p0), %v1251_v35, %v1250_v34 }
 0x40f   : > { %1850 = vmatprep.subr.bf16.mxu0 (!%p1654_p0), %v1849_v40  ;;  %v1881_v31 = vpack.c.bf16 (!%p1654_p0), %v1245_v59, %v1244_v26  ;;  %v1893_v39 = vpack.c.bf16 (!%p1654_p0), %v1253_v38, %v1252_v37 }
 0x410   : > { %1063 = vst [vmem:[#allocation4] sm:$0xff] %v1062_v32  ;;  %1082 = vst [vmem:[#allocation5] sm:$0xff] %v1081_v33  ;;  %1879 = vmatpush3.bf16.msra.mxu1 (!%p1654_p0), %v1878_v28  ;;  %v1247_v32 = vld [vmem:[#allocation21 + $0x28] sm:$0xff] (!%p1654_p0) }
 0x411   : > { %1880 = vmatprep.subr.bf16.mxu1 %v2527_v27  ;;  %v1884_v33 = vpack.c.bf16 %v1247_v32, %v1246_v57 }
 0x412   : > { %1852 = vmatpush3.bf16.msra.mxu0 %v1851_v45  ;;  %v1254_v45 = vld [vmem:[#allocation21 + $0x60] sm:$0xff] }
 0x413   : > { %1854 = vmatprep.subr.bf16.mxu0 %v1853_v46  ;;  %v1255_v46 = vld [vmem:[#allocation21 + $0x68] sm:$0xff] }
 0x414   : > { %1882 = vmatpush3.bf16.msra.mxu1 %v1881_v31  ;;  %v1896_v47 = vpack.c.bf16 %v1255_v46, %v1254_v45 }
 0x415   : > { %1883 = vmatprep.subr.bf16.mxu1 %v2527_v27 }
 0x416   : > { %1856 = vmatpush3.bf16.msra.mxu0 %v1855_v51  ;;  %v2529_v51 = vmov 0.0  }
 0x417   : > { %1858 = vmatprep.subr.bf16.mxu0 %v1857_v52  ;;  %v1123_v40 = vld [vmem:[#allocation4] sm:$0xff]  ;;  %v1124_v41 = vld [vmem:[#allocation5] sm:$0xff]  ;;  %1810 = vmatprep.mubr.msk.f32.mxu1 %vm2528_vm11, %v2529_v51 }
 0x418   : > { %1885 = vmatpush3.bf16.msra.mxu1 %v1884_v33 }
 0x419   : > { %1886 = vmatprep.subr.bf16.mxu1 %v2527_v27 }
 0x41a   : > { %1860 = vmatpush3.bf16.msra.mxu0 %v1859_v7  ;;  %v1657_v7 = vld [vmem:[#allocation24] ss:$0 sm:$0xff] }
 0x41b   : > { %1862 = vmatprep.subr.bf16.mxu0 %v1861_v9 }
 0x41c   : > { %1888 = vmatpush3.bf16.msra.mxu1 %v1887_v1 }
 0x41d   : > { %1889 = vmatprep.subr.bf16.mxu1 %v2527_v27 }
 0x41e   : > { %1864 = vmatpush3.bf16.msra.mxu0 %v1863_v15  ;;  %v1366_v15 = vld [vmem:[#allocation6 + $0x8] sm:$0xff] }
 0x41f   : > { %1866 = vmatprep.subr.bf16.mxu0 %v1865_v58  ;;  %v1375_v58 = vsub.f32 %v1366_v15, %v1660_v12 }
 0x420   : > { %1891 = vmatpush3.bf16.msra.mxu1 %v1890_v36 }
 0x421   : > { %1892 = vmatprep.subr.bf16.mxu1 %v2527_v27  ;;  %v1378_v56 = vmul.f32 1.442695, %v1375_v58 }
 0x422   : > { %1868 = vmatpush3.bf16.msra.mxu0 %v1867_v29  ;;  %v1357_v29 = vadd.s32 8, %v2979_v14  ;;  %v1656_v14 = vld [vmem:[#allocation23] ss:$0 sm:$0xff] }
 0x423   : > { %1870 = vmatprep.subr.bf16.mxu0 %v1869_v18  ;;  %2111 = vpow2.f32 %v1378_v56  ;;  %v1386_v18 = vrot.slane %v3025_v62, %v2993_v8 }
 0x424   : > { %1894 = vmatpush3.bf16.msra.mxu1 %v1893_v39  ;;  %vm1364_vm13 = vcmp.lt.s32.totalorder %v1357_v29, %v1659_v17 }
 0x425   : > { %1895 = vmatprep.subr.bf16.mxu1 %v2527_v27  ;;  %v1388_v19 = vmul.f32 %v1386_v18, %v1380_v63 }
 0x426   : > { %1872 = vmatpush3.bf16.msra.mxu0 %v1871_v21 }
 0x427   : > { %1874 = vmatprep.subr.bf16.mxu0 %v1873_v22  ;;  %v1658_v22 = vld [vmem:[#allocation8] ss:$0 sm:$0xff] }
 0x428   : > { %v1107_v25 = vpop.trf.xlu0  ;;  %1897 = vmatpush3.bf16.msra.mxu1 %v1896_v47 }
 0x429   : > { %1127 = vperm.xlu0 %2106, %v1107_v25   ;;  %1898 = vmatprep.subr.bf16.mxu1 %v2527_v27 }
 0x42a   : > { %1876 = vmatpush3.bf16.msra.mxu0 %v1875_v24 }
 0x42c   : > { %1900 = vmatpush3.bf16.msra.mxu1 %v1899_v50 }
 0x42d   : > { %v2112_v61 = vpop.eup %2111 }
 0x42e   : > { %v1381_v20 = vsel %vm1364_vm13, %v2112_v61, 0.0 }
 0x42f   : > { %v1389_v21 = vmul.f32 %v1386_v18, %v1381_v20 }
 0x4a8   : > { %v1128_v42 = vpop.permute.xlu0 %1127 }
 0x4a9   : > { %v1130_v43 = vmul.f32 %v1128_v42, %v1123_v40  ;;  %v1131_v44 = vmul.f32 %v1128_v42, %v1124_v41 }
 0x4ab   : > { %1235 = vmatprep.mubr.f32.mxu0 %v1131_v44 }
 0x4ac   : > { %1236 = vmatmul.mubr.f32.vlgmr.msra.gmra.mrb[0].mxu0 %v1130_v43 }
 0x57f   : > { %v1758_v52 = vpop.f32.mrb[0].mxu0 }
 0x580   : > { %v1759_v4 = vpop.f32.mrb[1].mxu0 }
 0x581   : > { %v1760_v5 = vadd.f32 %v1759_v4, %v1758_v52 }
 0x583   : > { %v1238_v6 = vadd.f32 %v1760_v5, %v1655_v53 }
 0x585   : > { %v1241_v9 = vmax.f32 %v1238_v6, 0.0 }
 0x587   : > { %1811 = vmatmul.mubr.f32.vlgmr.msra.gmra.mrb[0].mxu1 %v1241_v9  ;;  %v1344_v10 = vmul.f32 %v1657_v7, %v1241_v9 }
 0x589   : > { %1345 = vadd.xlane.f32.xlu1 %v1344_v10 }
 0x5bc   : > { %1390 = vxpose.xlu1.b32.start [1/2] (short) (narrow) %v1388_v19, 8 }
 0x5c0   : > { %1391 = vxpose.xlu1.b32.end [2/2] (short) (narrow) %v1389_v21, 8 }
 0x616   : > { %v1346_v2 = vpop.xlane.xlu1 %1345 }
 0x617   : > { %v1354_v0 = vadd.f32 %v1658_v22, %v1346_v2 }
 0x619   : > { %1356 = vst.msk [vmem:[#allocation27] sm:$0xff] %vm1355_vm14, %v1354_v0 }
 0x63c   : > { %v1406_v23 = vpop.trf.xlu1 }
 0x63d   : > { %1423 = vst.msk [vmem:[#allocation29] sm:$0xff] %vm1422_vm15, %v1406_v23 }
 0x65a   : > { %v1331_v24 = vpop.f32.mrb[0].mxu1 }
 0x65b   : > { %v1332_v8 = vadd.f32 %v1656_v14, %v1331_v24  ;;  %v1812_v62 = vpop.f32.mrb[1].mxu1 }
 0x65d   : > { %1336 = vst.msk [vmem:[#allocation26] sm:$0xff] %vm1335_vm0, %v1332_v8 }
 0x65e PF: > { %s3171_s27 = sld [smem:[#allocation41_spill]]  ;;  %s2530_s28 = smov [#allocation27]  }
 0x65f   : > { %s1442_s30 = sshll.u32 %s2530_s28, 4  ;;  %s2531_s21 = smov [#allocation26]   ;;  %s1443_s30 = int_to_ptr.vmem [resolvable:$true] %s1442_s30 }
 0x660   : > { %s1431_s12 = sshll.u32 %s2531_s21, 4  ;;  %s2365_s17 = scalar_lea.vmem %s1443_s30, 128  ;;  %s1432_s12 = int_to_ptr.vmem [resolvable:$true] %s1431_s12 }
 0x661   : > { %p2366_p1 = scmp.ne.s32.totalorder %s1443_s30, %s2365_s17  ;;  %p2372_p8 = scmp.lt.s32.totalorder %s1443_s30, %s1443_s30 }
 0x662   : > { %p2373_p9 = scmp.lt.s32.totalorder %s2365_s17, %s2365_s17 }
 0x664   : > { %p2020_p12 = scmp.eq.s32.totalorder %s3171_s27, 1  ;;  %p2374_p10 = por %p2373_p9, %p2372_p8 }
 0x666   : > { %p2367_p5 = pnand %p2366_p1, %p2020_p12 }
 0x668   : > { %p2368_p4 = pneg %p2367_p5 }
 0x66a   : > { %p2375_p2 = pnand %p2374_p10, %p2368_p4 }
 0x66c   : > { %2378 = shalt.err (!%p2375_p2)
}
 0x66d   : > { %s3172_s25 = sld [smem:[#allocation48_spill]] }
 0x673   : > { %s2379_s23 = scalar_lea.hbm %s3172_s25, 128 }
 0x674   : > { %p2380_p3 = scmp.ne.s32.totalorder %s3172_s25, %s2379_s23  ;;  %p2385_p11 = scmp.lt.u32.totalorder %s2379_s23, %s3172_s25 }
 0x676   : > { %p2381_p6 = pnand %p2380_p3, %p2020_p12 }
 0x678   : > { %p2382_p7 = pneg %p2381_p6 }
 0x67a   : > { %p2387_p13 = pnand %p2385_p11, %p2382_p7 }
 0x67c   : > { %2390 = shalt.err (!%p2387_p13)
}
 0x67d   : > { %1965 = dma.vmem_to_hbm [thread:$0]  (%p2020_p12), %s1443_s30, 128, %s3172_s25, [#allocation28]  }
 0x67e   : > { %s2391_s1 = scalar_lea.vmem %s1432_s12, 128  ;;  %p2398_p4 = scmp.lt.s32.totalorder %s1432_s12, %s1432_s12 }
 0x67f   : > { %p2392_p0 = scmp.ne.s32.totalorder %s1432_s12, %s2391_s1  ;;  %p2399_p8 = scmp.lt.s32.totalorder %s2391_s1, %s2391_s1 }
 0x681   : > { %p2393_p1 = pnand %p2392_p0, %p2020_p12  ;;  %p2400_p9 = por %p2399_p8, %p2398_p4 }
 0x683   : > { %p2394_p5 = pneg %p2393_p1 }
 0x685   : > { %p2401_p10 = pnand %p2400_p9, %p2394_p5 }
 0x687   : > { %2404 = shalt.err (!%p2401_p10)
}
 0x688   : > { %s3173_s26 = sld [smem:[#allocation47_spill]] }
 0x68e   : > { %s2405_s20 = scalar_lea.hbm %s3173_s26, 128 }
 0x68f   : > { %p2406_p2 = scmp.ne.s32.totalorder %s3173_s26, %s2405_s20  ;;  %p2411_p7 = scmp.lt.u32.totalorder %s2405_s20, %s3173_s26 }
 0x691   : > { %p2407_p3 = pnand %p2406_p2, %p2020_p12 }
 0x693   : > { %p2408_p6 = pneg %p2407_p3 }
 0x695   : > { %p2413_p11 = pnand %p2411_p7, %p2408_p6 }
 0x697   : > { %2416 = shalt.err (!%p2413_p11)
}
 0x698   : > { %1963 = dma.vmem_to_hbm [thread:$0]  (%p2020_p12), %s1432_s12, 128, %s3173_s26, [#allocation11]  }
 0x699   : > { %s2532_s23 = smov [#allocation29]  }
 0x69a   : > { %s1453_s13 = sshll.u32 %s2532_s23, 4  ;;  %s1454_s13 = int_to_ptr.vmem [resolvable:$true] %s1453_s13 }
 0x69b   : > { %s2417_s22 = scalar_lea.vmem %s1454_s13, 128  ;;  %p2424_p5 = scmp.lt.s32.totalorder %s1454_s13, %s1454_s13 }
 0x69c   : > { %p2418_p13 = scmp.ne.s32.totalorder %s1454_s13, %s2417_s22  ;;  %p2425_p4 = scmp.lt.s32.totalorder %s2417_s22, %s2417_s22 }
 0x69e   : > { %p2419_p0 = pnand %p2418_p13, %p2020_p12  ;;  %p2426_p8 = por %p2425_p4, %p2424_p5 }
 0x6a0   : > { %p2420_p1 = pneg %p2419_p0 }
 0x6a2   : > { %p2427_p9 = pnand %p2426_p8, %p2420_p1 }
 0x6a4   : > { %2430 = shalt.err (!%p2427_p9)
}
 0x6a5   : > { %s3174_s16 = sld [smem:[#allocation49_spill]] }
 0x6ab   : > { %s2431_s15 = scalar_lea.hbm %s3174_s16, 128 }
 0x6ac   : > { %p2432_p10 = scmp.ne.s32.totalorder %s3174_s16, %s2431_s15  ;;  %p2437_p6 = scmp.lt.u32.totalorder %s2431_s15, %s3174_s16 }
 0x6ae   : > { %p2433_p2 = pnand %p2432_p10, %p2020_p12 }
 0x6b0   : > { %p2434_p3 = pneg %p2433_p2 }
 0x6b2   : > { %p2439_p7 = pnand %p2437_p6, %p2434_p3 }
 0x6b4   : > { %2442 = shalt.err (!%p2439_p7)
}
 0x6b5   : > { %1967 = dma.vmem_to_hbm [thread:$0]  (%p2020_p12), %s1454_s13, 128, %s3174_s16, [#allocation28]  }
 0x6b6   : > { %2484 = dma.done.wait (%p2020_p12), [#allocation11], 128  }
 0x6b7   : > { %2486 = vsyncadd (%p2020_p12), [#allocation11], 4294967168 }
 0x6b8   : > { %2488 = dma.done.wait (%p2020_p12), [#allocation28], 256  }
 0x6b9   : > { %2490 = vsyncadd (%p2020_p12), [#allocation28], 4294967040 }
 0x6ba PF: > { %s3175_s19 = sld [smem:[#allocation42_spill]]  ;;  %s3176_s21 = sld [smem:[#allocation43_spill]] }
 0x6bb   : > { %s3177_s17 = smov %s2497_s18  ;;  %s3178_s18 = smov %s2501_s5 }
 0x6c0   : > { %p36_p11 = scmp.ge.s32.totalorder %s3175_s19, 4   ;;  %s3179_s5 = smov %s3176_s21 }
 0x6c2   :  { %38 = sbr.rel (!%p36_p11) target bundleno = 16 (0x10), region = 172 }
 0x6c9   :  { %1474 = vsyncpa [#allocation10], 1 }
 0x6ca   :  { %1476 = vsyncpa [#allocation10 + $0x1], 1 }
 0x6cb   :  { %1477 = vsyncpa [#allocation13], 1 }
 0x6cc   :  { %1478 = vsyncpa [#allocation16], 1 }
 0x6cd   :  { %1479 = vsyncpa [#allocation19], 1 }
 0x6ce   :  { %1480 = vsyncpa [#allocation22], 1 }
 0x6cf   :  { %1481 = vsyncpa [#allocation25], 1 }
 0x6d0   :  { %1482 = vsyncpa [#allocation11], 1 }
 0x6d1   :  { %1484 = vsyncpa [#allocation11 + $0x1], 1 }
 0x6d2   :  { %1485 = vsyncpa [#allocation28], 1 }

// kernel: model_forward.2
= control target key start
LH: loop header
LB: loop body
LE: loop exit
PB: predicated region body
PF: predicated region fallthrough
CT: control target
= control target key end

     0   :  { %s2394_s0 = inlined_call_operand.hbm [shape: f32[2,16,8,512], index: 0, kind: input, shape index: {}]   ;;  %s2395_s1 = inlined_call_operand.hbm [shape: f32[2,128,512], index: 1, kind: input, shape index: {}]   ;;  %s2396_s2 = inlined_call_operand.hbm [shape: f32[2,256,512], index: 2, kind: input, shape index: {}]   ;;  %s2397_s3 = inlined_call_operand.hbm [shape: f32[2,1,512], index: 3, kind: input, shape index: {}]   ;;  %s2398_s4 = inlined_call_operand.hbm [shape: f32[2,16,8,128], index: 4, kind: output, shape index: {}]  }
   0x1   :  { %2418 = sst [smem:[#allocation27_spill]] %s2395_s1 }
   0x2   :  { %2419 = sst [smem:[#allocation28_spill]] %s2398_s4 }
   0x3   :  { %9 = vsyncpa [#allocation6], 0 }
   0x4   :  { %11 = vsyncpa [#allocation6 + $0x1], 0 }
   0x5   :  { %12 = vsyncpa [#allocation9], 0 }
   0x6   :  { %14 = vsyncpa [#allocation9 + $0x1], 0 }
   0x7   :  { %15 = vsyncpa [#allocation12], 0 }
   0x8   :  { %17 = vsyncpa [#allocation12 + $0x1], 0 }
   0x9   :  { %18 = vsyncpa [#allocation7], 0 }
   0xa   :  { %20 = vsyncpa [#allocation7 + $0x1], 0  ;;  %s1796_s15 = smov 0   ;;  %s1798_s16 = smov 0  }
   0xb   :  { %s1800_s17 = smov 0   ;;  %s1802_s18 = smov 0  }
   0xc   :  { %s1804_s19 = smov 0   ;;  %s1806_s20 = smov 0  }
   0xd   :  { %s1808_s21 = smov 0   ;;  %s1810_s22 = smov 0  }
   0xe   :  { %s1812_s23 = smov 0   ;;  %s1814_s24 = smov 0  }
   0xf   :  { %s1816_s25 = smov 0  }
  0x10 LB: > { %2420 = sst [smem:[#allocation18_spill]] %s1728_s17  ;;  %p2400_p0 = scmp.eq.s32.totalorder %s1760_s25, 0  ;;  %s1760_s25 = sphi %s1816_s25, %s26_s25   ;;  %s1756_s24 = sphi %s1814_s24, %s2468_s24   ;;  %s1752_s23 = sphi %s1812_s23, %s2461_s23   ;;  %s1748_s22 = sphi %s1810_s22, %s2467_s22   ;;  %s1744_s21 = sphi %s1808_s21, %s2460_s21   ;;  %s1740_s20 = sphi %s1806_s20, %s2459_s20   ;;  %s1736_s19 = sphi %s1804_s19, %s2466_s19   ;;  %s1732_s18 = sphi %s1802_s18, %s2465_s18   ;;  %s1728_s17 = sphi %s1800_s17, %s2457_s17   ;;  %s1724_s16 = sphi %s1798_s16, %s2464_s16   ;;  %s1720_s15 = sphi %s1796_s15, %s2463_s15  }
  0x11   : > { %2421 = sst [smem:[#allocation19_spill]] %s1732_s18  ;;  %p88_p1 = scmp.ne.s32.totalorder %s1728_s17, %s1724_s16 }
  0x12   : > { %2422 = sst [smem:[#allocation20_spill]] %s1740_s20  ;;  %p2399_p2 = scmp.lt.s32.totalorder %s1760_s25, 32 }
  0x13   : > { %2423 = sst [smem:[#allocation21_spill]] %s1748_s22  ;;  %p90_p3 = por %p88_p1, %p2400_p0 }
  0x14   : > { %2424 = sst [smem:[#allocation22_spill]] %s1752_s23  ;;  %s231_s26 = sand.u32 1, %s1760_s25  }
  0x15   : > { %s1859_s27 = sand.u32 1, %s1728_s17   ;;  %s1162_s29 = sshll.u32 %s1756_s24, 13 }
  0x16   : > { %s1134_s28 = sshll.u32 %s1859_s27, 9  ;;  %s2425_s1 = sld [smem:[#allocation27_spill]] }
  0x17   : > { %s235_s7 = scalar_lea.vmem [#allocation8], %s1134_s28  ;;  %p1870_p4 = pnand %p2399_p2, %p90_p3 }
  0x18   : > { %s242_s8 = sshll.u32 %s235_s7, 4  ;;  %s1876_s10 = scalar_lea.sflag [#allocation9], %s231_s26  ;;  %s1874_s8 = int_to_ptr.vmem [resolvable:$true] %s242_s8 }
  0x19   : > { %s2426_s9 = scalar_select %p1870_p4, 1, 0 }
  0x1a   : > { %p1882_p6 = pneg %p1870_p4 }
  0x1c   : > { %s1866_s6 = scalar_lea.hbm %s2425_s1, %s1162_s29  ;;  %s1515_s28 = scalar_lea.hbm %s2425_s1, 16384 }
  0x1d   : > { %s1510_s11 = scalar_lea.hbm %s1866_s6, 8192  ;;  %p1516_p9 = scmp.lt.u32.totalorder %s1866_s6, %s2425_s1 }
  0x1e   : > { %p1511_p5 = scmp.ne.s32.totalorder %s1866_s6, %s1510_s11  ;;  %p1517_p10 = scmp.lt.u32.totalorder %s1515_s28, %s1510_s11 }
  0x1f   : > { %p1519_p12 = scmp.lt.u32.totalorder %s1510_s11, %s1866_s6 }
  0x20   : > { %p1513_p7 = pnand %p1882_p6, %p1511_p5  ;;  %p1518_p11 = por %p1517_p10, %p1516_p9 }
  0x22   : > { %p1514_p8 = pneg %p1513_p7  ;;  %p1520_p13 = por %p1519_p12, %p1518_p11 }
  0x24   : > { %p1521_p1 = pnand %p1520_p13, %p1514_p8 }
  0x26   : > { %1524 = shalt.err (!%p1521_p1)
}
  0x27   : > { %s1525_s26 = scalar_lea.vmem %s1874_s8, 8192  ;;  %s1762_s5 = smov [#allocation8]  }
  0x28   : > { %p1526_p3 = scmp.ne.s32.totalorder %s1874_s8, %s1525_s26  ;;  %s1530_s7 = sshll.u32 %s1762_s5, 4  ;;  %s1531_s7 = int_to_ptr.vmem [resolvable:$false] %s1530_s7 }
  0x29   : > { %s1532_s13 = scalar_lea.vmem %s1531_s7, 16384  ;;  %p1533_p2 = scmp.lt.s32.totalorder %s1874_s8, %s1531_s7 }
  0x2a   : > { %p1528_p5 = pnand %p1526_p3, %p1882_p6  ;;  %p1534_p0 = scmp.lt.s32.totalorder %s1532_s13, %s1525_s26 }
  0x2c   : > { %p1529_p7 = pneg %p1528_p5  ;;  %p1535_p9 = por %p1534_p0, %p1533_p2 }
  0x2e   : > { %p1536_p10 = pnand %p1535_p9, %p1529_p7 }
  0x30   : > { %1539 = shalt.err (!%p1536_p10)
}
  0x31   : > { %s2401_s11 = smov 512   ;;  %s2402_s14 = smov 32  }
  0x32   : > { %1373 = dma.hbm_to_vmem [thread:$0]  (!%p1870_p4), %s1866_s6, 8192, %s1874_s8, %s1876_s10, %s2401_s11, %s2401_s11, %s2402_s14  }
  0x33   : > { %p1143_p0 = scmp.ge.s32.totalorder %s1760_s25, 1  ;;  %p290_p2 = scmp.lt.s32.totalorder %s1760_s25, 33 }
  0x34   : > { %s1916_s29 = sadd.s32 4294967295, %s1760_s25   ;;  %s35_s26 = sadd.s32 1, %s1752_s23 }
  0x35   : > { %p1911_p8 = pnand %p1143_p0, %p290_p2  ;;  %p36_p11 = scmp.ge.s32.totalorder %s35_s26, 16 }
  0x36   : > { %s38_s6 = sadd.s32 1, %s1756_s24  ;;  %s1123_s8 = sshll.u32 %s1752_s23, 1 }
  0x37   : > { %s2428_s28 = scalar_select %p1911_p8, 1, 0 }
  0x38   : > { %s55_s5 = sadd.s32 1, %s1740_s20  ;;  %s2470_s26 = smov (%p36_p11, %s35_s26), 0 }
  0x39   : > { %2429 = sst [smem:[#allocation23_spill]] %s2470_s26  ;;  %s2472_s6 = smov (!%p36_p11, %s38_s6), %s1756_s24 }
  0x3a   : > { %s43_s7 = ssub.s32 15, %s1123_s8  ;;  %s1124_s13 = sshll.u32 %s2470_s26, 1 }
  0x3b   : > { %p40_p12 = scmp.ge.s32.totalorder %s2472_s6, 2  ;;  %s44_s11 = smul.u32 %s1756_s24, %s43_s7 }
  0x3c   : > { %s47_s14 = ssub.s32 15, %s1124_s13  ;;  %p62_p13 = scmp.ne.s32.totalorder %s1740_s20, %s1736_s19 }
  0x3d   : > { %s2474_s6 = smov (%p40_p12, %s2472_s6), 0  ;;  %s45_s30 = sadd.s32 %s1752_s23, %s44_s11 }
  0x3e   : > { %2430 = sst [smem:[#allocation24_spill]] %s2474_s6  ;;  %p2431_p1 = scmp.eq.s32.totalorder %s1760_s25, 0 }
  0x3f   : > { %s48_s1 = smul.u32 %s47_s14, %s2474_s6  ;;  %s50_s7 = ssub.s32 %s1756_s24, %s2474_s6 }
  0x40   : > { %p1938_p3 = por %p2431_p1, %p62_p13  ;;  %p2408_p5 = scmp.ne.s32.totalorder %s1736_s19, %s1732_s18 }
  0x41   : > { %p69_p7 = scmp.eq.s32.totalorder %s1916_s29, 0  ;;  %s49_s13 = sadd.s32 %s48_s1, %s2470_s26 }
  0x42   : > { %p79_p9 = scmp.eq.s32.totalorder %s50_s7, 0  ;;  %s51_s11 = ssub.s32 %s45_s30, %s49_s13 }
  0x43   : > { %p1952_p10 = por %p69_p7, %p2408_p5  ;;  %s52_s4 = sor.u32 %s51_s11, %s50_s7 }
  0x44   : > { %s81_s14 = sadd.s32 1, %s1728_s17  ;;  %p53_p0 = scmp.eq.s32.totalorder %s52_s4, 0 }
  0x45   : > { %s2433_s23 = scalar_select %p1952_p10, 1, 0 }
  0x46   : > { %p94_p2 = scmp.ne.s32.totalorder %s1724_s16, %s1720_s15  ;;  %p180_p12 = scmp.eq.s32.totalorder %s1916_s29, 31 }
  0x47   : > { %s1960_s6 = scalar_select %p79_p9, %s1728_s17, %s81_s14  }
  0x48   : > { %s1963_s22 = scalar_select %p53_p0, %s1740_s20, %s55_s5  }
  0x49   : > { %2434 = sst [smem:[#allocation25_spill]] %s1960_s6  ;;  %p1965_p11 = por %p94_p2, %p69_p7 }
  0x4a   : > { %2435 = sst [smem:[#allocation26_spill]] %s1963_s22  ;;  %s2437_s13 = sadd.s32 4294967294, %s1760_s25  }
  0x4b   : > { %s2436_s1 = scalar_select %p1965_p11, 1, 0 }
  0x4c   : > { %p186_p1 = scmp.eq.s32.totalorder %s2437_s13, 31  ;;  %s206_s26 = sand.u32 1, %s1740_s20  }
  0x4d   : > { %p1976_p5 = por %p180_p12, %p62_p13  ;;  %p2439_p9 = scmp.ne.s32.totalorder %s1736_s19, %s1732_s18 }
  0x4e   : > { %s1129_s15 = sshll.u32 %s206_s26, 5  ;;  %s1131_s5 = sshll.u32 %s45_s30, 2 }
  0x4f   : > { %s2438_s7 = scalar_select %p1976_p5, 1, 0 }
  0x50   : > { %p1983_p10 = por %p186_p1, %p2439_p9  ;;  %s2417_s11 = sshll.u32 %s1756_s24, 6 }
  0x51   : > { %s210_s14 = scalar_lea.vmem [#allocation5], %s1129_s15  ;;  %s220_s6 = sadd.s32 %s2417_s11, %s1131_s5 }
  0x52   : > { %s2440_s4 = scalar_select %p1983_p10, 1, 0 }
  0x53   : > { %s224_s22 = sshll.u32 %s210_s14, 4  ;;  %s1133_s13 = sshll.u32 %s220_s6, 7  ;;  %s1990_s22 = int_to_ptr.vmem [resolvable:$true] %s224_s22 }
  0x54   : > { %p2441_p13 = scmp.lt.s32.totalorder %s1760_s25, 32  ;;  %s2003_s30 = scalar_lea.hbm %s2394_s0, %s1133_s13 }
  0x55   : > { %s1137_s15 = sshll.u32 %s1859_s27, 10  ;;  %s207_s5 = scalar_lea.sflag [#allocation6], %s206_s26 }
  0x56   : > { %p1996_p7 = pnand %p2441_p13, %p1938_p3  ;;  %s1540_s6 = scalar_lea.hbm %s2003_s30, 512 }
  0x57   : > { %p1541_p0 = scmp.ne.s32.totalorder %s2003_s30, %s1540_s6  ;;  %s1545_s18 = scalar_lea.hbm %s2394_s0, 16384 }
  0x58   : > { %p1542_p3 = pneg %p1996_p7  ;;  %p1546_p1 = scmp.lt.u32.totalorder %s2003_s30, %s2394_s0 }
  0x59   : > { %p1547_p9 = scmp.lt.u32.totalorder %s1545_s18, %s1540_s6  ;;  %p1549_p10 = scmp.lt.u32.totalorder %s1540_s6, %s2003_s30 }
  0x5a   : > { %p1543_p2 = pnand %p1542_p3, %p1541_p0 }
  0x5b   : > { %p1548_p13 = por %p1547_p9, %p1546_p1 }
  0x5c   : > { %p1544_p12 = pneg %p1543_p2 }
  0x5d   : > { %p1550_p5 = por %p1549_p10, %p1548_p13 }
  0x5f   : > { %p1551_p11 = pnand %p1550_p5, %p1544_p12 }
  0x61   : > { %1554 = shalt.err (!%p1551_p11)
}
  0x62   : > { %s1555_s26 = scalar_lea.vmem %s1990_s22, 512  ;;  %s1765_s8 = smov [#allocation5]  }
  0x63   : > { %p1556_p0 = scmp.ne.s32.totalorder %s1990_s22, %s1555_s26  ;;  %s1560_s17 = sshll.u32 %s1765_s8, 4  ;;  %s1561_s17 = int_to_ptr.vmem [resolvable:$false] %s1560_s17 }
  0x64   : > { %s1562_s14 = scalar_lea.vmem %s1561_s17, 1024  ;;  %p1563_p4 = scmp.lt.s32.totalorder %s1990_s22, %s1561_s17 }
  0x65   : > { %p1558_p2 = pnand %p1556_p0, %p1542_p3  ;;  %p1564_p1 = scmp.lt.s32.totalorder %s1562_s14, %s1555_s26 }
  0x67   : > { %p1559_p8 = pneg %p1558_p2  ;;  %p1565_p9 = por %p1564_p1, %p1563_p4 }
  0x69   : > { %p1566_p10 = pnand %p1565_p9, %p1559_p8 }
  0x6b   : > { %1569 = shalt.err (!%p1566_p10)
}
  0x6c   : > { %1370 = dma.hbm_to_vmem [thread:$0]  (!%p1996_p7), %s2003_s30, 512, %s1990_s22, %s207_s5  }
  0x6d   : > { %s1163_s6 = sshll.u32 %s1756_s24, 14  ;;  %s256_s18 = scalar_lea.vmem [#allocation10], %s1137_s15 }
  0x6e   : > { %s263_s13 = sshll.u32 %s256_s18, 4  ;;  %s2037_s17 = scalar_lea.hbm %s2396_s2, %s1163_s6  ;;  %s2039_s13 = int_to_ptr.vmem [resolvable:$true] %s263_s13 }
  0x6f   : > { %s1570_s20 = scalar_lea.hbm %s2037_s17, 16384  ;;  %s1575_s15 = scalar_lea.hbm %s2396_s2, 32768 }
  0x70   : > { %p1571_p4 = scmp.ne.s32.totalorder %s2037_s17, %s1570_s20  ;;  %p1576_p11 = scmp.lt.u32.totalorder %s2037_s17, %s2396_s2 }
  0x71   : > { %p1577_p7 = scmp.lt.u32.totalorder %s1575_s15, %s1570_s20  ;;  %p1579_p12 = scmp.lt.u32.totalorder %s1570_s20, %s2037_s17 }
  0x72   : > { %p1573_p8 = pnand %p1571_p4, %p1882_p6 }
  0x73   : > { %p1578_p3 = por %p1577_p7, %p1576_p11 }
  0x74   : > { %p1574_p5 = pneg %p1573_p8 }
  0x75   : > { %p1580_p13 = por %p1579_p12, %p1578_p3 }
  0x77   : > { %p1581_p0 = pnand %p1580_p13, %p1574_p5 }
  0x79   : > { %1584 = shalt.err (!%p1581_p0)
}
  0x7a   : > { %s1585_s11 = scalar_lea.vmem %s2039_s13, 16384  ;;  %s1766_s14 = smov [#allocation10]  }
  0x7b   : > { %p1586_p2 = scmp.ne.s32.totalorder %s2039_s13, %s1585_s11  ;;  %s1590_s6 = sshll.u32 %s1766_s14, 4  ;;  %s1591_s6 = int_to_ptr.vmem [resolvable:$false] %s1590_s6 }
  0x7c   : > { %s1592_s18 = scalar_lea.vmem %s1591_s6, 32768  ;;  %p1593_p10 = scmp.lt.s32.totalorder %s2039_s13, %s1591_s6 }
  0x7d   : > { %p1588_p1 = pnand %p1586_p2, %p1882_p6  ;;  %p1594_p4 = scmp.lt.s32.totalorder %s1592_s18, %s1585_s11 }
  0x7f   : > { %p1589_p9 = pneg %p1588_p1  ;;  %p1595_p8 = por %p1594_p4, %p1593_p10 }
  0x81   : > { %p1596_p11 = pnand %p1595_p8, %p1589_p9 }
  0x83   : > { %1599 = shalt.err (!%p1596_p11)
}
  0x84   : > { %p2443_p5 = scmp.ne.s32.totalorder %s2426_s9, 0  ;;  %s2444_s8 = smov 32  }
  0x85   : > { %s2445_s20 = smov 512   ;;  %s1140_s22 = sshll.u32 %s1859_s27, 2 }
  0x86   : > { %1376 = dma.hbm_to_vmem [thread:$0]  (!%p2443_p5), %s2037_s17, 16384, %s2039_s13, %s1876_s10, %s2445_s20, %s2445_s20, %s2444_s8  }
  0x87   : > { %s2446_s30 = sshll.u32 %s1756_s24, 6  ;;  %s277_s11 = scalar_lea.vmem [#allocation11], %s1140_s22 }
  0x88   : > { %s2072_s26 = scalar_lea.hbm %s2397_s3, %s2446_s30  ;;  %s285_s14 = sshll.u32 %s277_s11, 4  ;;  %s286_s14 = int_to_ptr.vmem [resolvable:$true] %s285_s14 }
  0x89   : > { %s274_s6 = scalar_lea.sflag [#allocation12], %s1859_s27  ;;  %s1600_s18 = scalar_lea.hbm %s2072_s26, 64 }
  0x8a   : > { %p1601_p7 = scmp.ne.s32.totalorder %s2072_s26, %s1600_s18  ;;  %s1605_s17 = scalar_lea.hbm %s2397_s3, 128 }
  0x8b   : > { %p1606_p13 = scmp.lt.u32.totalorder %s2072_s26, %s2397_s3  ;;  %p1607_p0 = scmp.lt.u32.totalorder %s1605_s17, %s1600_s18 }
  0x8c   : > { %p1603_p3 = pnand %p1601_p7, %p1882_p6  ;;  %p1609_p1 = scmp.lt.u32.totalorder %s1600_s18, %s2072_s26 }
  0x8d   : > { %p1608_p2 = por %p1607_p0, %p1606_p13 }
  0x8e   : > { %p1604_p12 = pneg %p1603_p3 }
  0x8f   : > { %p1610_p9 = por %p1609_p1, %p1608_p2 }
  0x91   : > { %p1611_p10 = pnand %p1610_p9, %p1604_p12 }
  0x93   : > { %1614 = shalt.err (!%p1611_p10)
}
  0x94   : > { %s1615_s27 = scalar_lea.vmem %s286_s14, 64  ;;  %s1767_s22 = smov [#allocation11]  }
  0x95   : > { %p1616_p4 = scmp.ne.s32.totalorder %s286_s14, %s1615_s27  ;;  %s1620_s30 = sshll.u32 %s1767_s22, 4  ;;  %s1621_s30 = int_to_ptr.vmem [resolvable:$false] %s1620_s30 }
  0x96   : > { %s1622_s15 = scalar_lea.vmem %s1621_s30, 128  ;;  %p1623_p7 = scmp.lt.s32.totalorder %s286_s14, %s1621_s30 }
  0x97   : > { %p1618_p8 = pnand %p1616_p4, %p1882_p6  ;;  %p1624_p3 = scmp.lt.s32.totalorder %s1622_s15, %s1615_s27 }
  0x99   : > { %p1619_p11 = pneg %p1618_p8  ;;  %p1625_p5 = por %p1624_p3, %p1623_p7 }
  0x9b   : > { %p1626_p0 = pnand %p1625_p5, %p1619_p11 }
  0x9d   : > { %1629 = shalt.err (!%p1626_p0)
}
  0x9e   : > { %p2447_p13 = scmp.ne.s32.totalorder %s2426_s9, 0  ;;  %p2448_p12 = scmp.ne.s32.totalorder %s2428_s28, 0 }
  0x9f   : > { %s2095_s12 = sand.u32 (!%p2448_p12), 1, %s1736_s19   ;;  %p2449_p6 = scmp.ne.s32.totalorder (!%p2448_p12), %s2433_s23, 0 }
  0xa0   : > { %1379 = dma.hbm_to_vmem [thread:$0]  (!%p2447_p13), %s2072_s26, 64, %s286_s14, %s274_s6  }
  0xa1   : > { %294 = sbr.rel (%p2448_p12) target bundleno = 753 (0x2f1), region = 36  ;;  %s1144_s5 = sshll.u32 (!%p2448_p12), %s2095_s12, 5 }
  0xa2   : > { %s297_s11 = scalar_lea.sflag (!%p2448_p12), [#allocation6], %s2095_s12  ;;  %s2099_s18 = scalar_lea.vmem (!%p2448_p12), [#allocation5], %s1144_s5 }
  0xa8   : > { %1703 = dma.done.wait (%p2449_p6), %s297_s11, 512  }
  0xa9   : > { %1705 = vsyncadd (%p2449_p6), %s297_s11, 4294966784  ;;  %s305_s9 = sand.u32 1, %s1916_s29   ;;  %s307_s28 = sand.u32 1, %s1724_s16  }
  0xaa   : > { %s1145_s26 = sshll.u32 %s307_s28, 9  ;;  %s306_s14 = scalar_lea.sflag [#allocation9], %s305_s9 }
  0xab   : > { %s2107_s6 = scalar_lea.vmem [#allocation8], %s1145_s26  ;;  %p2450_p5 = scmp.ne.s32.totalorder %s2436_s1, 0 }
  0xad   : > { %1707 = dma.done.wait (%p2450_p5), %s306_s14, 24576  }
  0xae   : > { %1709 = vsyncadd (%p2450_p5), %s306_s14, 4294942720  ;;  %s1146_s10 = sshll.u32 %s307_s28, 10  ;;  %s1147_s13 = sshll.u32 %s307_s28, 2 }
  0xaf   : > { %s2113_s17 = scalar_lea.vmem [#allocation10], %s1146_s10  ;;  %s324_s23 = scalar_lea.sflag [#allocation12], %s307_s28 }
  0xb0   : > { %s2115_s8 = scalar_lea.vmem [#allocation11], %s1147_s13 }
  0xb1   : > { %1711 = dma.done.wait (%p2450_p5), %s324_s23, 64  }
  0xb2   : > { %1713 = vsyncadd (%p2450_p5), %s324_s23, 4294967232  ;;  %s1148_s29 = sshll.u32 %s2095_s12, 3  ;;  %p1149_p2 = scmp.ne.s32.totalorder %s1744_s21, 0 }
  0xb3   : > { %s2122_s20 = scalar_lea.vmem [#allocation13], %s1148_s29  ;;  %v1768_v0 = vmov (!%p1149_p2), 0.0  }
  0xb4   : > { %378 = sbr.rel (%p1149_p2) target bundleno = 187 (0xbb), region = 56  ;;  %379 = vst [vmem:[#allocation2] sm:$0xff] (!%p1149_p2), %v1768_v0  ;;  %380 = vst [vmem:[#allocation2 + $0x8] sm:$0xff] (!%p1149_p2), %v1768_v0 }
  0xb5   : > { %381 = vst [vmem:[#allocation3] sm:$0xff] (!%p1149_p2), %v1768_v0  ;;  %382 = vst [vmem:[#allocation4] sm:$0xff] (!%p1149_p2), %v1768_v0 }
  0xbb PF: > { %v389_v1 = vld [vmem:[%s2107_s6 + $0x8] sm:$0xff]  ;;  %v388_v3 = vld [vmem:[%s2107_s6] sm:$0xff]  ;;  %v1769_v8 = vmov 0.0   ;;  %v391_v20 = vld [vmem:[%s2107_s6 + $0x18] sm:$0xff]  ;;  %s2451_s1 = sld [smem:[#allocation21_spill]]  ;;  %s1157_s27 = sshll.u32 %s1744_s21, 1 }
  0xbc   : > { %v393_v2 = vld [vmem:[%s2107_s6 + $0x28] sm:$0xff]  ;;  %v392_v5 = vld [vmem:[%s2107_s6 + $0x20] sm:$0xff]  ;;  %516 = vmatprep.mubr.f32.mxu0 %v1769_v8  ;;  %587 = vmatprep.mubr.f32.mxu1 %v1769_v8  ;;  %v395_v21 = vld [vmem:[%s2107_s6 + $0x38] sm:$0xff]  ;;  %s956_s22 = ssub.s32 15, %s1157_s27  ;;  %s967_s9 = sshll.u32 %s2122_s20, 4  ;;  %s2332_s9 = int_to_ptr.vmem [resolvable:$true] %s967_s9 }
  0xbd   : > { %v1165_v4 = vpack.c.bf16 %v393_v2, %v389_v1  ;;  %v397_v6 = vld [vmem:[%s2107_s6 + $0x48] sm:$0xff]  ;;  %v1167_v9 = vpack.c.bf16 %v392_v5, %v388_v3  ;;  %v396_v11 = vld [vmem:[%s2107_s6 + $0x40] sm:$0xff]  ;;  %v1197_v23 = vpack.c.bf16 %v395_v21, %v391_v20  ;;  %v390_v24 = vld [vmem:[%s2107_s6 + $0x10] sm:$0xff]  ;;  %s2452_s14 = sld [smem:[#allocation28_spill]]  ;;  %s1630_s10 = scalar_lea.vmem %s2332_s9, 128 }
  0xbe   : > { %v401_v7 = vld [vmem:[%s2107_s6 + $0x68] sm:$0xff]  ;;  %v400_v12 = vld [vmem:[%s2107_s6 + $0x60] sm:$0xff]  ;;  %v394_v25 = vld [vmem:[%s2107_s6 + $0x30] sm:$0xff]  ;;  %p1631_p1 = scmp.ne.s32.totalorder %s2332_s9, %s1630_s10  ;;  %p2453_p9 = scmp.ne.s32.totalorder %s2438_s7, 0 }
  0xbf   : > { %v1169_v10 = vpack.c.bf16 %v401_v7, %v397_v6  ;;  %v405_v13 = vld [vmem:[%s2107_s6 + $0x88] sm:$0xff]  ;;  %1166 = vmatprep.subr.bf16.mxu0 %v1165_v4  ;;  %v1171_v15 = vpack.c.bf16 %v400_v12, %v396_v11  ;;  %v404_v16 = vld [vmem:[%s2107_s6 + $0x80] sm:$0xff]  ;;  %v1199_v26 = vpack.c.bf16 %v394_v25, %v390_v24  ;;  %1198 = vmatprep.subr.bf16.mxu1 %v1197_v23  ;;  %v399_v28 = vld [vmem:[%s2107_s6 + $0x58] sm:$0xff]  ;;  %s1770_s13 = smov [#allocation13]  }
  0xc0   : > { %v409_v14 = vld [vmem:[%s2107_s6 + $0xa8] sm:$0xff]  ;;  %1168 = vmatpush1.bf16.msra.mxu0 %v1167_v9  ;;  %v408_v17 = vld [vmem:[%s2107_s6 + $0xa0] sm:$0xff]  ;;  %v403_v29 = vld [vmem:[%s2107_s6 + $0x78] sm:$0xff]  ;;  %p1632_p10 = pnand %p1631_p1, %p2453_p9 }
  0xc1   : > { %1170 = vmatprep.subr.bf16.mxu0 %v1169_v10  ;;  %v1173_v18 = vpack.c.bf16 %v409_v14, %v405_v13  ;;  %v413_v19 = vld [vmem:[%s2107_s6 + $0xc8] sm:$0xff]  ;;  %v1175_v27 = vpack.c.bf16 %v408_v17, %v404_v16  ;;  %v398_v30 = vld [vmem:[%s2107_s6 + $0x50] sm:$0xff]  ;;  %v412_v32 = vld [vmem:[%s2107_s6 + $0xc0] sm:$0xff]  ;;  %1200 = vmatpush1.bf16.msra.mxu1 %v1199_v26  ;;  %v1201_v34 = vpack.c.bf16 %v403_v29, %v399_v28  ;;  %s957_s30 = smul.u32 %s2451_s1, %s956_s22  ;;  %s1158_s5 = sshll.u32 %s2451_s1, 4 }
  0xc2   : > { %v417_v22 = vld [vmem:[%s2107_s6 + $0xe8] sm:$0xff]  ;;  %v416_v33 = vld [vmem:[%s2107_s6 + $0xe0] sm:$0xff]  ;;  %v402_v35 = vld [vmem:[%s2107_s6 + $0x70] sm:$0xff]  ;;  %p1633_p4 = pneg %p1632_p10 }
  0xc3   : > { %v1177_v31 = vpack.c.bf16 %v417_v22, %v413_v19  ;;  %v421_v36 = vld [vmem:[%s2107_s6 + $0x108] sm:$0xff]  ;;  %v1203_v38 = vpack.c.bf16 %v402_v35, %v398_v30  ;;  %v407_v39 = vld [vmem:[%s2107_s6 + $0x98] sm:$0xff]  ;;  %1202 = vmatprep.subr.bf16.mxu1 %v1201_v34  ;;  %v406_v41 = vld [vmem:[%s2107_s6 + $0x90] sm:$0xff]  ;;  %v1179_v43 = vpack.c.bf16 %v416_v33, %v412_v32  ;;  %s958_s15 = sadd.s32 %s1744_s21, %s957_s30  ;;  %s948_s21 = scalar_lea.sflag [#allocation7], %s2095_s12 }
  0xc4   : > { %1172 = vmatpush1.bf16.msra.mxu0 %v1171_v15  ;;  %v425_v37 = vld [vmem:[%s2107_s6 + $0x128] sm:$0xff]  ;;  %v411_v40 = vld [vmem:[%s2107_s6 + $0xb8] sm:$0xff]  ;;  %v410_v42 = vld [vmem:[%s2107_s6 + $0xb0] sm:$0xff]  ;;  %s963_s11 = sadd.s32 %s1158_s5, %s958_s15 }
  0xc5   : > { %1174 = vmatprep.subr.bf16.mxu0 %v1173_v18  ;;  %v420_v44 = vld [vmem:[%s2107_s6 + $0x100] sm:$0xff]  ;;  %v1205_v46 = vpack.c.bf16 %v411_v40, %v407_v39  ;;  %v1181_v47 = vpack.c.bf16 %v425_v37, %v421_v36  ;;  %1204 = vmatpush1.bf16.msra.mxu1 %v1203_v38  ;;  %v429_v48 = vld [vmem:[%s2107_s6 + $0x148] sm:$0xff]  ;;  %v1207_v49 = vpack.c.bf16 %v410_v42, %v406_v41  ;;  %v415_v50 = vld [vmem:[%s2107_s6 + $0xd8] sm:$0xff] }
  0xc6   : > { %v424_v45 = vld [vmem:[%s2107_s6 + $0x120] sm:$0xff]  ;;  %v419_v51 = vld [vmem:[%s2107_s6 + $0xf8] sm:$0xff]  ;;  %v433_v52 = vld [vmem:[%s2107_s6 + $0x168] sm:$0xff] }
  0xc7   : > { %1206 = vmatprep.subr.bf16.mxu1 %v1205_v46  ;;  %v1209_v53 = vpack.c.bf16 %v419_v51, %v415_v50  ;;  %v414_v54 = vld [vmem:[%s2107_s6 + $0xd0] sm:$0xff]  ;;  %v1183_v56 = vpack.c.bf16 %v424_v45, %v420_v44  ;;  %v423_v57 = vld [vmem:[%s2107_s6 + $0x118] sm:$0xff]  ;;  %v1185_v59 = vpack.c.bf16 %v433_v52, %v429_v48  ;;  %v428_v60 = vld [vmem:[%s2107_s6 + $0x140] sm:$0xff] }
  0xc8   : > { %1176 = vmatpush1.bf16.msra.mxu0 %v1175_v27  ;;  %v418_v55 = vld [vmem:[%s2107_s6 + $0xf0] sm:$0xff]  ;;  %v427_v58 = vld [vmem:[%s2107_s6 + $0x138] sm:$0xff]  ;;  %v432_v61 = vld [vmem:[%s2107_s6 + $0x160] sm:$0xff] }
  0xc9   : > { %1178 = vmatprep.subr.bf16.mxu0 %v1177_v31  ;;  %1208 = vmatpush1.bf16.msra.mxu1 %v1207_v49  ;;  %v437_v62 = vld [vmem:[%s2107_s6 + $0x188] sm:$0xff]  ;;  %v1211_v63 = vpack.c.bf16 %v418_v55, %v414_v54  ;;  %v1213_v1 = vpack.c.bf16 %v427_v58, %v423_v57  ;;  %v422_v2 = vld [vmem:[%s2107_s6 + $0x110] sm:$0xff]  ;;  %v431_v4 = vld [vmem:[%s2107_s6 + $0x158] sm:$0xff]  ;;  %v1187_v6 = vpack.c.bf16 %v432_v61, %v428_v60 }
  0xca   : > { %v441_v0 = vld [vmem:[%s2107_s6 + $0x1a8] sm:$0xff]  ;;  %1210 = vmatprep.subr.bf16.mxu1 %v1209_v53  ;;  %v426_v3 = vld [vmem:[%s2107_s6 + $0x130] sm:$0xff]  ;;  %v435_v5 = vld [vmem:[%s2107_s6 + $0x178] sm:$0xff] }
  0xcb   : > { %v1189_v7 = vpack.c.bf16 %v441_v0, %v437_v62  ;;  %v436_v8 = vld [vmem:[%s2107_s6 + $0x180] sm:$0xff]  ;;  %v445_v10 = vld [vmem:[%s2107_s6 + $0x1c8] sm:$0xff]  ;;  %v1215_v11 = vpack.c.bf16 %v426_v3, %v422_v2  ;;  %v1217_v13 = vpack.c.bf16 %v435_v5, %v431_v4  ;;  %v430_v14 = vld [vmem:[%s2107_s6 + $0x150] sm:$0xff] }
  0xcc   : > { %1180 = vmatpush1.bf16.msra.mxu0 %v1179_v43  ;;  %v440_v9 = vld [vmem:[%s2107_s6 + $0x1a0] sm:$0xff]  ;;  %v449_v12 = vld [vmem:[%s2107_s6 + $0x1e8] sm:$0xff]  ;;  %v434_v15 = vld [vmem:[%s2107_s6 + $0x170] sm:$0xff] }
  0xcd   : > { %1182 = vmatprep.subr.bf16.mxu0 %v1181_v47  ;;  %1212 = vmatpush1.bf16.msra.mxu1 %v1211_v63  ;;  %v439_v16 = vld [vmem:[%s2107_s6 + $0x198] sm:$0xff]  ;;  %v1191_v18 = vpack.c.bf16 %v440_v9, %v436_v8  ;;  %v1193_v19 = vpack.c.bf16 %v449_v12, %v445_v10  ;;  %v444_v20 = vld [vmem:[%s2107_s6 + $0x1c0] sm:$0xff]  ;;  %v1219_v22 = vpack.c.bf16 %v434_v15, %v430_v14  ;;  %v438_v23 = vld [vmem:[%s2107_s6 + $0x190] sm:$0xff] }
  0xce   : > { %1214 = vmatprep.subr.bf16.mxu1 %v1213_v1  ;;  %v443_v17 = vld [vmem:[%s2107_s6 + $0x1b8] sm:$0xff]  ;;  %v448_v21 = vld [vmem:[%s2107_s6 + $0x1e0] sm:$0xff]  ;;  %v442_v25 = vld [vmem:[%s2107_s6 + $0x1b0] sm:$0xff] }
  0xcf   : > { %v1221_v24 = vpack.c.bf16 %v443_v17, %v439_v16  ;;  %v628_v26 = vld [vmem:[%s2113_s17 + $0x8] sm:$0xff]  ;;  %v447_v28 = vld [vmem:[%s2107_s6 + $0x1d8] sm:$0xff]  ;;  %v1195_v30 = vpack.c.bf16 %v448_v21, %v444_v20  ;;  %v1223_v31 = vpack.c.bf16 %v442_v25, %v438_v23  ;;  %v446_v32 = vld [vmem:[%s2107_s6 + $0x1d0] sm:$0xff] }
  0xd0   : > { %1184 = vmatpush1.bf16.msra.mxu0 %v1183_v56  ;;  %v632_v27 = vld [vmem:[%s2113_s17 + $0x28] sm:$0xff]  ;;  %v451_v29 = vld [vmem:[%s2107_s6 + $0x1f8] sm:$0xff]  ;;  %v627_v34 = vld [vmem:[%s2113_s17] sm:$0xff] }
  0xd1   : > { %1186 = vmatprep.subr.bf16.mxu0 %v1185_v59  ;;  %1216 = vmatpush1.bf16.msra.mxu1 %v1215_v11  ;;  %v1229_v33 = vpack.c.bf16 %v632_v27, %v628_v26  ;;  %v631_v35 = vld [vmem:[%s2113_s17 + $0x20] sm:$0xff]  ;;  %v1225_v36 = vpack.c.bf16 %v451_v29, %v447_v28  ;;  %v450_v37 = vld [vmem:[%s2107_s6 + $0x1f0] sm:$0xff]  ;;  %v636_v38 = vld [vmem:[%s2113_s17 + $0x48] sm:$0xff] }
  0xd2   : > { %1218 = vmatprep.subr.bf16.mxu1 %v1217_v13  ;;  %v640_v39 = vld [vmem:[%s2113_s17 + $0x68] sm:$0xff]  ;;  %v630_v40 = vld [vmem:[%s2113_s17 + $0x18] sm:$0xff]  ;;  %v383_v42 = vld [vmem:[#allocation2] sm:$0xff]  ;;  %v1231_v43 = vpack.c.bf16 %v631_v35, %v627_v34  ;;  %v1227_v44 = vpack.c.bf16 %v450_v37, %v446_v32 }
  0xd3   : > { %v634_v41 = vld [vmem:[%s2113_s17 + $0x38] sm:$0xff]  ;;  %v629_v45 = vld [vmem:[%s2113_s17 + $0x10] sm:$0xff]  ;;  %v1233_v46 = vpack.c.bf16 %v640_v39, %v636_v38  ;;  %v635_v47 = vld [vmem:[%s2113_s17 + $0x40] sm:$0xff] }
  0xd4   : > { %1188 = vmatpush1.bf16.msra.mxu0 %v1187_v6  ;;  %v639_v48 = vld [vmem:[%s2113_s17 + $0x60] sm:$0xff]  ;;  %v1293_v49 = vpack.c.bf16 %v634_v41, %v630_v40  ;;  %v633_v50 = vld [vmem:[%s2113_s17 + $0x30] sm:$0xff]  ;;  %v644_v51 = vld [vmem:[%s2113_s17 + $0x88] sm:$0xff] }
  0xd5   : > { %1190 = vmatprep.subr.bf16.mxu0 %v1189_v7  ;;  %1220 = vmatpush1.bf16.msra.mxu1 %v1219_v22  ;;  %v648_v52 = vld [vmem:[%s2113_s17 + $0xa8] sm:$0xff]  ;;  %v638_v53 = vld [vmem:[%s2113_s17 + $0x58] sm:$0xff]  ;;  %v1235_v55 = vpack.c.bf16 %v639_v48, %v635_v47  ;;  %v1295_v56 = vpack.c.bf16 %v633_v50, %v629_v45  ;;  %v637_v59 = vld [vmem:[%s2113_s17 + $0x50] sm:$0xff] }
  0xd6   : > { %1222 = vmatprep.subr.bf16.mxu1 %v1221_v24  ;;  %v642_v54 = vld [vmem:[%s2113_s17 + $0x78] sm:$0xff]  ;;  %v1237_v57 = vpack.c.bf16 %v648_v52, %v644_v51  ;;  %v641_v60 = vld [vmem:[%s2113_s17 + $0x70] sm:$0xff]  ;;  %v643_v1 = vld [vmem:[%s2113_s17 + $0x80] sm:$0xff] }
  0xd7   : > { %v1297_v58 = vpack.c.bf16 %v642_v54, %v638_v53  ;;  %v646_v61 = vld [vmem:[%s2113_s17 + $0x98] sm:$0xff]  ;;  %v1299_v63 = vpack.c.bf16 %v641_v60, %v637_v59  ;;  %v647_v2 = vld [vmem:[%s2113_s17 + $0xa0] sm:$0xff]  ;;  %v645_v3 = vld [vmem:[%s2113_s17 + $0x90] sm:$0xff] }
  0xd8   : > { %1192 = vmatpush1.bf16.msra.mxu0 %v1191_v18  ;;  %v650_v62 = vld [vmem:[%s2113_s17 + $0xb8] sm:$0xff]  ;;  %v1239_v4 = vpack.c.bf16 %v647_v2, %v643_v1  ;;  %v649_v5 = vld [vmem:[%s2113_s17 + $0xb0] sm:$0xff]  ;;  %v652_v7 = vld [vmem:[%s2113_s17 + $0xc8] sm:$0xff] }
  0xd9   : > { %1194 = vmatprep.subr.bf16.mxu0 %v1193_v19  ;;  %1224 = vmatpush1.bf16.msra.mxu1 %v1223_v31  ;;  %v1301_v0 = vpack.c.bf16 %v650_v62, %v646_v61  ;;  %v1303_v6 = vpack.c.bf16 %v649_v5, %v645_v3  ;;  %v656_v8 = vld [vmem:[%s2113_s17 + $0xe8] sm:$0xff]  ;;  %v654_v9 = vld [vmem:[%s2113_s17 + $0xd8] sm:$0xff]  ;;  %v651_v12 = vld [vmem:[%s2113_s17 + $0xc0] sm:$0xff] }
  0xda   : > { %1226 = vmatprep.subr.bf16.mxu1 %v1225_v36  ;;  %v1241_v10 = vpack.c.bf16 %v656_v8, %v652_v7  ;;  %v658_v11 = vld [vmem:[%s2113_s17 + $0xf8] sm:$0xff]  ;;  %v655_v13 = vld [vmem:[%s2113_s17 + $0xe0] sm:$0xff]  ;;  %v653_v16 = vld [vmem:[%s2113_s17 + $0xd0] sm:$0xff] }
  0xdb   : > { %v1305_v14 = vpack.c.bf16 %v658_v11, %v654_v9  ;;  %v1243_v15 = vpack.c.bf16 %v655_v13, %v651_v12  ;;  %v657_v17 = vld [vmem:[%s2113_s17 + $0xf0] sm:$0xff]  ;;  %v660_v19 = vld [vmem:[%s2113_s17 + $0x108] sm:$0xff]  ;;  %v662_v21 = vld [vmem:[%s2113_s17 + $0x118] sm:$0xff] }
  0xdc   : > { %1196 = vmatpush1.bf16.msra.mxu0 %v1195_v30  ;;  %v1307_v18 = vpack.c.bf16 %v657_v17, %v653_v16  ;;  %v664_v20 = vld [vmem:[%s2113_s17 + $0x128] sm:$0xff]  ;;  %v666_v23 = vld [vmem:[%s2113_s17 + $0x138] sm:$0xff]  ;;  %v659_v24 = vld [vmem:[%s2113_s17 + $0x100] sm:$0xff] }
  0xdd   : > { %1230 = vmatprep.subr.bf16.mxu0 %v1229_v33  ;;  %1228 = vmatpush1.bf16.msra.mxu1 %v1227_v44  ;;  %v1245_v22 = vpack.c.bf16 %v664_v20, %v660_v19  ;;  %v663_v25 = vld [vmem:[%s2113_s17 + $0x120] sm:$0xff]  ;;  %v1309_v26 = vpack.c.bf16 %v666_v23, %v662_v21  ;;  %v661_v28 = vld [vmem:[%s2113_s17 + $0x110] sm:$0xff]  ;;  %v668_v31 = vld [vmem:[%s2113_s17 + $0x148] sm:$0xff] }
  0xde   : > { %1294 = vmatprep.subr.bf16.mxu1 %v1293_v49  ;;  %v1247_v27 = vpack.c.bf16 %v663_v25, %v659_v24  ;;  %v665_v29 = vld [vmem:[%s2113_s17 + $0x130] sm:$0xff]  ;;  %v672_v32 = vld [vmem:[%s2113_s17 + $0x168] sm:$0xff]  ;;  %v670_v33 = vld [vmem:[%s2113_s17 + $0x158] sm:$0xff] }
  0xdf   : > { %517 = vmatmul.mubr.f32.vlgmr.msra.gmra.mrb[0].mxu0 %v383_v42  ;;  %v1311_v30 = vpack.c.bf16 %v665_v29, %v661_v28  ;;  %v1249_v34 = vpack.c.bf16 %v672_v32, %v668_v31  ;;  %v674_v35 = vld [vmem:[%s2113_s17 + $0x178] sm:$0xff]  ;;  %v667_v36 = vld [vmem:[%s2113_s17 + $0x140] sm:$0xff]  ;;  %v669_v39 = vld [vmem:[%s2113_s17 + $0x150] sm:$0xff] }
  0xe0   : > { %1232 = vmatpush1.bf16.msra.mxu0 %v1231_v43  ;;  %588 = vmatmul.mubr.f32.vlgmr.msra.gmra.mrb[0].mxu1 %v383_v42  ;;  %v1313_v37 = vpack.c.bf16 %v674_v35, %v670_v33  ;;  %v671_v38 = vld [vmem:[%s2113_s17 + $0x160] sm:$0xff]  ;;  %v673_v40 = vld [vmem:[%s2113_s17 + $0x170] sm:$0xff]  ;;  %v676_v43 = vld [vmem:[%s2113_s17 + $0x188] sm:$0xff] }
  0xe1   : > { %1234 = vmatprep.subr.bf16.mxu0 %v1233_v46  ;;  %1296 = vmatpush1.bf16.msra.mxu1 %v1295_v56  ;;  %v1251_v41 = vpack.c.bf16 %v671_v38, %v667_v36  ;;  %v1315_v42 = vpack.c.bf16 %v673_v40, %v669_v39  ;;  %v680_v44 = vld [vmem:[%s2113_s17 + $0x1a8] sm:$0xff]  ;;  %v678_v45 = vld [vmem:[%s2113_s17 + $0x198] sm:$0xff]  ;;  %v675_v48 = vld [vmem:[%s2113_s17 + $0x180] sm:$0xff] }
  0xe2   : > { %1298 = vmatprep.subr.bf16.mxu1 %v1297_v58  ;;  %v1253_v46 = vpack.c.bf16 %v680_v44, %v676_v43  ;;  %v682_v47 = vld [vmem:[%s2113_s17 + $0x1b8] sm:$0xff]  ;;  %v679_v49 = vld [vmem:[%s2113_s17 + $0x1a0] sm:$0xff]  ;;  %v677_v52 = vld [vmem:[%s2113_s17 + $0x190] sm:$0xff] }
  0xe3   : > { %v1317_v50 = vpack.c.bf16 %v682_v47, %v678_v45  ;;  %v1255_v51 = vpack.c.bf16 %v679_v49, %v675_v48  ;;  %v681_v53 = vld [vmem:[%s2113_s17 + $0x1b0] sm:$0xff]  ;;  %v688_v56 = vld [vmem:[%s2113_s17 + $0x1e8] sm:$0xff]  ;;  %v690_v59 = vld [vmem:[%s2113_s17 + $0x1f8] sm:$0xff] }
  0xe4   : > { %1236 = vmatpush1.bf16.msra.mxu0 %v1235_v55  ;;  %v1319_v54 = vpack.c.bf16 %v681_v53, %v677_v52  ;;  %v684_v55 = vld [vmem:[%s2113_s17 + $0x1c8] sm:$0xff]  ;;  %v683_v60 = vld [vmem:[%s2113_s17 + $0x1c0] sm:$0xff]  ;;  %v689_v1 = vld [vmem:[%s2113_s17 + $0x1f0] sm:$0xff] }
  0xe5   : > { %1238 = vmatprep.subr.bf16.mxu0 %v1237_v57  ;;  %1300 = vmatpush1.bf16.msra.mxu1 %v1299_v63  ;;  %v686_v57 = vld [vmem:[%s2113_s17 + $0x1d8] sm:$0xff]  ;;  %v1257_v58 = vpack.c.bf16 %v688_v56, %v684_v55  ;;  %v687_v61 = vld [vmem:[%s2113_s17 + $0x1e0] sm:$0xff]  ;;  %v692_v3 = vld [vmem:[%s2113_s17 + $0x208] sm:$0xff] }
  0xe6   : > { %1302 = vmatprep.subr.bf16.mxu1 %v1301_v0  ;;  %v1321_v62 = vpack.c.bf16 %v690_v59, %v686_v57  ;;  %v1259_v63 = vpack.c.bf16 %v687_v61, %v683_v60  ;;  %v685_v0 = vld [vmem:[%s2113_s17 + $0x1d0] sm:$0xff]  ;;  %v694_v5 = vld [vmem:[%s2113_s17 + $0x218] sm:$0xff]  ;;  %v691_v8 = vld [vmem:[%s2113_s17 + $0x200] sm:$0xff] }
  0xe7   : > { %v1323_v2 = vpack.c.bf16 %v689_v1, %v685_v0  ;;  %v698_v7 = vld [vmem:[%s2113_s17 + $0x238] sm:$0xff]  ;;  %v695_v9 = vld [vmem:[%s2113_s17 + $0x220] sm:$0xff]  ;;  %v693_v12 = vld [vmem:[%s2113_s17 + $0x210] sm:$0xff] }
  0xe8   : > { %1240 = vmatpush1.bf16.msra.mxu0 %v1239_v4  ;;  %v696_v4 = vld [vmem:[%s2113_s17 + $0x228] sm:$0xff]  ;;  %v1263_v11 = vpack.c.bf16 %v695_v9, %v691_v8  ;;  %v697_v13 = vld [vmem:[%s2113_s17 + $0x230] sm:$0xff]  ;;  %v702_v17 = vld [vmem:[%s2113_s17 + $0x258] sm:$0xff] }
  0xe9   : > { %1304 = vmatpush1.bf16.msra.mxu1 %v1303_v6  ;;  %1242 = vmatprep.subr.bf16.mxu0 %v1241_v10  ;;  %v1261_v6 = vpack.c.bf16 %v696_v4, %v692_v3  ;;  %v1325_v10 = vpack.c.bf16 %v698_v7, %v694_v5  ;;  %v704_v16 = vld [vmem:[%s2113_s17 + $0x268] sm:$0xff]  ;;  %v706_v19 = vld [vmem:[%s2113_s17 + $0x278] sm:$0xff]  ;;  %v699_v20 = vld [vmem:[%s2113_s17 + $0x240] sm:$0xff] }
  0xea   : > { %1306 = vmatprep.subr.bf16.mxu1 %v1305_v14  ;;  %v1327_v14 = vpack.c.bf16 %v697_v13, %v693_v12  ;;  %v703_v21 = vld [vmem:[%s2113_s17 + $0x260] sm:$0xff]  ;;  %v701_v24 = vld [vmem:[%s2113_s17 + $0x250] sm:$0xff]  ;;  %v712_v28 = vld [vmem:[%s2113_s17 + $0x2a8] sm:$0xff] }
  0xeb   : > { %v1267_v23 = vpack.c.bf16 %v703_v21, %v699_v20  ;;  %v705_v25 = vld [vmem:[%s2113_s17 + $0x270] sm:$0xff]  ;;  %v710_v29 = vld [vmem:[%s2113_s17 + $0x298] sm:$0xff]  ;;  %v707_v32 = vld [vmem:[%s2113_s17 + $0x280] sm:$0xff] }
  0xec   : > { %1244 = vmatpush1.bf16.msra.mxu0 %v1243_v15  ;;  %v700_v15 = vld [vmem:[%s2113_s17 + $0x248] sm:$0xff]  ;;  %v714_v31 = vld [vmem:[%s2113_s17 + $0x2b8] sm:$0xff]  ;;  %v711_v33 = vld [vmem:[%s2113_s17 + $0x2a0] sm:$0xff] }
  0xed   : > { %1308 = vmatpush1.bf16.msra.mxu1 %v1307_v18  ;;  %1246 = vmatprep.subr.bf16.mxu0 %v1245_v22  ;;  %v1265_v18 = vpack.c.bf16 %v704_v16, %v700_v15  ;;  %v1329_v22 = vpack.c.bf16 %v706_v19, %v702_v17  ;;  %v1271_v35 = vpack.c.bf16 %v711_v33, %v707_v32  ;;  %v709_v36 = vld [vmem:[%s2113_s17 + $0x290] sm:$0xff]  ;;  %v716_v39 = vld [vmem:[%s2113_s17 + $0x2c8] sm:$0xff]  ;;  %v722_v43 = vld [vmem:[%s2113_s17 + $0x2f8] sm:$0xff] }
  0xee   : > { %1310 = vmatprep.subr.bf16.mxu1 %v1309_v26  ;;  %v1331_v26 = vpack.c.bf16 %v705_v25, %v701_v24  ;;  %v720_v40 = vld [vmem:[%s2113_s17 + $0x2e8] sm:$0xff]  ;;  %v715_v44 = vld [vmem:[%s2113_s17 + $0x2c0] sm:$0xff]  ;;  %v717_v48 = vld [vmem:[%s2113_s17 + $0x2d0] sm:$0xff] }
  0xef   : > { %v719_v45 = vld [vmem:[%s2113_s17 + $0x2e0] sm:$0xff]  ;;  %v721_v49 = vld [vmem:[%s2113_s17 + $0x2f0] sm:$0xff]  ;;  %v728_v52 = vld [vmem:[%s2113_s17 + $0x328] sm:$0xff] }
  0xf0   : > { %1248 = vmatpush1.bf16.msra.mxu0 %v1247_v27  ;;  %v708_v27 = vld [vmem:[%s2113_s17 + $0x288] sm:$0xff]  ;;  %v1275_v47 = vpack.c.bf16 %v719_v45, %v715_v44  ;;  %v726_v53 = vld [vmem:[%s2113_s17 + $0x318] sm:$0xff]  ;;  %v723_v56 = vld [vmem:[%s2113_s17 + $0x300] sm:$0xff] }
  0xf1   : > { %1312 = vmatpush1.bf16.msra.mxu1 %v1311_v30  ;;  %1250 = vmatprep.subr.bf16.mxu0 %v1249_v34  ;;  %v1269_v30 = vpack.c.bf16 %v712_v28, %v708_v27  ;;  %v1333_v34 = vpack.c.bf16 %v714_v31, %v710_v29  ;;  %v730_v55 = vld [vmem:[%s2113_s17 + $0x338] sm:$0xff]  ;;  %v727_v57 = vld [vmem:[%s2113_s17 + $0x320] sm:$0xff]  ;;  %v725_v60 = vld [vmem:[%s2113_s17 + $0x310] sm:$0xff] }
  0xf2   : > { %1314 = vmatprep.subr.bf16.mxu1 %v1313_v37  ;;  %v713_v37 = vld [vmem:[%s2113_s17 + $0x2b0] sm:$0xff]  ;;  %v1279_v59 = vpack.c.bf16 %v727_v57, %v723_v56  ;;  %v736_v0 = vld [vmem:[%s2113_s17 + $0x368] sm:$0xff]  ;;  %v734_v1 = vld [vmem:[%s2113_s17 + $0x358] sm:$0xff] }
  0xf3   : > { %v1335_v38 = vpack.c.bf16 %v713_v37, %v709_v36  ;;  %v729_v61 = vld [vmem:[%s2113_s17 + $0x330] sm:$0xff]  ;;  %v738_v3 = vld [vmem:[%s2113_s17 + $0x378] sm:$0xff]  ;;  %v731_v4 = vld [vmem:[%s2113_s17 + $0x340] sm:$0xff] }
  0xf4   : > { %1252 = vmatpush1.bf16.msra.mxu0 %v1251_v41  ;;  %v718_v41 = vld [vmem:[%s2113_s17 + $0x2d8] sm:$0xff]  ;;  %v735_v5 = vld [vmem:[%s2113_s17 + $0x360] sm:$0xff]  ;;  %v733_v8 = vld [vmem:[%s2113_s17 + $0x350] sm:$0xff] }
  0xf5   : > { %1316 = vmatpush1.bf16.msra.mxu1 %v1315_v42  ;;  %1254 = vmatprep.subr.bf16.mxu0 %v1253_v46  ;;  %v1273_v42 = vpack.c.bf16 %v720_v40, %v716_v39  ;;  %v1337_v46 = vpack.c.bf16 %v722_v43, %v718_v41  ;;  %v1283_v7 = vpack.c.bf16 %v735_v5, %v731_v4  ;;  %v737_v9 = vld [vmem:[%s2113_s17 + $0x370] sm:$0xff]  ;;  %v744_v12 = vld [vmem:[%s2113_s17 + $0x3a8] sm:$0xff]  ;;  %v742_v13 = vld [vmem:[%s2113_s17 + $0x398] sm:$0xff] }
  0xf6   : > { %1318 = vmatprep.subr.bf16.mxu1 %v1317_v50  ;;  %v1339_v50 = vpack.c.bf16 %v721_v49, %v717_v48  ;;  %v746_v15 = vld [vmem:[%s2113_s17 + $0x3b8] sm:$0xff]  ;;  %v739_v16 = vld [vmem:[%s2113_s17 + $0x380] sm:$0xff]  ;;  %v741_v20 = vld [vmem:[%s2113_s17 + $0x390] sm:$0xff] }
  0xf7   : > { %v743_v17 = vld [vmem:[%s2113_s17 + $0x3a0] sm:$0xff]  ;;  %v745_v21 = vld [vmem:[%s2113_s17 + $0x3b0] sm:$0xff]  ;;  %v752_v24 = vld [vmem:[%s2113_s17 + $0x3e8] sm:$0xff] }
  0xf8   : > { %1256 = vmatpush1.bf16.msra.mxu0 %v1255_v51  ;;  %v724_v51 = vld [vmem:[%s2113_s17 + $0x308] sm:$0xff]  ;;  %v1287_v19 = vpack.c.bf16 %v743_v17, %v739_v16  ;;  %v750_v25 = vld [vmem:[%s2113_s17 + $0x3d8] sm:$0xff]  ;;  %v747_v28 = vld [vmem:[%s2113_s17 + $0x3c0] sm:$0xff] }
  0xf9   : > { %1320 = vmatpush1.bf16.msra.mxu1 %v1319_v54  ;;  %1258 = vmatprep.subr.bf16.mxu0 %v1257_v58  ;;  %v1277_v54 = vpack.c.bf16 %v728_v52, %v724_v51  ;;  %v1341_v58 = vpack.c.bf16 %v730_v55, %v726_v53  ;;  %v754_v27 = vld [vmem:[%s2113_s17 + $0x3f8] sm:$0xff]  ;;  %v751_v29 = vld [vmem:[%s2113_s17 + $0x3e0] sm:$0xff]  ;;  %v749_v32 = vld [vmem:[%s2113_s17 + $0x3d0] sm:$0xff] }
  0xfa   : > { %1322 = vmatprep.subr.bf16.mxu1 %v1321_v62  ;;  %v1343_v62 = vpack.c.bf16 %v729_v61, %v725_v60  ;;  %v1291_v31 = vpack.c.bf16 %v751_v29, %v747_v28  ;;  %v753_v33 = vld [vmem:[%s2113_s17 + $0x3f0] sm:$0xff]  ;;  %v384_v36 = vld [vmem:[%s2099_s18] sm:$0xff]  ;;  %v385_v37 = vld [vmem:[%s2099_s18 + $0x8] sm:$0xff] }
  0xfb   : > { %v387_v44 = vld [vmem:[%s2099_s18 + $0x18] sm:$0xff]  ;;  %v386_v48 = vld [vmem:[%s2099_s18 + $0x10] sm:$0xff]  ;;  %s1159_s18 = sshll.u32 %s963_s11, 7 }
  0xfc   : > { %1260 = vmatpush1.bf16.msra.mxu0 %v1259_v63  ;;  %v732_v63 = vld [vmem:[%s2113_s17 + $0x348] sm:$0xff]  ;;  %v598_v57 = vld [vmem:[#allocation3] sm:$0xff]  ;;  %s2330_s6 = scalar_lea.hbm %s2452_s14, %s1159_s18 }
  0xfd   : > { %1324 = vmatpush1.bf16.msra.mxu1 %v1323_v2  ;;  %1262 = vmatprep.subr.bf16.mxu0 %v1261_v6  ;;  %v1281_v2 = vpack.c.bf16 %v736_v0, %v732_v63  ;;  %v1345_v6 = vpack.c.bf16 %v738_v3, %v734_v1  ;;  %v757_v3 = vlaneseq }
  0xfe   : > { %1326 = vmatprep.subr.bf16.mxu1 %v1325_v10  ;;  %v1347_v10 = vpack.c.bf16 %v737_v9, %v733_v8 }
  0xff   : > { %v758_v4 = vshrl.u32 %v757_v3, 7 }
 0x100   : > { %1264 = vmatpush1.bf16.msra.mxu0 %v1263_v11  ;;  %v740_v11 = vld [vmem:[%s2113_s17 + $0x388] sm:$0xff] }
 0x101   : > { %1328 = vmatpush1.bf16.msra.mxu1 %v1327_v14  ;;  %1266 = vmatprep.subr.bf16.mxu0 %v1265_v18  ;;  %v1285_v14 = vpack.c.bf16 %v744_v12, %v740_v11  ;;  %v1349_v18 = vpack.c.bf16 %v746_v15, %v742_v13  ;;  %v759_v5 = vsub.s32 0, %v758_v4  ;;  %v771_v12 = vsub.s32 3, %v758_v4 }
 0x102   : > { %1330 = vmatprep.subr.bf16.mxu1 %v1329_v22  ;;  %v1351_v22 = vpack.c.bf16 %v745_v21, %v741_v20  ;;  %v767_v20 = vsub.s32 2, %v758_v4 }
 0x104   : > { %1268 = vmatpush1.bf16.msra.mxu0 %v1267_v23  ;;  %v748_v23 = vld [vmem:[%s2113_s17 + $0x3c8] sm:$0xff]  ;;  %s1634_s17 = sshll.u32 %s1770_s13, 4  ;;  %s1635_s17 = int_to_ptr.vmem [resolvable:$false] %s1634_s17 }
 0x105   : > { %1332 = vmatpush1.bf16.msra.mxu1 %v1331_v26  ;;  %1270 = vmatprep.subr.bf16.mxu0 %v1269_v30  ;;  %v1289_v26 = vpack.c.bf16 %v752_v24, %v748_v23  ;;  %v1353_v30 = vpack.c.bf16 %v754_v27, %v750_v25  ;;  %s1636_s23 = scalar_lea.vmem %s1635_s17, 256  ;;  %p1637_p8 = scmp.lt.s32.totalorder %s2332_s9, %s1635_s17 }
 0x106   : > { %1334 = vmatprep.subr.bf16.mxu1 %v1333_v34  ;;  %v1355_v34 = vpack.c.bf16 %v753_v33, %v749_v32  ;;  %p1638_p11 = scmp.lt.s32.totalorder %s1636_s23, %s1630_s10 }
 0x108   : > { %1272 = vmatpush1.bf16.msra.mxu0 %v1271_v35  ;;  %v626_v35 = vld [vmem:[#allocation2 + $0x8] sm:$0xff]  ;;  %p1639_p7 = por %p1638_p11, %p1637_p8 }
 0x109   : > { %1336 = vmatpush1.bf16.msra.mxu1 %v1335_v38  ;;  %1274 = vmatprep.subr.bf16.mxu0 %v1273_v42 }
 0x10a   : > { %1338 = vmatprep.subr.bf16.mxu1 %v1337_v46  ;;  %841 = vmatprep.mubr.f32.mxu0 %v626_v35  ;;  %p1640_p3 = pnand %p1639_p7, %p1633_p4 }
 0x10b   : > { %912 = vmatprep.mubr.f32.mxu1 %v626_v35 }
 0x10c   : > { %1276 = vmatpush1.bf16.msra.mxu0 %v1275_v47 }
 0x10d   : > { %1340 = vmatpush1.bf16.msra.mxu1 %v1339_v50  ;;  %1278 = vmatprep.subr.bf16.mxu0 %v1277_v54 }
 0x10e   : > { %1342 = vmatprep.subr.bf16.mxu1 %v1341_v58 }
 0x110   : > { %1280 = vmatpush1.bf16.msra.mxu0 %v1279_v59 }
 0x111   : > { %1344 = vmatpush1.bf16.msra.mxu1 %v1343_v62  ;;  %1282 = vmatprep.subr.bf16.mxu0 %v1281_v2 }
 0x112   : > { %1346 = vmatprep.subr.bf16.mxu1 %v1345_v6  ;;  %v755_v6 = vld [vmem:[%s2115_s8] sm:$0xf] }
 0x113   : > { %v760_v8 = vrot.slane %v755_v6, %v759_v5 }
 0x114   : > { %1284 = vmatpush1.bf16.msra.mxu0 %v1283_v7  ;;  %v763_v7 = vsub.s32 1, %v758_v4 }
 0x115   : > { %1348 = vmatpush1.bf16.msra.mxu1 %v1347_v10  ;;  %1286 = vmatprep.subr.bf16.mxu0 %v1285_v14 }
 0x116   : > { %1350 = vmatprep.subr.bf16.mxu1 %v1349_v18  ;;  %v764_v9 = vrot.slane %v755_v6, %v763_v7 }
 0x118   : > { %1288 = vmatpush1.bf16.msra.mxu0 %v1287_v19  ;;  %v772_v19 = vrot.slane %v755_v6, %v771_v12 }
 0x119   : > { %1352 = vmatpush1.bf16.msra.mxu1 %v1351_v22  ;;  %1290 = vmatprep.subr.bf16.mxu0 %v1289_v26  ;;  %v768_v22 = vrot.slane %v755_v6, %v767_v20 }
 0x11a   : > { %1354 = vmatprep.subr.bf16.mxu1 %v1353_v30 }
 0x11c   : > { %1292 = vmatpush1.bf16.msra.mxu0 %v1291_v31  ;;  %v919_v31 = vld [vmem:[#allocation4] sm:$0xff] }
 0x11d   : > { %1356 = vmatpush1.bf16.msra.mxu1 %v1355_v34 }
 0x1b2   : > { %v518_v38 = vpop.f32.mrb[0].mxu0 }
 0x1b3   : > { %v594_v39 = vadd.f32 %v518_v38, %v384_v36  ;;  %v520_v40 = vpop.f32.mrb[1].mxu0  ;;  %v589_v45 = vpop.f32.mrb[0].mxu1 }
 0x1b4   : > { %v595_v41 = vadd.f32 %v520_v40, %v385_v37  ;;  %v591_v46 = vpop.f32.mrb[1].mxu1  ;;  %v596_v50 = vadd.f32 %v589_v45, %v386_v48 }
 0x1b5   : > { %v1150_v42 = vmul.f32 -1.442695, %v594_v39  ;;  %v597_v47 = vadd.f32 %v591_v46, %v387_v44 }
 0x1b6   : > { %v1151_v43 = vmul.f32 -1.442695, %v595_v41 }
 0x1b7   : > { %1478 = vpow2.f32 %v1150_v42  ;;  %v1152_v49 = vmul.f32 -1.442695, %v597_v47 }
 0x1b8   : > { %1480 = vpow2.f32 %v1151_v43 }
 0x1b9   : > { %1482 = vpow2.f32 %v1152_v49 }
 0x1ba   : > { %1484 = vtanh.f32 %v596_v50 }
 0x1c1   : > { %v1479_v51 = vpop.eup %1478 }
 0x1c2   : > { %v1481_v52 = vpop.eup %1480  ;;  %v602_v53 = vadd.f32 1.0, %v1479_v51 }
 0x1c3   : > { %v608_v54 = vadd.f32 1.0, %v1481_v52  ;;  %v1483_v55 = vpop.eup %1482 }
 0x1c4   : > { %1486 = vrcp.f32 %v602_v53  ;;  %v1485_v56 = vpop.eup %1484  ;;  %v615_v59 = vadd.f32 1.0, %v1483_v55 }
 0x1c5   : > { %1488 = vrcp.f32 %v608_v54 }
 0x1c6   : > { %1490 = vrcp.f32 %v615_v59 }
 0x1ce   : > { %v1487_v58 = vpop.eup %1486 }
 0x1cf   : > { %v1489_v60 = vpop.eup %1488  ;;  %v619_v61 = vmul.f32 %v1487_v58, %v1485_v56 }
 0x1d0   : > { %v618_v62 = vmul.f32 %v1489_v60, %v598_v57  ;;  %v1491_v0 = vpop.eup %1490 }
 0x1d2   : > { %v620_v63 = vadd.f32 %v619_v61, %v618_v62 }
 0x1d4   : > { %1492 = vtanh.f32 %v620_v63  ;;  %623 = vst [vmem:[#allocation3] sm:$0xff] %v620_v63 }
 0x1de   : > { %v1493_v1 = vpop.eup %1492 }
 0x1df   : > { %v622_v2 = vmul.f32 %v1493_v1, %v1491_v0 }
 0x1e1   : > { %624 = vst [vmem:[#allocation2] sm:$0xff] %v622_v2  ;;  %842 = vmatmul.mubr.f32.vlgmr.msra.gmra.mrb[2].mxu0 %v622_v2  ;;  %913 = vmatmul.mubr.f32.vlgmr.msra.gmra.mrb[2].mxu1 %v622_v2 }
 0x2b4   : > { %v843_v10 = vpop.f32.mrb[2].mxu0  ;;  %v914_v11 = vpop.f32.mrb[2].mxu1 }
 0x2b5   : > { %v844_v13 = vadd.f32 %v843_v10, %v760_v8  ;;  %v845_v14 = vpop.f32.mrb[3].mxu0  ;;  %v916_v15 = vpop.f32.mrb[3].mxu1  ;;  %v915_v24 = vadd.f32 %v914_v11, %v768_v22 }
 0x2b6   : > { %v846_v16 = vadd.f32 %v845_v14, %v764_v9  ;;  %v917_v21 = vadd.f32 %v916_v15, %v772_v19 }
 0x2b7   : > { %v1153_v17 = vmul.f32 -1.442695, %v844_v13 }
 0x2b8   : > { %v1154_v18 = vmul.f32 -1.442695, %v846_v16  ;;  %v1155_v23 = vmul.f32 -1.442695, %v917_v21 }
 0x2b9   : > { %1494 = vpow2.f32 %v1153_v17 }
 0x2ba   : > { %1496 = vpow2.f32 %v1154_v18 }
 0x2bb   : > { %1498 = vpow2.f32 %v1155_v23 }
 0x2bc   : > { %1500 = vtanh.f32 %v915_v24 }
 0x2c3   : > { %v1495_v25 = vpop.eup %1494 }
 0x2c4   : > { %v1497_v26 = vpop.eup %1496  ;;  %v923_v27 = vadd.f32 1.0, %v1495_v25 }
 0x2c5   : > { %v929_v28 = vadd.f32 1.0, %v1497_v26  ;;  %v1499_v29 = vpop.eup %1498 }
 0x2c6   : > { %1502 = vrcp.f32 %v923_v27  ;;  %v1501_v30 = vpop.eup %1500  ;;  %v936_v35 = vadd.f32 1.0, %v1499_v29 }
 0x2c7   : > { %1504 = vrcp.f32 %v929_v28 }
 0x2c8   : > { %1506 = vrcp.f32 %v936_v35 }
 0x2d0   : > { %v1503_v32 = vpop.eup %1502 }
 0x2d1   : > { %v1505_v33 = vpop.eup %1504  ;;  %v940_v34 = vmul.f32 %v1503_v32, %v1501_v30 }
 0x2d2   : > { %v939_v36 = vmul.f32 %v1505_v33, %v919_v31  ;;  %v1507_v38 = vpop.eup %1506 }
 0x2d4   : > { %v941_v37 = vadd.f32 %v940_v34, %v939_v36 }
 0x2d6   : > { %944 = vst [vmem:[#allocation4] sm:$0xff] %v941_v37  ;;  %1508 = vtanh.f32 %v941_v37 }
 0x2e0   : > { %v1509_v39 = vpop.eup %1508 }
 0x2e1   : > { %v943_v40 = vmul.f32 %v1509_v39, %v1507_v38 }
 0x2e3   : > { %945 = vst [vmem:[#allocation2 + $0x8] sm:$0xff] %v943_v40  ;;  %946 = vst [vmem:[%s2122_s20] sm:$0xff] %v943_v40 }
 0x2e4   : > { %1643 = shalt.err (!%p1640_p3)
}
 0x2e5   : > { %s1644_s12 = scalar_lea.hbm %s2330_s6, 128  ;;  %s1648_s20 = scalar_lea.hbm %s2452_s14, 4096 }
 0x2e6   : > { %p1645_p0 = scmp.ne.s32.totalorder %s2330_s6, %s1644_s12  ;;  %p1649_p6 = scmp.lt.u32.totalorder %s2330_s6, %s2452_s14 }
 0x2e7   : > { %p1650_p5 = scmp.lt.u32.totalorder %s1648_s20, %s1644_s12  ;;  %p1652_p1 = scmp.lt.u32.totalorder %s1644_s12, %s2330_s6 }
 0x2e8   : > { %p1646_p13 = pnand %p1645_p0, %p2453_p9 }
 0x2e9   : > { %p1651_p2 = por %p1650_p5, %p1649_p6 }
 0x2ea   : > { %p1647_p12 = pneg %p1646_p13 }
 0x2eb   : > { %p1653_p10 = por %p1652_p1, %p1651_p2 }
 0x2ed   : > { %p1654_p4 = pnand %p1653_p10, %p1647_p12 }
 0x2ef   : > { %1657 = shalt.err (!%p1654_p4)
}
 0x2f0   : > { %1365 = dma.vmem_to_hbm [thread:$0]  (%p2453_p9), %s2332_s9, 128, %s2330_s6, %s948_s21  }
 0x2f1 PF: > { %s2454_s22 = sld [smem:[#allocation19_spill]]  ;;  %p1385_p8 = scmp.ge.s32.totalorder %s1760_s25, 2 }
 0x2f2   : > { %p2455_p11 = scmp.ne.s32.totalorder %s2440_s4, 0 }
 0x2f4   : > { %p1381_p7 = pnand %p1385_p8, %p2455_p11 }
 0x2f7   : > { %s979_s30 = sand.u32 1, %s2454_s22  }
 0x2f8   : > { %s980_s15 = scalar_lea.sflag [#allocation7], %s979_s30 }
 0x2f9   : > { %1715 = dma.done.wait (!%p1381_p7), %s980_s15, 128  }
 0x2fa   : > { %1717 = vsyncadd (!%p1381_p7), %s980_s15, 4294967168  ;;  %s26_s25 = sadd.s32 1, %s1760_s25   ;;  %s2456_s5 = sld [smem:[#allocation18_spill]] }
 0x2fb   : > { %p23_p3 = scmp.ge.s32.totalorder %s26_s25, 34   ;;  %s2457_s17 = sld [smem:[#allocation25_spill]] }
 0x2fc   : > { %s2458_s7 = sld [smem:[#allocation20_spill]]  ;;  %s2459_s20 = sld [smem:[#allocation26_spill]] }
 0x2fd   : > { %s2460_s21 = sld [smem:[#allocation22_spill]]  ;;  %s2461_s23 = sld [smem:[#allocation23_spill]] }
 0x2fe   : > { %s2462_s11 = sld [smem:[#allocation24_spill]]  ;;  %s2463_s15 = smov %s1724_s16 }
 0x2ff   : > { %s2465_s18 = smov %s1736_s19  ;;  %s2467_s22 = smov %s1756_s24 }
 0x300   : > { %s2464_s16 = smov %s2456_s5  ;;  %25 = sbr.rel (!%p23_p3) target bundleno = 16 (0x10), region = 122 }
 0x302   : > { %s2466_s19 = smov %s2458_s7 }
 0x304   : > { %s2468_s24 = smov %s2462_s11 }
 0x307   :  { %985 = vsyncpa [#allocation6], 1 }
 0x308   :  { %987 = vsyncpa [#allocation6 + $0x1], 1 }
 0x309   :  { %988 = vsyncpa [#allocation9], 1 }
 0x30a   :  { %990 = vsyncpa [#allocation9 + $0x1], 1 }
 0x30b   :  { %991 = vsyncpa [#allocation12], 1 }
 0x30c   :  { %993 = vsyncpa [#allocation12 + $0x1], 1 }
 0x30d   :  { %994 = vsyncpa [#allocation7], 1 }
 0x30e   :  { %996 = vsyncpa [#allocation7 + $0x1], 1 }

</bundles_post_ra>
